<compile_context>
chip_gen: v6e
topology: v6e:2x2x1
jax: 0.10.0
libtpu: 0.0.40
codegen_flags: <defaults>
</compile_context>

<pallas_src>
import math

import jax
import jax.numpy as jnp
from jax.experimental import pallas as pl
from jax.experimental.pallas import tpu as pltpu


def read_unit_kernel(mem_ref, ctrl_ref, know_ref,
                     wm_ref, bm_ref, w12t_ref, wa_ref,
                     out_ref):
    dim = mem_ref.shape[-1]

    memory = mem_ref[...]            # (TB, dim) f32
    control = ctrl_ref[...]          # (TB, dim) f32
    know = know_ref[...]             # (TB, dim, S) bf16 — used directly, no f32 copy

    # m = self.mem(memory[-1])  — small dense matmul, MXU.
    m = jnp.dot(memory, wm_ref[...],
                preferred_element_type=jnp.float32) + bm_ref[...]          # (TB, dim)

    # Fused concat/attn projection: v = control ⊙ w_attn, one (dim, 2*dim) matmul.
    v = control * wa_ref[...]                                              # (TB, dim)
    w12v = jnp.dot(v, w12t_ref[...], preferred_element_type=jnp.float32)   # (TB, 2*dim)
    u = m * w12v[:, :dim] + w12v[:, dim:]                                  # (TB, dim)

    # logits[b,s] = Σ_d know[b,d,s] * u[b,d]
    # VPU multiply (bf16 know promoted per-op to f32) + sublane-axis reduce.
    # Softmax-invariant constants (bc·v + b_attn) are dropped.
    logits = jnp.sum(u[:, :, None] * know, axis=1)                         # (TB, S) f32

    # Row-wise softmax over S — dense layout: TB on sublanes, S on lanes.
    lmax = jnp.max(logits, axis=-1, keepdims=True)                         # (TB, 1)
    p = jnp.exp(logits - lmax)                                             # (TB, S)
    denom = jnp.sum(p, axis=-1, keepdims=True)                             # (TB, 1)

    # read[b,d] = (Σ_s p[b,s] * know[b,d,s]) / denom[b]
    # VPU multiply + XLU lane reduce; EUP approx reciprocal for the denominator.
    read = jnp.sum(p[:, None, :] * know, axis=-1)                          # (TB, dim) f32
    read = read * pl.reciprocal(denom, approx=True)
    out_ref[...] = read.astype(out_ref.dtype)


def _pick_batch_block(B, dim, S, know_itemsize):
    """Batch tile heuristic: >= 2 (ideally >= 4) grid steps so double-buffering
    overlaps the `know` DMA with compute, `know` blocks ~<= 2 MiB so the
    ~0.35us/step grid overhead stays negligible, and multiple-of-8 sublane rows."""
    if B <= 8:
        return B                                     # too small to tile
    total_know = B * dim * S * know_itemsize
    nb_target = max(4, pl.cdiv(total_know, 2 << 20))
    tb = pl.cdiv(B, nb_target)
    tb = max(8, pl.cdiv(tb, 8) * 8)
    return min(tb, B)


def read_unit_pallas(memory, know_pt, control, params, *, batch_block=None,
                     know_dtype=jnp.bfloat16, vmem_limit_bytes=None):
    """memory/control: MAC step lists (only [-1] used); know_pt: [B, dim, S]
    PyTorch layout (consumed as-is — no wrapper-side HBM transpose)."""
    memory_last = memory[-1].astype(jnp.float32)     # (B, dim)
    control_last = control[-1].astype(jnp.float32)   # (B, dim)
    wm, bm, w1, w2, bc, wa, ba = params
    del bc, ba   # softmax-invariant constants in the fused formulation

    B, dim = memory_last.shape
    S = know_pt.shape[2]

    # `know` is the only large operand: stream it in bf16 (half the HBM traffic
    # and VMEM footprint); all accumulation stays in f32 inside the kernel.
    know = know_pt.astype(know_dtype)

    # One-time tiny weight re-orientation: W1@v / W2@v become v @ [W1ᵀ|W2ᵀ]
    # (single fused matmul); attn weight as a lane-major row.
    w12t = jnp.concatenate([w1.T, w2.T], axis=1).astype(jnp.float32)   # (dim, 2*dim)
    wm_t = wm.astype(jnp.float32)                                      # (dim, dim)
    bm_row = bm.reshape(1, dim).astype(jnp.float32)
    wa_row = wa.reshape(1, dim).astype(jnp.float32)

    if batch_block is None:
        batch_block = _pick_batch_block(B, dim, S, jnp.dtype(know_dtype).itemsize)
    tb = max(1, min(batch_block, B))
    nb = pl.cdiv(B, tb)   # B need not divide tb: Pallas pads/masks the last block

    if vmem_limit_bytes is None:
        f32 = 4
        know_blk = tb * dim * S * jnp.dtype(know_dtype).itemsize
        est = (2 * know_blk                                   # know, double-buffered
               + 2 * 3 * tb * dim * f32                       # mem/ctrl/out blocks
               + 2 * (3 * dim * dim + 2 * dim) * f32          # weights + bias rows
               + 2 * tb * dim * S * f32)                      # f32 contraction temps
        # Never below the typical default scoped limit; capped well under v7x's
        # 64 MiB physical VMEM.
        vmem_limit_bytes = int(min(max(32 << 20, 2 * est), 48 << 20))

    # TODO(synk): at realistic dims the constant-index weight inputs could be
    # single-buffered (pl.Buffered(1)) to reclaim a few MiB of VMEM headroom.
    in_specs = [
        pl.BlockSpec((tb, dim), lambda i: (i, 0)),        # memory[-1]
        pl.BlockSpec((tb, dim), lambda i: (i, 0)),        # control[-1]
        pl.BlockSpec((tb, dim, S), lambda i: (i, 0, 0)),  # know [B, dim, S] (bf16)
        pl.BlockSpec((dim, dim), lambda i: (0, 0)),       # W_memᵀ
        pl.BlockSpec((1, dim), lambda i: (0, 0)),         # b_mem
        pl.BlockSpec((dim, 2 * dim), lambda i: (0, 0)),   # [W1ᵀ | W2ᵀ]
        pl.BlockSpec((1, dim), lambda i: (0, 0)),         # w_attn as lane row
    ]
    out_specs = pl.BlockSpec((tb, dim), lambda i: (i, 0))

    return pl.pallas_call(
        read_unit_kernel,
        out_shape=jax.ShapeDtypeStruct((B, dim), jnp.float32),
        grid_spec=pltpu.PrefetchScalarGridSpec(
            num_scalar_prefetch=0,
            grid=(nb,),
            in_specs=in_specs,
            out_specs=out_specs,
        ),
        compiler_params=pltpu.CompilerParams(
            dimension_semantics=("parallel",),
            vmem_limit_bytes=vmem_limit_bytes,
        ),
    )(memory_last, control_last, know, wm_t, bm_row, w12t, wa_row)


def read_unit_ref(memory, know_pt, control, params):
    """Pure-JAX reference following the PyTorch code literally (f32)."""
    wm, bm, w1, w2, bc, wa, ba = params
    memory_last = memory[-1]
    control_last = control[-1]
    mem = memory_last @ wm + bm                            # (B, dim)
    mk = mem[:, :, None] * know_pt                         # (B, dim, S)
    cat = jnp.concatenate([mk, know_pt], axis=1)           # (B, 2dim, S)
    x = jnp.transpose(cat, (0, 2, 1))                      # (B, S, 2dim)
    wcat = jnp.concatenate([w1, w2], axis=0)               # (2dim, dim)
    concat = x @ wcat + bc                                 # (B, S, dim)
    attn_in = concat * control_last[:, None, :]            # (B, S, dim)
    logits = (attn_in @ wa)[:, :, 0] + ba[0, 0]            # (B, S)
    p = jax.nn.softmax(logits, axis=1)                     # (B, S)
    read = jnp.einsum('bs,bds->bd', p, know_pt)            # (B, dim)
    return read


def _xavier_uniform(key, out_dim, in_dim):
    bound = math.sqrt(6.0 / (in_dim + out_dim))
    return jax.random.uniform(key, (out_dim, in_dim), jnp.float32, -bound, bound)


def init_params(key, dim):
    k1, k2, k3, k4, k5, k6 = jax.random.split(key, 6)
    # nn.Linear weights are [out, in]; store transposed [in, out] for x @ W.
    w_mem = _xavier_uniform(k1, dim, dim).T                # (dim, dim)
    w_cat_t = _xavier_uniform(k2, dim, 2 * dim).T          # (2*dim, dim)
    w1 = w_cat_t[:dim]                                     # multiplies (mem*know)
    w2 = w_cat_t[dim:]                                     # multiplies know
    w_attn = _xavier_uniform(k3, 1, dim).T                 # (dim, 1)
    # PyTorch's linear() helper zeroes the biases; use small nonzero values here
    # so the test also validates the softmax-invariant constant elimination.
    b_mem = 0.1 * jax.random.normal(k4, (1, dim), jnp.float32)
    b_cat = 0.1 * jax.random.normal(k5, (1, dim), jnp.float32)
    b_attn = 0.1 * jax.random.normal(k6, (1, 1), jnp.float32)
    return (w_mem, b_mem, w1, w2, b_cat, w_attn, b_attn)


if __name__ == "__main__":
    # Small shapes consistent with E2ENetwork's MAC role labeller:
    #   B   = batch_size(4) * max_role_count(4) MAC "questions"
    #   dim = mlp_hidden (scaled down 512 -> 128 for the demo)
    #   S   = conv_h * conv_w = 7*7 VGG16 feature-map locations
    B, dim, S = 16, 128, 49

    key = jax.random.PRNGKey(0)
    kp, km, kk, kc, km2, kk2, kc2 = jax.random.split(key, 7)
    params = init_params(kp, dim)

    # memory / control are step lists in the MAC model; only [-1] is used.
    memory = [jax.random.normal(km, (B, dim), jnp.float32)]
    control = [jax.random.normal(kc, (B, dim), jnp.float32)]
    know = jax.random.normal(kk, (B, dim, S), jnp.float32)   # PyTorch layout [B, dim, S]

    out = jax.block_until_ready(read_unit_pallas(memory, know, control, params))
    ref = read_unit_ref(memory, know, control, params)
    assert out.shape == (B, dim)
    # bf16 know streaming + approx reciprocal -> slightly looser tolerance vs f32 ref.
    assert jnp.allclose(out, ref, atol=5e-3, rtol=5e-3), (
        f"max abs diff {jnp.max(jnp.abs(out - ref))}")

    # Second check: batch not divisible by the batch block (padded last grid step).
    B2 = 12
    memory2 = [jax.random.normal(km2, (B2, dim), jnp.float32)]
    control2 = [jax.random.normal(kc2, (B2, dim), jnp.float32)]
    know2 = jax.random.normal(kk2, (B2, dim, S), jnp.float32)
    out2 = jax.block_until_ready(read_unit_pallas(memory2, know2, control2, params))
    ref2 = read_unit_ref(memory2, know2, control2, params)
    assert out2.shape == (B2, dim)
    assert jnp.allclose(out2, ref2, atol=5e-3, rtol=5e-3), (
        f"max abs diff {jnp.max(jnp.abs(out2 - ref2))}")

    print("KERNEL_OK")
</pallas_src>

<mosaic_0001>
module attributes {stable_mosaic.version = 11 : i64} {
  func.func @read_unit_kernel(%arg0: i32, %arg1: memref<8x128xf32, #tpu.memory_space<vmem>>, %arg2: memref<8x128xf32, #tpu.memory_space<vmem>>, %arg3: memref<8x128x49xbf16, #tpu.memory_space<vmem>>, %arg4: memref<128x128xf32, #tpu.memory_space<vmem>>, %arg5: memref<1x128xf32, #tpu.memory_space<vmem>>, %arg6: memref<128x256xf32, #tpu.memory_space<vmem>>, %arg7: memref<1x128xf32, #tpu.memory_space<vmem>>, %arg8: memref<8x128xf32, #tpu.memory_space<vmem>>) attributes {dimension_semantics = [#tpu.dimension_semantics<parallel>], iteration_bounds = array<i64: 2>, scalar_prefetch = 0 : i64, scratch_operands = 0 : i64, tpu.core_type = #tpu.core_type<tc>, window_params = [{transform_indices = @transform_0, window_bounds = array<i64: 8, 128>}, {transform_indices = @transform_1, window_bounds = array<i64: 8, 128>}, {transform_indices = @transform_2, window_bounds = array<i64: 8, 128, 49>}, {pipeline_mode = #tpu.pipeline_mode<synchronous>, transform_indices = @transform_3, window_bounds = array<i64: 128, 128>}, {pipeline_mode = #tpu.pipeline_mode<synchronous>, transform_indices = @transform_4, window_bounds = array<i64: 1, 128>}, {pipeline_mode = #tpu.pipeline_mode<synchronous>, transform_indices = @transform_5, window_bounds = array<i64: 128, 256>}, {pipeline_mode = #tpu.pipeline_mode<synchronous>, transform_indices = @transform_6, window_bounds = array<i64: 1, 128>}, {transform_indices = @transform_7, window_bounds = array<i64: 8, 128>}]} {
    %c0 = arith.constant 0 : index
    %c0_0 = arith.constant 0 : index
    %0 = vector.load %arg1[%c0, %c0_0] : memref<8x128xf32, #tpu.memory_space<vmem>>, vector<8x128xf32>
    %c0_1 = arith.constant 0 : index
    %c0_2 = arith.constant 0 : index
    %1 = vector.load %arg2[%c0_1, %c0_2] : memref<8x128xf32, #tpu.memory_space<vmem>>, vector<8x128xf32>
    %c0_3 = arith.constant 0 : index
    %c0_4 = arith.constant 0 : index
    %c0_5 = arith.constant 0 : index
    %2 = vector.load %arg3[%c0_3, %c0_4, %c0_5] : memref<8x128x49xbf16, #tpu.memory_space<vmem>>, vector<8x128x49xbf16>
    %c0_6 = arith.constant 0 : index
    %c0_7 = arith.constant 0 : index
    %3 = vector.load %arg4[%c0_6, %c0_7] : memref<128x128xf32, #tpu.memory_space<vmem>>, vector<128x128xf32>
    %cst = arith.constant dense<0.000000e+00> : vector<8x128xf32>
    %4 = tpu.matmul %0, %3, %cst {dimension_numbers = #tpu.dot_dimension_numbers<[1], [0], [0], [1], [0, 0, 1, 1], [], []>} : vector<8x128xf32>, vector<128x128xf32>, vector<8x128xf32> -> vector<8x128xf32>
    %c0_8 = arith.constant 0 : index
    %c0_9 = arith.constant 0 : index
    %5 = vector.load %arg5[%c0_8, %c0_9] : memref<1x128xf32, #tpu.memory_space<vmem>>, vector<1x128xf32>
    %6 = vector.broadcast %5 : vector<1x128xf32> to vector<8x128xf32>
    %7 = arith.addf %4, %6 : vector<8x128xf32>
    %c0_10 = arith.constant 0 : index
    %c0_11 = arith.constant 0 : index
    %8 = vector.load %arg7[%c0_10, %c0_11] : memref<1x128xf32, #tpu.memory_space<vmem>>, vector<1x128xf32>
    %9 = vector.broadcast %8 : vector<1x128xf32> to vector<8x128xf32>
    %10 = arith.mulf %1, %9 : vector<8x128xf32>
    %c0_12 = arith.constant 0 : index
    %c0_13 = arith.constant 0 : index
    %11 = vector.load %arg6[%c0_12, %c0_13] : memref<128x256xf32, #tpu.memory_space<vmem>>, vector<128x256xf32>
    %cst_14 = arith.constant dense<0.000000e+00> : vector<8x256xf32>
    %12 = tpu.matmul %10, %11, %cst_14 {dimension_numbers = #tpu.dot_dimension_numbers<[1], [0], [0], [1], [0, 0, 1, 1], [], []>} : vector<8x128xf32>, vector<128x256xf32>, vector<8x256xf32> -> vector<8x256xf32>
    %13 = vector.extract_strided_slice %12 {offsets = [0, 0], sizes = [8, 128], strides = [1, 1]} : vector<8x256xf32> to vector<8x128xf32>
    %14 = arith.mulf %7, %13 : vector<8x128xf32>
    %15 = vector.extract_strided_slice %12 {offsets = [0, 128], sizes = [8, 128], strides = [1, 1]} : vector<8x256xf32> to vector<8x128xf32>
    %16 = arith.addf %14, %15 : vector<8x128xf32>
    %17 = vector.shape_cast %16 : vector<8x128xf32> to vector<8x128x1xf32>
    %18 = arith.extf %2 : vector<8x128x49xbf16> to vector<8x128x49xf32>
    %19 = vector.broadcast %17 : vector<8x128x1xf32> to vector<8x128x49xf32>
    %20 = arith.mulf %19, %18 : vector<8x128x49xf32>
    %cst_15 = arith.constant dense<0.000000e+00> : vector<8x49xf32>
    %21 = vector.multi_reduction <add>, %20, %cst_15 [1] : vector<8x128x49xf32> to vector<8x49xf32>
    %cst_16 = arith.constant dense<0xFF800000> : vector<8xf32>
    %22 = vector.multi_reduction <maximumf>, %21, %cst_16 [1] : vector<8x49xf32> to vector<8xf32>
    %23 = vector.shape_cast %22 : vector<8xf32> to vector<8x1xf32>
    %24 = vector.broadcast %23 : vector<8x1xf32> to vector<8x49xf32>
    %25 = arith.subf %21, %24 : vector<8x49xf32>
    %26 = math.exp %25 : vector<8x49xf32>
    %cst_17 = arith.constant dense<0.000000e+00> : vector<8xf32>
    %27 = vector.multi_reduction <add>, %26, %cst_17 [1] : vector<8x49xf32> to vector<8xf32>
    %28 = vector.shape_cast %27 : vector<8xf32> to vector<8x1xf32>
    %29 = vector.shape_cast %26 : vector<8x49xf32> to vector<8x1x49xf32>
    %30 = arith.extf %2 : vector<8x128x49xbf16> to vector<8x128x49xf32>
    %31 = vector.broadcast %29 : vector<8x1x49xf32> to vector<8x128x49xf32>
    %32 = arith.mulf %31, %30 : vector<8x128x49xf32>
    %cst_18 = arith.constant dense<0.000000e+00> : vector<8x128xf32>
    %33 = vector.multi_reduction <add>, %32, %cst_18 [2] : vector<8x128x49xf32> to vector<8x128xf32>
    %34 = tpu.reciprocal %28 {approx = true} : vector<8x1xf32> -> vector<8x1xf32>
    %35 = vector.broadcast %34 : vector<8x1xf32> to vector<8x128xf32>
    %36 = arith.mulf %33, %35 : vector<8x128xf32>
    %c0_19 = arith.constant 0 : index
    %c0_20 = arith.constant 0 : index
    %37 = vector.load %arg8[%c0_19, %c0_20] : memref<8x128xf32, #tpu.memory_space<vmem>>, vector<8x128xf32>
    tpu.vector_store %arg8[%c0_19, %c0_20], %36 {strides = array<i32>} : memref<8x128xf32, #tpu.memory_space<vmem>>, vector<8x128xf32>,
    return
  }
  func.func @transform_0(%arg0: i32) -> (i32, i32) {
    %c0_i32 = arith.constant 0 : i32
    %c0_i32_0 = arith.constant 0 : i32
    return %arg0, %c0_i32 : i32, i32
  }
  func.func @transform_1(%arg0: i32) -> (i32, i32) {
    %c0_i32 = arith.constant 0 : i32
    %c0_i32_0 = arith.constant 0 : i32
    return %arg0, %c0_i32 : i32, i32
  }
  func.func @transform_2(%arg0: i32) -> (i32, i32, i32) {
    %c0_i32 = arith.constant 0 : i32
    %c0_i32_0 = arith.constant 0 : i32
    %c0_i32_1 = arith.constant 0 : i32
    return %arg0, %c0_i32, %c0_i32_0 : i32, i32, i32
  }
  func.func @transform_3(%arg0: i32) -> (i32, i32) {
    %c0_i32 = arith.constant 0 : i32
    %c0_i32_0 = arith.constant 0 : i32
    %c0_i32_1 = arith.constant 0 : i32
    return %c0_i32, %c0_i32_0 : i32, i32
  }
  func.func @transform_4(%arg0: i32) -> (i32, i32) {
    %c0_i32 = arith.constant 0 : i32
    %c0_i32_0 = arith.constant 0 : i32
    %c0_i32_1 = arith.constant 0 : i32
    return %c0_i32, %c0_i32_0 : i32, i32
  }
  func.func @transform_5(%arg0: i32) -> (i32, i32) {
    %c0_i32 = arith.constant 0 : i32
    %c0_i32_0 = arith.constant 0 : i32
    %c0_i32_1 = arith.constant 0 : i32
    return %c0_i32, %c0_i32_0 : i32, i32
  }
  func.func @transform_6(%arg0: i32) -> (i32, i32) {
    %c0_i32 = arith.constant 0 : i32
    %c0_i32_0 = arith.constant 0 : i32
    %c0_i32_1 = arith.constant 0 : i32
    return %c0_i32, %c0_i32_0 : i32, i32
  }
  func.func @transform_7(%arg0: i32) -> (i32, i32) {
    %c0_i32 = arith.constant 0 : i32
    %c0_i32_0 = arith.constant 0 : i32
    return %arg0, %c0_i32 : i32, i32
  }
}

</mosaic_0001>

<bundles_post_ra>
// kernel: tpu_custom_call.1
= control target key start
LH: loop header
LB: loop body
LE: loop exit
PB: predicated region body
PF: predicated region fallthrough
CT: control target
= control target key end

     0   :  { %12 = vsyncpa [#allocation3], 0  ;;  %s7341_s0 = inlined_call_operand.vmem [shape: f32[16,128], index: 0, kind: input, shape index: {}]   ;;  %s7342_s1 = inlined_call_operand.vmem [shape: f32[16,128], index: 1, kind: input, shape index: {}]   ;;  %s7343_s2 = inlined_call_operand.vmem [shape: bf16[16,128,49], index: 2, kind: input, shape index: {}]   ;;  %s7344_s3 = inlined_call_operand.vmem [shape: f32[128,128], index: 3, kind: input, shape index: {}]   ;;  %s7345_s4 = inlined_call_operand.vmem [shape: f32[1,128], index: 4, kind: input, shape index: {}]   ;;  %s7346_s5 = inlined_call_operand.vmem [shape: f32[128,256], index: 5, kind: input, shape index: {}]   ;;  %s7347_s6 = inlined_call_operand.vmem [shape: f32[1,128], index: 6, kind: input, shape index: {}]   ;;  %s7348_s7 = inlined_call_operand.hbm [shape: f32[16,128], index: 7, kind: output, shape index: {}]  }
   0x1   :  { %14 = vsyncpa [#allocation3 + $0x1], 0  ;;  %s4385_s24 = smov 0   ;;  %s4387_s25 = smov 0  }
   0x2   :  { %s4389_s26 = smov 0   ;;  %s4391_s27 = smov 0  }
   0x3 LB: > { %s4406_s28 = sadd.s32 4294967295, %s4339_s27   ;;  %s3829_s29 = sadd.s32 4294967294, %s4339_s27   ;;  %s4339_s27 = sphi %s4391_s27, %s7989_s27   ;;  %s4335_s26 = sphi %s4389_s26, %s7988_s26   ;;  %s4331_s25 = sphi %s4387_s25, %s7987_s25   ;;  %s4327_s24 = sphi %s4385_s24, %s7986_s24  }
   0x4   : > { %s4410_s30 = sadd.s32 1, %s4339_s27   ;;  %s189_s8 = sadd.s32 1, %s4335_s26 }
   0x5   : > { %s186_s9 = ssub.s32 %s4339_s27, %s4410_s30  ;;  %p199_p0 = scmp.ne.s32.totalorder %s4335_s26, %s4331_s25 }
   0x6   : > { %p187_p1 = scmp.eq.s32.totalorder %s186_s9, 0  ;;  %p200_p2 = scmp.eq.s32.totalorder %s4406_s28, 1 }
   0x7   : > { %p205_p3 = scmp.ne.s32.totalorder %s4331_s25, %s4327_s24  ;;  %p206_p4 = scmp.eq.s32.totalorder %s3829_s29, 1 }
   0x8   : > { %s4421_s10 = scalar_select %p187_p1, %s4335_s26, %s189_s8  }
   0x9   : > { %p4423_p5 = por %p200_p2, %p199_p0  ;;  %p4427_p6 = por %p206_p4, %p205_p3 }
   0xa   : > { %p3832_p7 = scmp.ge.s32.totalorder %s4339_s27, 1  ;;  %p260_p8 = scmp.lt.s32.totalorder %s4339_s27, 3 }
   0xc   : > { %p261_p9 = pnand %p3832_p7, %p260_p8 }
   0xe   : > { %264 = sbr.rel (%p261_p9) target bundleno = 1628 (0x65c), region = 48 }
  0x13   : > { %v578_v0 = vld [vmem:[%s7346_s5 + $0xf8] sm:$0xff]  ;;  %v577_v2 = vld [vmem:[%s7346_s5 + $0xf0] sm:$0xff]  ;;  %v4341_v3 = vmov 0.0   ;;  %v576_v4 = vld [vmem:[%s7346_s5 + $0xe8] sm:$0xff]  ;;  %p301_p10 = scmp.lt.s32.totalorder %s4406_s28, 1  ;;  %vm4342_vm0 = vmmov 0   ;;  %v7350_v53 = vlaneseq }
  0x14   : > { %v461_v1 = vld [vmem:[%s7344_s3 + $0x78] sm:$0xff]  ;;  %4182 = vmatprep.subr.mxu0 %v4341_v3  ;;  %579 = vmatprep.subr.mxu1 %v578_v0  ;;  %v460_v5 = vld [vmem:[%s7344_s3 + $0x70] sm:$0xff]  ;;  %v575_v6 = vld [vmem:[%s7346_s5 + $0xe0] sm:$0xff]  ;;  %s3836_s29 = sshll.u32 %s4406_s28, 3  ;;  %vm1444_vm1 = vcmask 400384   ;;  %vm1749_vm2 = vcmask 1041409  }
  0x15   : > { %4183 = vmatpush3.msra.mxu0 %v461_v1  ;;  %580 = vmatpush1.msra.mxu1 %v577_v2  ;;  %v574_v7 = vld [vmem:[%s7346_s5 + $0xd8] sm:$0xff]  ;;  %v459_v8 = vld [vmem:[%s7344_s3 + $0x68] sm:$0xff]  ;;  %v573_v9 = vld [vmem:[%s7346_s5 + $0xd0] sm:$0xff]  ;;  %s4536_s17 = scalar_select %p301_p10, %s4406_s28, 1  ;;  %v4615_v55 = vshrl.u32 %v7350_v53, 7  ;;  %vm7453_vm3 = vcmask 1042434  }
  0x16   : > { %4184 = vmatprep.subr.mxu0 %v4341_v3  ;;  %581 = vmatprep.subr.mxu1 %v576_v4  ;;  %v572_v10 = vld [vmem:[%s7346_s5 + $0xc8] sm:$0xff]  ;;  %v458_v11 = vld [vmem:[%s7344_s3 + $0x60] sm:$0xff]  ;;  %v570_v13 = vld [vmem:[%s7346_s5 + $0xb8] sm:$0xff]  ;;  %p310_p11 = scmp.lt.s32.totalorder %s3836_s29, 15  ;;  %vm7452_vm4 = vcmask 1043459   ;;  %vm7451_vm5 = vcmask 1044484  }
  0x17   : > { %4185 = vmatpush3.msra.mxu0 %v460_v5  ;;  %582 = vmatpush1.msra.mxu1 %v575_v6  ;;  %v571_v12 = vld [vmem:[%s7346_s5 + $0xc0] sm:$0xff]  ;;  %v457_v14 = vld [vmem:[%s7344_s3 + $0x58] sm:$0xff]  ;;  %v569_v15 = vld [vmem:[%s7346_s5 + $0xb0] sm:$0xff]  ;;  %s3834_s16 = sshll.u32 %s4536_s17, 3  ;;  %7457 = vst [vmem:[#allocation5_spill] sm:$0xff] %v4615_v55  ;;  %v4618_v61 = vsub.s32 0, %v4615_v55 }
  0x18   : > { %4186 = vmatprep.subr.mxu0 %v4341_v3  ;;  %583 = vmatprep.subr.mxu1 %v574_v7  ;;  %v568_v16 = vld [vmem:[%s7346_s5 + $0xa8] sm:$0xff]  ;;  %v456_v17 = vld [vmem:[%s7344_s3 + $0x50] sm:$0xff]  ;;  %v567_v18 = vld [vmem:[%s7346_s5 + $0xa0] sm:$0xff]  ;;  %s308_s13 = scalar_lea.vmem %s7342_s1, %s3834_s16  ;;  %s304_s20 = scalar_lea.vmem %s7341_s0, %s3834_s16  ;;  %v7355_v1 = vsub.s32 1, %v4615_v55  ;;  %v7353_v5 = vsub.s32 3, %v4615_v55  ;;  %v7358_v53 = vsub.s32 7, %v4615_v55 }
  0x19   : > { %4187 = vmatpush3.msra.mxu0 %v459_v8  ;;  %584 = vmatpush1.msra.mxu1 %v573_v9  ;;  %v566_v19 = vld [vmem:[%s7346_s5 + $0x98] sm:$0xff]  ;;  %v455_v20 = vld [vmem:[%s7344_s3 + $0x48] sm:$0xff]  ;;  %v565_v21 = vld [vmem:[%s7346_s5 + $0x90] sm:$0xff]  ;;  %7458 = vst [vmem:[#allocation6_spill] sm:$0xff] %v4618_v61  ;;  %s7991_s29 = smov (!%p310_p11, %s3836_s29), 15  ;;  %vm7450_vm6 = vcmask 1045509  }
  0x1a   : > { %4188 = vmatprep.subr.mxu0 %v4341_v3  ;;  %585 = vmatprep.subr.mxu1 %v572_v10  ;;  %v564_v22 = vld [vmem:[%s7346_s5 + $0x88] sm:$0xff]  ;;  %v454_v23 = vld [vmem:[%s7344_s3 + $0x40] sm:$0xff]  ;;  %v562_v25 = vld [vmem:[%s7346_s5 + $0x78] sm:$0xff]  ;;  %s3845_s8 = sshll.u32 %s7991_s29, 6  ;;  %vm7449_vm7 = vcmask 1046534   ;;  %vm7448_vm8 = vcmask 1047559  }
  0x1b   : > { %4189 = vmatpush3.msra.mxu0 %v458_v11  ;;  %586 = vmatpush1.msra.mxu1 %v571_v12  ;;  %v563_v24 = vld [vmem:[%s7346_s5 + $0x80] sm:$0xff]  ;;  %v453_v26 = vld [vmem:[%s7344_s3 + $0x38] sm:$0xff]  ;;  %v561_v27 = vld [vmem:[%s7346_s5 + $0x70] sm:$0xff]  ;;  %v7352_v11 = vsub.s32 4, %v4615_v55  ;;  %s4752_s15 = scalar_lea.vmem %s7343_s2, %s3845_s8  ;;  %vm3070_vm9 = vcmask 130112   ;;  %vm3077_vm10 = vcmask 195712  }
  0x1c   : > { %4190 = vmatprep.subr.mxu0 %v4341_v3  ;;  %587 = vmatprep.subr.mxu1 %v570_v13  ;;  %v560_v28 = vld [vmem:[%s7346_s5 + $0x68] sm:$0xff]  ;;  %v452_v29 = vld [vmem:[%s7344_s3 + $0x30] sm:$0xff]  ;;  %v559_v30 = vld [vmem:[%s7346_s5 + $0x60] sm:$0xff]  ;;  %vm3084_vm11 = vcmask 261312   ;;  %vm3091_vm12 = vcmask 326912   ;;  %vm3098_vm13 = vcmask 392512  }
  0x1d   : > { %4191 = vmatpush3.msra.mxu0 %v457_v14  ;;  %588 = vmatpush1.msra.mxu1 %v569_v15  ;;  %v558_v31 = vld [vmem:[%s7346_s5 + $0x58] sm:$0xff]  ;;  %v451_v32 = vld [vmem:[%s7344_s3 + $0x28] sm:$0xff]  ;;  %v557_v33 = vld [vmem:[%s7346_s5 + $0x50] sm:$0xff]  ;;  %vm3105_vm14 = vcmask 458112   ;;  %vm3112_vm15 = vcmask 523712   ;;  %s298_s18 = sand.u32 1, %s4331_s25  }
  0x1e   : > { %4192 = vmatprep.subr.mxu0 %v4341_v3  ;;  %589 = vmatprep.subr.mxu1 %v568_v16  ;;  %v556_v34 = vld [vmem:[%s7346_s5 + $0x48] sm:$0xff]  ;;  %v450_v35 = vld [vmem:[%s7344_s3 + $0x20] sm:$0xff]  ;;  %v554_v37 = vld [vmem:[%s7346_s5 + $0x38] sm:$0xff]  ;;  %s3833_s19 = sshll.u32 %s298_s18, 3  ;;  %s4344_s29 = smov [#allocation2]  }
  0x1f   : > { %4193 = vmatpush3.msra.mxu0 %v456_v17  ;;  %590 = vmatpush1.msra.mxu1 %v567_v18  ;;  %v555_v36 = vld [vmem:[%s7346_s5 + $0x40] sm:$0xff]  ;;  %v449_v38 = vld [vmem:[%s7344_s3 + $0x18] sm:$0xff]  ;;  %v553_v39 = vld [vmem:[%s7346_s5 + $0x30] sm:$0xff]  ;;  %s300_s21 = scalar_lea.vmem [#allocation2], %s3833_s19  ;;  %s4283_s8 = sshll.u32 %s4344_s29, 4  ;;  %s4284_s8 = int_to_ptr.vmem [resolvable:$false] %s4283_s8 }
  0x20   : > { %4194 = vmatprep.subr.mxu0 %v4341_v3  ;;  %591 = vmatprep.subr.mxu1 %v566_v19  ;;  %v552_v40 = vld [vmem:[%s7346_s5 + $0x28] sm:$0xff]  ;;  %v448_v41 = vld [vmem:[%s7344_s3 + $0x10] sm:$0xff]  ;;  %v551_v42 = vld [vmem:[%s7346_s5 + $0x20] sm:$0xff]  ;;  %s3746_s22 = sshll.u32 %s300_s21, 4  ;;  %s4285_s9 = scalar_lea.vmem %s4284_s8, 256  ;;  %s3747_s22 = int_to_ptr.vmem [resolvable:$true] %s3746_s22 }
  0x21   : > { %4195 = vmatpush3.msra.mxu0 %v455_v20  ;;  %592 = vmatpush1.msra.mxu1 %v565_v21  ;;  %v550_v43 = vld [vmem:[%s7346_s5 + $0x18] sm:$0xff]  ;;  %v447_v44 = vld [vmem:[%s7344_s3 + $0x8] sm:$0xff]  ;;  %v549_v45 = vld [vmem:[%s7346_s5 + $0x10] sm:$0xff]  ;;  %s4279_s17 = scalar_lea.vmem %s3747_s22, 128  ;;  %p4286_p1 = scmp.lt.s32.totalorder %s3747_s22, %s4284_s8 }
  0x22   : > { %4196 = vmatprep.subr.mxu0 %v4341_v3  ;;  %593 = vmatprep.subr.mxu1 %v564_v22  ;;  %v317_v46 = vld [vmem:[%s308_s13] sm:$0xff]  ;;  %v548_v48 = vld [vmem:[%s7346_s5 + $0x8] sm:$0xff]  ;;  %p4280_p12 = scmp.ne.s32.totalorder %s3747_s22, %s4279_s17  ;;  %p4287_p2 = scmp.lt.s32.totalorder %s4285_s9, %s4279_s17 }
  0x23   : > { %4197 = vmatpush3.msra.mxu0 %v454_v23  ;;  %594 = vmatpush1.msra.mxu1 %v563_v24  ;;  %v3840_v47 = vld [vmem:[%s7347_s6] ss:$0 sm:$0xff] }
  0x24   : > { %4198 = vmatprep.subr.mxu0 %v4341_v3  ;;  %595 = vmatprep.subr.mxu1 %v562_v25  ;;  %v446_v49 = vld [vmem:[%s7344_s3] sm:$0xff]  ;;  %v546_v51 = vmul.f32 %v3840_v47, %v317_v46  ;;  %v7349_v47 = vsub.s32 6, %v4615_v55  ;;  %p4281_p13 = pnand %p4280_p12, %p4423_p5  ;;  %p4288_p3 = por %p4287_p2, %p4286_p1 }
  0x25   : > { %4199 = vmatpush3.msra.mxu0 %v453_v26  ;;  %596 = vmatpush1.msra.mxu1 %v561_v27  ;;  %v547_v50 = vld [vmem:[%s7346_s5] sm:$0xff] }
  0x26   : > { %4200 = vmatprep.subr.mxu0 %v4341_v3  ;;  %597 = vmatprep.subr.mxu1 %v560_v28  ;;  %v316_v52 = vld [vmem:[%s304_s20] sm:$0xff]  ;;  %s3842_s20 = sshll.u32 %s4406_s28, 7  ;;  %s3733_s28 = scalar_lea.sflag [#allocation3], %s298_s18 }
  0x27   : > { %4201 = vmatpush3.msra.mxu0 %v452_v29  ;;  %598 = vmatpush1.msra.mxu1 %v559_v30  ;;  %v3839_v54 = vld [vmem:[%s7345_s4] ss:$0 sm:$0xff]  ;;  %v7351_v29 = vsub.s32 5, %v4615_v55  ;;  %s7303_s16 = scalar_lea.hbm %s7348_s7, %s3842_s20  ;;  %p4282_p0 = pneg %p4281_p13 }
  0x28   : > { %4202 = vmatprep.subr.mxu0 %v4341_v3  ;;  %599 = vmatprep.subr.mxu1 %v558_v31 }
  0x29   : > { %4203 = vmatpush3.msra.mxu0 %v451_v32  ;;  %600 = vmatpush1.msra.mxu1 %v557_v33  ;;  %p4289_p4 = pnand %p4288_p3, %p4282_p0 }
  0x2a   : > { %4204 = vmatprep.subr.mxu0 %v4341_v3  ;;  %601 = vmatprep.subr.mxu1 %v556_v34 }
  0x2b   : > { %4205 = vmatpush3.msra.mxu0 %v450_v35  ;;  %602 = vmatpush1.msra.mxu1 %v555_v36 }
  0x2c   : > { %4206 = vmatprep.subr.mxu0 %v4341_v3  ;;  %603 = vmatprep.subr.mxu1 %v554_v37 }
  0x2d   : > { %4207 = vmatpush3.msra.mxu0 %v449_v38  ;;  %604 = vmatpush1.msra.mxu1 %v553_v39 }
  0x2e   : > { %4208 = vmatprep.subr.mxu0 %v4341_v3  ;;  %605 = vmatprep.subr.mxu1 %v552_v40 }
  0x2f   : > { %4209 = vmatpush3.msra.mxu0 %v448_v41  ;;  %606 = vmatpush1.msra.mxu1 %v551_v42 }
  0x30   : > { %4210 = vmatprep.subr.mxu0 %v4341_v3  ;;  %607 = vmatprep.subr.mxu1 %v550_v43 }
  0x31   : > { %4211 = vmatpush3.msra.mxu0 %v447_v44  ;;  %608 = vmatpush1.msra.mxu1 %v549_v45 }
  0x32   : > { %4212 = vmatprep.subr.mxu0 %v4341_v3  ;;  %609 = vmatprep.subr.mxu1 %v548_v48 }
  0x33   : > { %4213 = vmatpush3.msra.mxu0 %v446_v49  ;;  %4214 = vmatprep.mubr.msk.f32.mxu0 %vm4342_vm0, %v4341_v3  ;;  %vm3119_vm0 = vcmask 589312  }
  0x34   : > { %610 = vmatpush1.msra.mxu1 %v547_v50  ;;  %643 = vmatprep.mubr.f32.mxu1 %v4341_v3  ;;  %v7354_v3 = vsub.s32 2, %v4615_v55 }
  0x35   : > { %4215 = vmatmul.mubr.f32.vlgmr.msra.gmra.mxu0 %v316_v52  ;;  %644 = vmatmul.mubr.f32.vlgmr.msra.gmra.mxu1 %v546_v51 }
  0xf5   : > { %v535_v56 = vpop.f32.mrf.mxu0  ;;  %v645_v57 = vpop.f32.mrf.mxu1 }
  0xf6   : > { %v536_v58 = vadd.f32 %v3839_v54, %v535_v56 }
  0xf7   : > { %v4216_v59 = vpop.f32.mrf.mxu0  ;;  %v647_v62 = vpop.f32.mrf.mxu1 }
  0xf8   : > { %v650_v60 = vmul.f32 %v645_v57, %v536_v58 }
  0xfa   : > { %v4620_v63 = vadd.f32 %v650_v60, %v647_v62 }
  0xfc   : > { %v655_v0 = vrot.slane %v4620_v63, %v4618_v61  ;;  %v722_v2 = vrot.slane %v4620_v63, %v7355_v1  ;;  %v789_v4 = vrot.slane %v4620_v63, %v7354_v3  ;;  %v856_v6 = vrot.slane %v4620_v63, %v7353_v5  ;;  %v4769_v3 = vld [vmem:[%s4752_s15 + $0x8] sm:$0xff]  }
  0xfd   : > { %v923_v14 = vrot.slane %v4620_v63, %v7352_v11  ;;  %v990_v32 = vrot.slane %v4620_v63, %v7351_v29  ;;  %v1057_v50 = vrot.slane %v4620_v63, %v7349_v47  ;;  %7464 = vst [vmem:[#allocation12_spill] sm:$0xff] %v4769_v3  ;;  %v4777_v61 = vrot.slane %v4620_v63, %v7358_v53  ;;  %v4795_v53 = vld [vmem:[%s4752_s15 + $0x48] sm:$0xff]  }
  0xfe   : > { %665 = vbcast.lane.b32.xlu1 %v655_v0, 272  ;;  %657 = vbcast.lane.b32.xlu0 %v655_v0, 256  ;;  %7469 = vst [vmem:[#allocation16_spill] sm:$0xff] %v4795_v53 }
 0x102   : > { %669 = vbcast.lane.b32.xlu1 %v655_v0, 280  ;;  %661 = vbcast.lane.b32.xlu0 %v655_v0, 264 }
 0x106   : > { %677 = vbcast.lane.b32.xlu1 %v655_v0, 296  ;;  %673 = vbcast.lane.b32.xlu0 %v655_v0, 288 }
 0x10a   : > { %685 = vbcast.lane.b32.xlu1 %v655_v0, 312  ;;  %681 = vbcast.lane.b32.xlu0 %v655_v0, 304 }
 0x10e   : > { %693 = vbcast.lane.b32.xlu1 %v655_v0, 328  ;;  %689 = vbcast.lane.b32.xlu0 %v655_v0, 320 }
 0x112   : > { %701 = vbcast.lane.b32.xlu1 %v655_v0, 344  ;;  %697 = vbcast.lane.b32.xlu0 %v655_v0, 336 }
 0x116   : > { %709 = vbcast.lane.b32.xlu1 %v655_v0, 360  ;;  %705 = vbcast.lane.b32.xlu0 %v655_v0, 352 }
 0x11a   : > { %717 = vbcast.lane.b32.xlu1 %v655_v0, 376  ;;  %713 = vbcast.lane.b32.xlu0 %v655_v0, 368 }
 0x11e   : > { %728 = vbcast.lane.b32.xlu1 %v722_v2, 264  ;;  %724 = vbcast.lane.b32.xlu0 %v722_v2, 256 }
 0x122   : > { %736 = vbcast.lane.b32.xlu1 %v722_v2, 280  ;;  %732 = vbcast.lane.b32.xlu0 %v722_v2, 272 }
 0x126   : > { %744 = vbcast.lane.b32.xlu1 %v722_v2, 296  ;;  %740 = vbcast.lane.b32.xlu0 %v722_v2, 288 }
 0x12a   : > { %752 = vbcast.lane.b32.xlu1 %v722_v2, 312  ;;  %748 = vbcast.lane.b32.xlu0 %v722_v2, 304 }
 0x12e   : > { %760 = vbcast.lane.b32.xlu1 %v722_v2, 328  ;;  %756 = vbcast.lane.b32.xlu0 %v722_v2, 320 }
 0x132   : > { %768 = vbcast.lane.b32.xlu1 %v722_v2, 344  ;;  %764 = vbcast.lane.b32.xlu0 %v722_v2, 336 }
 0x136   : > { %776 = vbcast.lane.b32.xlu1 %v722_v2, 360  ;;  %772 = vbcast.lane.b32.xlu0 %v722_v2, 352 }
 0x13a   : > { %784 = vbcast.lane.b32.xlu1 %v722_v2, 376  ;;  %780 = vbcast.lane.b32.xlu0 %v722_v2, 368 }
 0x13e   : > { %795 = vbcast.lane.b32.xlu1 %v789_v4, 264  ;;  %791 = vbcast.lane.b32.xlu0 %v789_v4, 256 }
 0x142   : > { %803 = vbcast.lane.b32.xlu1 %v789_v4, 280  ;;  %799 = vbcast.lane.b32.xlu0 %v789_v4, 272 }
 0x146   : > { %811 = vbcast.lane.b32.xlu1 %v789_v4, 296  ;;  %807 = vbcast.lane.b32.xlu0 %v789_v4, 288 }
 0x14a   : > { %819 = vbcast.lane.b32.xlu1 %v789_v4, 312  ;;  %815 = vbcast.lane.b32.xlu0 %v789_v4, 304 }
 0x14e   : > { %827 = vbcast.lane.b32.xlu1 %v789_v4, 328  ;;  %823 = vbcast.lane.b32.xlu0 %v789_v4, 320 }
 0x152   : > { %835 = vbcast.lane.b32.xlu1 %v789_v4, 344  ;;  %831 = vbcast.lane.b32.xlu0 %v789_v4, 336 }
 0x156   : > { %843 = vbcast.lane.b32.xlu1 %v789_v4, 360  ;;  %839 = vbcast.lane.b32.xlu0 %v789_v4, 352 }
 0x15a   : > { %851 = vbcast.lane.b32.xlu1 %v789_v4, 376  ;;  %847 = vbcast.lane.b32.xlu0 %v789_v4, 368 }
 0x15e   : > { %862 = vbcast.lane.b32.xlu1 %v856_v6, 264  ;;  %858 = vbcast.lane.b32.xlu0 %v856_v6, 256 }
 0x162   : > { %870 = vbcast.lane.b32.xlu1 %v856_v6, 280  ;;  %866 = vbcast.lane.b32.xlu0 %v856_v6, 272 }
 0x166   : > { %878 = vbcast.lane.b32.xlu1 %v856_v6, 296  ;;  %874 = vbcast.lane.b32.xlu0 %v856_v6, 288 }
 0x16a   : > { %886 = vbcast.lane.b32.xlu1 %v856_v6, 312  ;;  %882 = vbcast.lane.b32.xlu0 %v856_v6, 304 }
 0x16e   : > { %894 = vbcast.lane.b32.xlu1 %v856_v6, 328  ;;  %890 = vbcast.lane.b32.xlu0 %v856_v6, 320 }
 0x170   : > { %v4636_v7 = vpop.permute.xlu1 %665  ;;  %v4638_v8 = vpop.permute.xlu0 %657 }
 0x172   : > { %902 = vbcast.lane.b32.xlu1 %v856_v6, 344  ;;  %898 = vbcast.lane.b32.xlu0 %v856_v6, 336 }
 0x174   : > { %v4640_v9 = vpop.permute.xlu1 %669  ;;  %v4642_v10 = vpop.permute.xlu0 %661 }
 0x176   : > { %910 = vbcast.lane.b32.xlu1 %v856_v6, 360  ;;  %906 = vbcast.lane.b32.xlu0 %v856_v6, 352 }
 0x178   : > { %v4645_v12 = vpop.permute.xlu1 %677  ;;  %v4647_v13 = vpop.permute.xlu0 %673 }
 0x17a   : > { %918 = vbcast.lane.b32.xlu1 %v856_v6, 376  ;;  %914 = vbcast.lane.b32.xlu0 %v856_v6, 368 }
 0x17c   : > { %v4652_v15 = vpop.permute.xlu1 %685  ;;  %v4654_v16 = vpop.permute.xlu0 %681 }
 0x17e   : > { %929 = vbcast.lane.b32.xlu1 %v923_v14, 264  ;;  %925 = vbcast.lane.b32.xlu0 %v923_v14, 256 }
 0x180   : > { %v4656_v17 = vpop.permute.xlu1 %693  ;;  %v4658_v18 = vpop.permute.xlu0 %689 }
 0x182   : > { %937 = vbcast.lane.b32.xlu1 %v923_v14, 280  ;;  %933 = vbcast.lane.b32.xlu0 %v923_v14, 272 }
 0x184   : > { %v4660_v19 = vpop.permute.xlu1 %701  ;;  %v4662_v20 = vpop.permute.xlu0 %697 }
 0x186   : > { %945 = vbcast.lane.b32.xlu1 %v923_v14, 296  ;;  %941 = vbcast.lane.b32.xlu0 %v923_v14, 288 }
 0x188   : > { %v4664_v21 = vpop.permute.xlu1 %709  ;;  %v4666_v22 = vpop.permute.xlu0 %705 }
 0x18a   : > { %953 = vbcast.lane.b32.xlu1 %v923_v14, 312  ;;  %949 = vbcast.lane.b32.xlu0 %v923_v14, 304 }
 0x18c   : > { %v4668_v23 = vpop.permute.xlu1 %717  ;;  %v4670_v24 = vpop.permute.xlu0 %713 }
 0x18e   : > { %961 = vbcast.lane.b32.xlu1 %v923_v14, 328  ;;  %957 = vbcast.lane.b32.xlu0 %v923_v14, 320 }
 0x190   : > { %v4672_v25 = vpop.permute.xlu1 %728  ;;  %v4674_v26 = vpop.permute.xlu0 %724 }
 0x192   : > { %969 = vbcast.lane.b32.xlu1 %v923_v14, 344  ;;  %965 = vbcast.lane.b32.xlu0 %v923_v14, 336 }
 0x194   : > { %v4676_v27 = vpop.permute.xlu1 %736  ;;  %v4678_v28 = vpop.permute.xlu0 %732 }
 0x196   : > { %977 = vbcast.lane.b32.xlu1 %v923_v14, 360  ;;  %973 = vbcast.lane.b32.xlu0 %v923_v14, 352 }
 0x198   : > { %v4681_v30 = vpop.permute.xlu1 %744  ;;  %v4683_v31 = vpop.permute.xlu0 %740 }
 0x19a   : > { %985 = vbcast.lane.b32.xlu1 %v923_v14, 376  ;;  %981 = vbcast.lane.b32.xlu0 %v923_v14, 368 }
 0x19c   : > { %v4688_v33 = vpop.permute.xlu1 %752  ;;  %v4690_v34 = vpop.permute.xlu0 %748 }
 0x19e   : > { %996 = vbcast.lane.b32.xlu1 %v990_v32, 264  ;;  %992 = vbcast.lane.b32.xlu0 %v990_v32, 256 }
 0x1a0   : > { %v4692_v35 = vpop.permute.xlu1 %760  ;;  %v4694_v36 = vpop.permute.xlu0 %756 }
 0x1a2   : > { %1004 = vbcast.lane.b32.xlu1 %v990_v32, 280  ;;  %1000 = vbcast.lane.b32.xlu0 %v990_v32, 272 }
 0x1a4   : > { %v4696_v37 = vpop.permute.xlu1 %768  ;;  %v4698_v38 = vpop.permute.xlu0 %764 }
 0x1a6   : > { %1012 = vbcast.lane.b32.xlu1 %v990_v32, 296  ;;  %1008 = vbcast.lane.b32.xlu0 %v990_v32, 288 }
 0x1a8   : > { %v4700_v39 = vpop.permute.xlu1 %776  ;;  %v4702_v40 = vpop.permute.xlu0 %772 }
 0x1aa   : > { %1020 = vbcast.lane.b32.xlu1 %v990_v32, 312  ;;  %1016 = vbcast.lane.b32.xlu0 %v990_v32, 304 }
 0x1ac   : > { %v4704_v41 = vpop.permute.xlu1 %784  ;;  %v4706_v42 = vpop.permute.xlu0 %780 }
 0x1ae   : > { %1028 = vbcast.lane.b32.xlu1 %v990_v32, 328  ;;  %1024 = vbcast.lane.b32.xlu0 %v990_v32, 320 }
 0x1b0   : > { %v4708_v43 = vpop.permute.xlu1 %795  ;;  %v4710_v44 = vpop.permute.xlu0 %791 }
 0x1b2   : > { %1036 = vbcast.lane.b32.xlu1 %v990_v32, 344  ;;  %1032 = vbcast.lane.b32.xlu0 %v990_v32, 336 }
 0x1b4   : > { %v4712_v45 = vpop.permute.xlu1 %803  ;;  %v4714_v46 = vpop.permute.xlu0 %799 }
 0x1b6   : > { %1044 = vbcast.lane.b32.xlu1 %v990_v32, 360  ;;  %1040 = vbcast.lane.b32.xlu0 %v990_v32, 352 }
 0x1b8   : > { %v4717_v48 = vpop.permute.xlu1 %811  ;;  %v4719_v49 = vpop.permute.xlu0 %807 }
 0x1ba   : > { %1052 = vbcast.lane.b32.xlu1 %v990_v32, 376  ;;  %1048 = vbcast.lane.b32.xlu0 %v990_v32, 368  ;;  %v4759_v32 = vld [vmem:[%s4752_s15] sm:$0xff]  }
 0x1bb   : > { %7463 = vst [vmem:[#allocation11_spill] sm:$0xff] %v4759_v32  ;;  %v7359_v47 = vunpack.c.h.bf16 %v4759_v32 }
 0x1bc   : > { %v4724_v51 = vpop.permute.xlu1 %819  ;;  %v4726_v52 = vpop.permute.xlu0 %815 }
 0x1bd   : > { %v1317_v1 = vmul.f32 %v7359_v47, %v4642_v10 }
 0x1be   : > { %1063 = vbcast.lane.b32.xlu1 %v1057_v50, 264  ;;  %1059 = vbcast.lane.b32.xlu0 %v1057_v50, 256 }
 0x1bf   : > { %v1446_v63 = vsel %vm1444_vm1, %v1317_v1, 0.0 }
 0x1c0   : > { %v4728_v54 = vpop.permute.xlu1 %827  ;;  %v4730_v56 = vpop.permute.xlu0 %823 }
 0x1c2   : > { %1071 = vbcast.lane.b32.xlu1 %v1057_v50, 280  ;;  %1067 = vbcast.lane.b32.xlu0 %v1057_v50, 272 }
 0x1c4   : > { %v4732_v57 = vpop.permute.xlu1 %835  ;;  %v4734_v58 = vpop.permute.xlu0 %831 }
 0x1c6   : > { %1079 = vbcast.lane.b32.xlu1 %v1057_v50, 296  ;;  %1075 = vbcast.lane.b32.xlu0 %v1057_v50, 288 }
 0x1c8   : > { %v4737_v59 = vpop.permute.xlu1 %843  ;;  %v4739_v60 = vpop.permute.xlu0 %839 }
 0x1c9   : > { %7459 = vst [vmem:[#allocation7_spill] sm:$0xff] %v4737_v59  ;;  %7460 = vst [vmem:[#allocation8_spill] sm:$0xff] %v4739_v60  ;;  %v7467_v59 = vunpack.c.l.bf16 %v4759_v32  ;;  %v4788_v60 = vld [vmem:[%s4752_s15 + $0x40] sm:$0xff]   ;;  %v4806_v32 = vld [vmem:[%s4752_s15 + $0x10] sm:$0xff]  }
 0x1ca   : > { %1087 = vbcast.lane.b32.xlu1 %v1057_v50, 312  ;;  %1083 = vbcast.lane.b32.xlu0 %v1057_v50, 304  ;;  %7468 = vst [vmem:[#allocation15_spill] sm:$0xff] %v4788_v60  ;;  %7473 = vst [vmem:[#allocation19_spill] sm:$0xff] %v4806_v32 }
 0x1cc   : > { %v4741_v62 = vpop.permute.xlu1 %851  ;;  %v4743_v0 = vpop.permute.xlu0 %847 }
 0x1cd   : > { %7461 = vst [vmem:[#allocation9_spill] sm:$0xff] %v4741_v62  ;;  %7462 = vst [vmem:[#allocation10_spill] sm:$0xff] %v4743_v0 }
 0x1ce   : > { %1095 = vbcast.lane.b32.xlu1 %v1057_v50, 328  ;;  %1091 = vbcast.lane.b32.xlu0 %v1057_v50, 320 }
 0x1d0   : > { %v4745_v2 = vpop.permute.xlu1 %862  ;;  %v4747_v4 = vpop.permute.xlu0 %858 }
 0x1d2   : > { %1103 = vbcast.lane.b32.xlu1 %v1057_v50, 344  ;;  %1099 = vbcast.lane.b32.xlu0 %v1057_v50, 336 }
 0x1d4   : > { %v4754_v6 = vpop.permute.xlu1 %870  ;;  %v4756_v14 = vpop.permute.xlu0 %866 }
 0x1d6   : > { %1111 = vbcast.lane.b32.xlu1 %v1057_v50, 360  ;;  %1107 = vbcast.lane.b32.xlu0 %v1057_v50, 352 }
 0x1d8   : > { %v4763_v29 = vpop.permute.xlu1 %878  ;;  %v4765_v11 = vpop.permute.xlu0 %874 }
 0x1da   : > { %1119 = vbcast.lane.b32.xlu1 %v1057_v50, 376  ;;  %1115 = vbcast.lane.b32.xlu0 %v1057_v50, 368  ;;  %v1316_v50 = vmul.f32 %v7467_v59, %v4638_v8  ;;  %v7472_v8 = vunpack.c.l.bf16 %v4769_v3 }
 0x1dc   : > { %v4779_v0 = vpop.permute.xlu1 %886  ;;  %v4781_v62 = vpop.permute.xlu0 %882  ;;  %v1318_v59 = vmul.f32 %v7472_v8, %v4636_v7  ;;  %v1445_v55 = vsel %vm1444_vm1, %v1316_v50, 0.0  ;;  %v7476_v8 = vunpack.c.h.bf16 %v4769_v3  ;;  %v4836_v3 = vld [vmem:[%s4752_s15 + $0x50] sm:$0xff]  }
 0x1dd   : > { %7465 = vst [vmem:[#allocation13_spill] sm:$0xff] %v4779_v0  ;;  %7466 = vst [vmem:[#allocation14_spill] sm:$0xff] %v4781_v62  ;;  %v7366_v0 = vunpack.c.h.bf16 %v4788_v60  ;;  %v1447_v62 = vadd.f32 %v1446_v63, %v1445_v55  ;;  %v7477_v63 = vunpack.c.l.bf16 %v4788_v60 }
 0x1de   : > { %1130 = vbcast.lane.b32.xlu1 %v4777_v61, 264  ;;  %1126 = vbcast.lane.b32.xlu0 %v4777_v61, 256  ;;  %v1448_v50 = vsel %vm1444_vm1, %v1318_v59, 0.0  ;;  %v1319_v1 = vmul.f32 %v7476_v8, %v4640_v9  ;;  %v7478_v59 = vunpack.c.l.bf16 %v4795_v53  ;;  %7479 = vst [vmem:[#allocation22_spill] sm:$0xff] %v4836_v3  ;;  %v4849_v9 = vld [vmem:[%s4752_s15 + $0x18] sm:$0xff]  }
 0x1df   : > { %v1333_v55 = vmul.f32 %v7366_v0, %v4672_v25  ;;  %v1332_v10 = vmul.f32 %v7477_v63, %v4674_v26  ;;  %7483 = vst [vmem:[#allocation25_spill] sm:$0xff] %v4849_v9 }
 0x1e0   : > { %v4797_v47 = vpop.permute.xlu1 %894  ;;  %v4799_v5 = vpop.permute.xlu0 %890  ;;  %v1450_v26 = vsel %vm1444_vm1, %v1319_v1, 0.0 }
 0x1e1   : > { %7470 = vst [vmem:[#allocation17_spill] sm:$0xff] %v4797_v47  ;;  %7471 = vst [vmem:[#allocation18_spill] sm:$0xff] %v4799_v5  ;;  %v1449_v47 = vadd.f32 %v1448_v50, %v1447_v62  ;;  %v7482_v62 = vunpack.c.l.bf16 %v4806_v32  ;;  %v1483_v63 = vsel %vm1444_vm1, %v1333_v55, 0.0 }
 0x1e2   : > { %1138 = vbcast.lane.b32.xlu1 %v4777_v61, 280  ;;  %1134 = vbcast.lane.b32.xlu0 %v4777_v61, 272 }
 0x1e3   : > { %v1320_v50 = vmul.f32 %v7482_v62, %v4647_v13  ;;  %v7487_v62 = vunpack.c.h.bf16 %v4795_v53  ;;  %v4908_v53 = vld [vmem:[%s4752_s15 + $0x28] sm:$0xff]  }
 0x1e4   : > { %v4814_v5 = vpop.permute.xlu1 %902  ;;  %v4816_v7 = vpop.permute.xlu0 %898  ;;  %7493 = vst [vmem:[#allocation30_spill] sm:$0xff] %v4908_v53 }
 0x1e5   : > { %7474 = vst [vmem:[#allocation20_spill] sm:$0xff] %v4814_v5  ;;  %7475 = vst [vmem:[#allocation21_spill] sm:$0xff] %v4816_v7  ;;  %v1334_v5 = vmul.f32 %v7478_v59, %v4678_v28  ;;  %v1482_v28 = vsel %vm1444_vm1, %v1332_v10, 0.0  ;;  %v1451_v59 = vadd.f32 %v1450_v26, %v1449_v47  ;;  %v7486_v10 = vunpack.c.h.bf16 %v4806_v32  ;;  %v4973_v7 = vld [vmem:[%s4752_s15 + $0x90] sm:$0xff]  }
 0x1e6   : > { %1146 = vbcast.lane.b32.xlu1 %v4777_v61, 296  ;;  %1142 = vbcast.lane.b32.xlu0 %v4777_v61, 288  ;;  %v1484_v60 = vadd.f32 %v1483_v63, %v1482_v28  ;;  %v1452_v55 = vsel %vm1444_vm1, %v1320_v50, 0.0  ;;  %v7488_v63 = vunpack.c.l.bf16 %v4836_v3  ;;  %v4874_v50 = vld [vmem:[%s4752_s15 + $0x58] sm:$0xff]   ;;  %7510 = vst [vmem:[#allocation43_spill] sm:$0xff] %v4973_v7 }
 0x1e7   : > { %v1485_v8 = vsel %vm1444_vm1, %v1334_v5, 0.0  ;;  %v1321_v47 = vmul.f32 %v7486_v10, %v4645_v12  ;;  %v1335_v5 = vmul.f32 %v7487_v62, %v4676_v27  ;;  %7489 = vst [vmem:[#allocation28_spill] sm:$0xff] %v4874_v50 }
 0x1e8   : > { %v4838_v25 = vpop.permute.xlu1 %910  ;;  %v4840_v0 = vpop.permute.xlu0 %906  ;;  %v1486_v1 = vadd.f32 %v1485_v8, %v1484_v60  ;;  %v1336_v28 = vmul.f32 %v7488_v63, %v4683_v31  ;;  %v7490_v60 = vunpack.c.l.bf16 %v4849_v9  ;;  %v4887_v31 = vld [vmem:[%s4752_s15 + $0x20] sm:$0xff]  }
 0x1e9   : > { %7480 = vst [vmem:[#allocation23_spill] sm:$0xff] %v4838_v25  ;;  %7481 = vst [vmem:[#allocation24_spill] sm:$0xff] %v4840_v0  ;;  %v1453_v0 = vadd.f32 %v1452_v55, %v1451_v59  ;;  %v1454_v27 = vsel %vm1444_vm1, %v1321_v47, 0.0  ;;  %v1487_v59 = vsel %vm1444_vm1, %v1335_v5, 0.0  ;;  %v7373_v55 = vunpack.c.h.bf16 %v4836_v3 }
 0x1ea   : > { %1154 = vbcast.lane.b32.xlu1 %v4777_v61, 312  ;;  %1150 = vbcast.lane.b32.xlu0 %v4777_v61, 304  ;;  %v1322_v8 = vmul.f32 %v7490_v60, %v4654_v16  ;;  %7491 = vst [vmem:[#allocation29_spill] sm:$0xff] %v4887_v31  ;;  %v1488_v63 = vadd.f32 %v1487_v59, %v1486_v1  ;;  %v1489_v47 = vsel %vm1444_vm1, %v1336_v28, 0.0  ;;  %v4915_v60 = vld [vmem:[%s4752_s15 + $0x30] sm:$0xff]  }
 0x1eb   : > { %v1455_v62 = vadd.f32 %v1454_v27, %v1453_v0  ;;  %v7492_v0 = vunpack.c.h.bf16 %v4849_v9  ;;  %v1337_v28 = vmul.f32 %v7373_v55, %v4681_v30  ;;  %7495 = vst [vmem:[#allocation31_spill] sm:$0xff] %v4915_v60  ;;  %v4918_v9 = vld [vmem:[%s4752_s15 + $0x60] sm:$0xff]   ;;  %v4929_v55 = vld [vmem:[%s4752_s15 + $0x38] sm:$0xff]  }
 0x1ec   : > { %v4855_v25 = vpop.permute.xlu1 %918  ;;  %v4857_v13 = vpop.permute.xlu0 %914  ;;  %v1456_v1 = vsel %vm1444_vm1, %v1322_v8, 0.0  ;;  %v1490_v12 = vadd.f32 %v1489_v47, %v1488_v63  ;;  %7496 = vst [vmem:[#allocation32_spill] sm:$0xff] %v4918_v9  ;;  %v7499_v47 = vunpack.c.l.bf16 %v4887_v31  ;;  %7500 = vst [vmem:[#allocation35_spill] sm:$0xff] %v4929_v55 }
 0x1ed   : > { %7484 = vst [vmem:[#allocation26_spill] sm:$0xff] %v4855_v25  ;;  %7485 = vst [vmem:[#allocation27_spill] sm:$0xff] %v4857_v13  ;;  %v1323_v27 = vmul.f32 %v7492_v0, %v4652_v15  ;;  %v1457_v59 = vadd.f32 %v1456_v1, %v1455_v62  ;;  %v7494_v15 = vunpack.c.l.bf16 %v4874_v50  ;;  %v4934_v0 = vld [vmem:[%s4752_s15 + $0x68] sm:$0xff]  }
 0x1ee   : > { %1162 = vbcast.lane.b32.xlu1 %v4777_v61, 328  ;;  %1158 = vbcast.lane.b32.xlu0 %v4777_v61, 320  ;;  %v1324_v1 = vmul.f32 %v7499_v47, %v4658_v18  ;;  %7501 = vst [vmem:[#allocation36_spill] sm:$0xff] %v4934_v0  ;;  %v4955_v18 = vld [vmem:[%s4752_s15 + $0x80] sm:$0xff]   ;;  %v4970_v13 = vld [vmem:[%s4752_s15 + $0x88] sm:$0xff]  }
 0x1ef   : > { %v1338_v8 = vmul.f32 %v7494_v15, %v4690_v34  ;;  %v1458_v63 = vsel %vm1444_vm1, %v1323_v27, 0.0  ;;  %v1491_v34 = vsel %vm1444_vm1, %v1337_v28, 0.0  ;;  %v4952_v27 = vld [vmem:[%s4752_s15 + $0x78] sm:$0xff]   ;;  %7504 = vst [vmem:[#allocation39_spill] sm:$0xff] %v4955_v18  ;;  %7509 = vst [vmem:[#allocation42_spill] sm:$0xff] %v4970_v13 }
 0x1f0   : > { %v4876_v10 = vpop.permute.xlu1 %929  ;;  %v4878_v26 = vpop.permute.xlu0 %925  ;;  %v1459_v3 = vadd.f32 %v1458_v63, %v1457_v59  ;;  %v1492_v25 = vadd.f32 %v1491_v34, %v1490_v12  ;;  %v4945_v63 = vld [vmem:[%s4752_s15 + $0x70] sm:$0xff]   ;;  %7503 = vst [vmem:[#allocation38_spill] sm:$0xff] %v4952_v27  ;;  %v7507_v59 = vunpack.c.h.bf16 %v4887_v31  ;;  %v1460_v32 = vsel %vm1444_vm1, %v1324_v1, 0.0 }
 0x1f1   : > { %v1493_v47 = vsel %vm1444_vm1, %v1338_v8, 0.0  ;;  %7502 = vst [vmem:[#allocation37_spill] sm:$0xff] %v4945_v63  ;;  %v7508_v12 = vunpack.c.h.bf16 %v4874_v50  ;;  %v7511_v1 = vunpack.c.l.bf16 %v4918_v9  ;;  %v4984_v50 = vld [vmem:[%s4752_s15 + $0x98] sm:$0xff]  }
 0x1f2   : > { %1170 = vbcast.lane.b32.xlu1 %v4777_v61, 344  ;;  %1166 = vbcast.lane.b32.xlu0 %v4777_v61, 336  ;;  %v1325_v15 = vmul.f32 %v7507_v59, %v4656_v17  ;;  %7512 = vst [vmem:[#allocation44_spill] sm:$0xff] %v4984_v50  ;;  %v7516_v17 = vunpack.c.l.bf16 %v4908_v53 }
 0x1f3   : > { %v1339_v34 = vmul.f32 %v7508_v12, %v4688_v33  ;;  %v1340_v59 = vmul.f32 %v7511_v1, %v4694_v36  ;;  %v4994_v36 = vld [vmem:[%s4752_s15 + $0xa8] sm:$0xff]  }
 0x1f4   : > { %v4893_v16 = vpop.permute.xlu1 %937  ;;  %v4895_v5 = vpop.permute.xlu0 %933  ;;  %7513 = vst [vmem:[#allocation45_spill] sm:$0xff] %v4994_v36  ;;  %v1462_v12 = vsel %vm1444_vm1, %v1325_v15, 0.0 }
 0x1f6   : > { %1178 = vbcast.lane.b32.xlu1 %v4777_v61, 360  ;;  %1174 = vbcast.lane.b32.xlu0 %v4777_v61, 352 }
 0x1f8   : > { %v4920_v30 = vpop.permute.xlu1 %945  ;;  %v4922_v62 = vpop.permute.xlu0 %941 }
 0x1f9   : > { %7497 = vst [vmem:[#allocation33_spill] sm:$0xff] %v4920_v30  ;;  %7498 = vst [vmem:[#allocation34_spill] sm:$0xff] %v4922_v62  ;;  %v4991_v30 = vld [vmem:[%s4752_s15 + $0xa0] sm:$0xff]  }
 0x1fa   : > { %1186 = vbcast.lane.b32.xlu1 %v4777_v61, 376  ;;  %1182 = vbcast.lane.b32.xlu0 %v4777_v61, 368  ;;  %v5025_v62 = vld [vmem:[%s4752_s15 + $0xc0] sm:$0xff]  }
 0x1fb   : > { %7518 = vst [vmem:[#allocation48_spill] sm:$0xff] %v5025_v62 }
 0x1fc   : > { %v4957_v28 = vpop.permute.xlu1 %953  ;;  %v4959_v8 = vpop.permute.xlu0 %949 }
 0x1fd   : > { %7505 = vst [vmem:[#allocation40_spill] sm:$0xff] %v4957_v28  ;;  %7506 = vst [vmem:[#allocation41_spill] sm:$0xff] %v4959_v8  ;;  %v1461_v28 = vadd.f32 %v1460_v32, %v1459_v3  ;;  %v1494_v8 = vadd.f32 %v1493_v47, %v1492_v25  ;;  %v1326_v3 = vmul.f32 %v7516_v17, %v4662_v20  ;;  %v1495_v32 = vsel %vm1444_vm1, %v1339_v34, 0.0  ;;  %v5007_v25 = vld [vmem:[%s4752_s15 + $0xb0] sm:$0xff]   ;;  %v5016_v17 = vld [vmem:[%s4752_s15 + $0xb8] sm:$0xff]  }
 0x1ff   : > { %v1463_v61 = vadd.f32 %v1462_v12, %v1461_v28  ;;  %v1496_v31 = vadd.f32 %v1495_v32, %v1494_v8  ;;  %v7517_v28 = vunpack.c.h.bf16 %v4908_v53  ;;  %v1464_v34 = vsel %vm1444_vm1, %v1326_v3, 0.0  ;;  %v5042_v12 = vld [vmem:[%s4752_s15 + $0xc8] sm:$0xff]   ;;  %v5045_v53 = vld [vmem:[%s4752_s15 + $0xd0] sm:$0xff]  }
 0x200   : > { %v4996_v1 = vpop.permute.xlu1 %961  ;;  %v4998_v33 = vpop.permute.xlu0 %957  ;;  %v7523_v32 = vunpack.c.l.bf16 %v4955_v18  ;;  %7524 = vst [vmem:[#allocation51_spill] sm:$0xff] %v5042_v12  ;;  %7525 = vst [vmem:[#allocation52_spill] sm:$0xff] %v5045_v53 }
 0x201   : > { %7514 = vst [vmem:[#allocation46_spill] sm:$0xff] %v4996_v1  ;;  %7515 = vst [vmem:[#allocation47_spill] sm:$0xff] %v4998_v33  ;;  %v1497_v33 = vsel %vm1444_vm1, %v1340_v59, 0.0  ;;  %v1327_v8 = vmul.f32 %v7517_v28, %v4660_v19  ;;  %v7521_v1 = vunpack.c.h.bf16 %v4918_v9  ;;  %v7522_v19 = vunpack.c.h.bf16 %v4955_v18  ;;  %v5058_v18 = vld [vmem:[%s4752_s15 + $0xd8] sm:$0xff]  }
 0x202   : > { %v1348_v59 = vmul.f32 %v7523_v32, %v4710_v44  ;;  %v5113_v32 = vld [vmem:[%s4752_s15 + $0x108] sm:$0xff]  }
 0x203   : > { %v1341_v47 = vmul.f32 %v7521_v1, %v4692_v35  ;;  %v1349_v28 = vmul.f32 %v7522_v19, %v4708_v43  ;;  %v7526_v35 = vunpack.c.l.bf16 %v4934_v0  ;;  %v7527_v43 = vunpack.c.l.bf16 %v4970_v13  ;;  %7539 = vst [vmem:[#allocation60_spill] sm:$0xff] %v5113_v32 }
 0x204   : > { %v5027_v15 = vpop.permute.xlu1 %969  ;;  %v5029_v20 = vpop.permute.xlu0 %965 }
 0x205   : > { %7519 = vst [vmem:[#allocation49_spill] sm:$0xff] %v5027_v15  ;;  %7520 = vst [vmem:[#allocation50_spill] sm:$0xff] %v5029_v20  ;;  %v1465_v15 = vadd.f32 %v1464_v34, %v1463_v61  ;;  %v1498_v20 = vadd.f32 %v1497_v33, %v1496_v31  ;;  %v1342_v1 = vmul.f32 %v7526_v35, %v4698_v38  ;;  %v1466_v31 = vsel %vm1444_vm1, %v1327_v8, 0.0  ;;  %v5065_v38 = vld [vmem:[%s4752_s15 + $0xe0] sm:$0xff]   ;;  %v5078_v33 = vld [vmem:[%s4752_s15 + $0xe8] sm:$0xff]  }
 0x206   : > { %v1350_v44 = vmul.f32 %v7527_v43, %v4714_v46  ;;  %v7530_v43 = vunpack.c.l.bf16 %v4915_v60  ;;  %v1499_v3 = vsel %vm1444_vm1, %v1341_v47, 0.0  ;;  %v1520_v8 = vsel %vm1444_vm1, %v1349_v28, 0.0  ;;  %7531 = vst [vmem:[#allocation55_spill] sm:$0xff] %v5078_v33 }
 0x207   : > { %v1519_v61 = vsel %vm1444_vm1, %v1348_v59, 0.0  ;;  %v1467_v34 = vadd.f32 %v1466_v31, %v1465_v15  ;;  %v1500_v19 = vadd.f32 %v1499_v3, %v1498_v20  ;;  %v5093_v31 = vld [vmem:[%s4752_s15 + $0xf8] sm:$0xff]   ;;  %v7537_v20 = vunpack.c.h.bf16 %v4970_v13  ;;  %v5110_v15 = vld [vmem:[%s4752_s15 + $0x100] sm:$0xff]  }
 0x208   : > { %v5067_v35 = vpop.permute.xlu1 %977  ;;  %v5069_v46 = vpop.permute.xlu0 %973  ;;  %v1328_v9 = vmul.f32 %v7530_v43, %v4666_v22  ;;  %v1522_v22 = vsel %vm1444_vm1, %v1350_v44, 0.0  ;;  %v5087_v43 = vld [vmem:[%s4752_s15 + $0xf0] sm:$0xff]   ;;  %v1521_v59 = vadd.f32 %v1520_v8, %v1519_v61  ;;  %7532 = vst [vmem:[#allocation56_spill] sm:$0xff] %v5093_v31  ;;  %v7535_v44 = vunpack.c.h.bf16 %v4915_v60  ;;  %7538 = vst [vmem:[#allocation59_spill] sm:$0xff] %v5110_v15  ;;  %v5181_v31 = vld [vmem:[%s4752_s15 + $0x140] sm:$0xff]  }
 0x209   : > { %7528 = vst [vmem:[#allocation53_spill] sm:$0xff] %v5067_v35  ;;  %7529 = vst [vmem:[#allocation54_spill] sm:$0xff] %v5069_v46  ;;  %v1501_v46 = vsel %vm1444_vm1, %v1342_v1, 0.0  ;;  %v7536_v61 = vunpack.c.h.bf16 %v4934_v0  ;;  %v1351_v3 = vmul.f32 %v7537_v20, %v4712_v45  ;;  %v5145_v45 = vld [vmem:[%s4752_s15 + $0x120] sm:$0xff]  }
 0x20a   : > { %v1329_v47 = vmul.f32 %v7535_v44, %v4664_v21  ;;  %v1468_v28 = vsel %vm1444_vm1, %v1328_v9, 0.0  ;;  %v1523_v33 = vadd.f32 %v1522_v22, %v1521_v59  ;;  %v7540_v9 = vunpack.c.l.bf16 %v4945_v63  ;;  %v5142_v21 = vld [vmem:[%s4752_s15 + $0x118] sm:$0xff]   ;;  %7548 = vst [vmem:[#allocation63_spill] sm:$0xff] %v5181_v31 }
 0x20b   : > { %v1343_v8 = vmul.f32 %v7536_v61, %v4696_v37  ;;  %v7541_v37 = vunpack.c.l.bf16 %v4973_v7 }
 0x20c   : > { %v5095_v1 = vpop.permute.xlu1 %985  ;;  %v5097_v35 = vpop.permute.xlu0 %981  ;;  %v1344_v44 = vmul.f32 %v7540_v9, %v4702_v40  ;;  %v7542_v9 = vunpack.c.l.bf16 %v4929_v55 }
 0x20d   : > { %7533 = vst [vmem:[#allocation57_spill] sm:$0xff] %v5095_v1  ;;  %7534 = vst [vmem:[#allocation58_spill] sm:$0xff] %v5097_v35  ;;  %v1469_v1 = vadd.f32 %v1468_v28, %v1467_v34  ;;  %v1502_v35 = vadd.f32 %v1501_v46, %v1500_v19  ;;  %v1352_v61 = vmul.f32 %v7541_v37, %v4719_v49  ;;  %v5129_v28 = vld [vmem:[%s4752_s15 + $0x110] sm:$0xff]   ;;  %v1470_v49 = vsel %vm1444_vm1, %v1329_v47, 0.0 }
 0x20e   : > { %v1330_v37 = vmul.f32 %v7542_v9, %v4670_v24  ;;  %v1503_v20 = vsel %vm1444_vm1, %v1343_v8, 0.0  ;;  %v1524_v34 = vsel %vm1444_vm1, %v1351_v3, 0.0  ;;  %v1505_v47 = vsel %vm1444_vm1, %v1344_v44, 0.0  ;;  %v5153_v3 = vld [vmem:[%s4752_s15 + $0x128] sm:$0xff]   ;;  %v5162_v44 = vld [vmem:[%s4752_s15 + $0x130] sm:$0xff]  }
 0x20f   : > { %v1471_v22 = vadd.f32 %v1470_v49, %v1469_v1  ;;  %v1504_v46 = vadd.f32 %v1503_v20, %v1502_v35  ;;  %v1525_v19 = vadd.f32 %v1524_v34, %v1523_v33  ;;  %v1526_v0 = vsel %vm1444_vm1, %v1352_v61, 0.0  ;;  %7544 = vst [vmem:[#allocation61_spill] sm:$0xff] %v5162_v44  ;;  %v5177_v1 = vld [vmem:[%s4752_s15 + $0x138] sm:$0xff]  }
 0x210   : > { %v5131_v40 = vpop.permute.xlu1 %996  ;;  %v5133_v59 = vpop.permute.xlu0 %992  ;;  %v7543_v9 = vunpack.c.h.bf16 %v4929_v55  ;;  %v1472_v34 = vsel %vm1444_vm1, %v1330_v37, 0.0  ;;  %v7545_v49 = vunpack.c.h.bf16 %v4945_v63  ;;  %7547 = vst [vmem:[#allocation62_spill] sm:$0xff] %v5177_v1  ;;  %v7549_v37 = vunpack.c.l.bf16 %v4952_v27 }
 0x211   : > { %v1473_v24 = vadd.f32 %v1472_v34, %v1471_v22  ;;  %v1506_v8 = vadd.f32 %v1505_v47, %v1504_v46  ;;  %v1527_v13 = vadd.f32 %v1526_v0, %v1525_v19  ;;  %v5192_v22 = vld [vmem:[%s4752_s15 + $0x148] sm:$0xff]   ;;  %v5199_v47 = vld [vmem:[%s4752_s15 + $0x150] sm:$0xff]   ;;  %v5210_v19 = vld [vmem:[%s4752_s15 + $0x158] sm:$0xff]   ;;  %v7554_v35 = vunpack.c.h.bf16 %v4984_v50 }
 0x212   : > { %v1331_v60 = vmul.f32 %v7543_v9, %v4668_v23  ;;  %v1345_v23 = vmul.f32 %v7545_v49, %v4700_v39  ;;  %v7546_v9 = vunpack.c.h.bf16 %v4973_v7  ;;  %v1346_v39 = vmul.f32 %v7549_v37, %v4706_v42  ;;  %7551 = vst [vmem:[#allocation64_spill] sm:$0xff] %v5192_v22  ;;  %v5216_v7 = vld [vmem:[%s4752_s15 + $0x160] sm:$0xff]  }
 0x213   : > { %v7550_v49 = vunpack.c.l.bf16 %v4984_v50  ;;  %v5254_v50 = vld [vmem:[%s4752_s15 + $0x180] sm:$0xff]   ;;  %v7561_v44 = vunpack.c.l.bf16 %v5110_v15 }
 0x214   : > { %v5164_v61 = vpop.permute.xlu1 %1004  ;;  %v5166_v20 = vpop.permute.xlu0 %1000  ;;  %v1353_v33 = vmul.f32 %v7546_v9, %v4717_v48  ;;  %v1474_v0 = vsel %vm1444_vm1, %v1331_v60, 0.0  ;;  %v1507_v37 = vsel %vm1444_vm1, %v1345_v23, 0.0  ;;  %v1509_v63 = vsel %vm1444_vm1, %v1346_v39, 0.0  ;;  %v5223_v60 = vld [vmem:[%s4752_s15 + $0x168] sm:$0xff]   ;;  %v5249_v39 = vld [vmem:[%s4752_s15 + $0x178] sm:$0xff]   ;;  %v5280_v23 = vld [vmem:[%s4752_s15 + $0x190] sm:$0xff]  }
 0x215   : > { %v1354_v48 = vmul.f32 %v7550_v49, %v4726_v52  ;;  %v5212_v46 = vadd.f32 %v1474_v0, %v1473_v24  ;;  %v1508_v42 = vadd.f32 %v1507_v37, %v1506_v8  ;;  %v7553_v24 = vunpack.c.h.bf16 %v4952_v27  ;;  %7559 = vst [vmem:[#allocation66_spill] sm:$0xff] %v5280_v23 }
 0x216   : > { %v1528_v49 = vsel %vm1444_vm1, %v1353_v33, 0.0  ;;  %v1355_v9 = vmul.f32 %v7554_v35, %v4724_v51  ;;  %v7556_v0 = vunpack.c.l.bf16 %v5025_v62  ;;  %v7557_v51 = vunpack.c.l.bf16 %v4991_v30 }
 0x217   : > { %7552 = vst [vmem:[#allocation65_spill] sm:$0xff] %v5212_v46  ;;  %v1529_v55 = vadd.f32 %v1528_v49, %v1527_v13  ;;  %v1530_v33 = vsel %vm1444_vm1, %v1354_v48, 0.0  ;;  %v1347_v8 = vmul.f32 %v7553_v24, %v4704_v41  ;;  %v5236_v49 = vld [vmem:[%s4752_s15 + $0x170] sm:$0xff]   ;;  %v7555_v41 = vunpack.c.h.bf16 %v5025_v62 }
 0x218   : > { %v5201_v34 = vpop.permute.xlu1 %1012  ;;  %v5203_v52 = vpop.permute.xlu0 %1008  ;;  %v1364_v13 = vmul.f32 %v7556_v0, %v4747_v4  ;;  %v1510_v27 = vadd.f32 %v1509_v63, %v1508_v42  ;;  %v7558_v4 = vunpack.c.l.bf16 %v5042_v12  ;;  %v5316_v0 = vld [vmem:[%s4752_s15 + $0x198] sm:$0xff]  }
 0x219   : > { %v1365_v24 = vmul.f32 %v7555_v41, %v4745_v2  ;;  %v1531_v46 = vadd.f32 %v1530_v33, %v1529_v55  ;;  %v1356_v2 = vmul.f32 %v7557_v51, %v4730_v56  ;;  %v5265_v55 = vld [vmem:[%s4752_s15 + $0x188] sm:$0xff]   ;;  %v1511_v42 = vsel %vm1444_vm1, %v1347_v8, 0.0  ;;  %7567 = vst [vmem:[#allocation67_spill] sm:$0xff] %v5316_v0 }
 0x21a   : > { %v1366_v35 = vmul.f32 %v7558_v4, %v4756_v14  ;;  %v1532_v14 = vsel %vm1444_vm1, %v1355_v9, 0.0  ;;  %v1556_v63 = vsel %vm1444_vm1, %v1364_v13, 0.0  ;;  %v5282_v8 = vadd.f32 %v1511_v42, %v1510_v27 }
 0x21b   : > { %v1557_v4 = vsel %vm1444_vm1, %v1365_v24, 0.0  ;;  %v1533_v1 = vadd.f32 %v1532_v14, %v1531_v46  ;;  %v1534_v51 = vsel %vm1444_vm1, %v1356_v2, 0.0  ;;  %v7560_v13 = vunpack.c.h.bf16 %v5110_v15  ;;  %v5319_v2 = vld [vmem:[%s4752_s15 + $0x1a0] sm:$0xff]  }
 0x21c   : > { %v5230_v37 = vpop.permute.xlu1 %1020  ;;  %v5233_v48 = vpop.permute.xlu0 %1016  ;;  %v1559_v9 = vsel %vm1444_vm1, %v1366_v35, 0.0  ;;  %v1380_v27 = vmul.f32 %v7561_v44, %v4878_v26  ;;  %v7562_v46 = vunpack.c.h.bf16 %v4991_v30  ;;  %v1558_v14 = vadd.f32 %v1557_v4, %v1556_v63  ;;  %7568 = vst [vmem:[#allocation68_spill] sm:$0xff] %v5319_v2 }
 0x21d   : > { %v1381_v24 = vmul.f32 %v7560_v13, %v4876_v10  ;;  %v7563_v10 = vunpack.c.h.bf16 %v5042_v12  ;;  %v7564_v26 = vunpack.c.l.bf16 %v5113_v32  ;;  %v7566_v4 = vunpack.c.l.bf16 %v5181_v31  ;;  %v5349_v12 = vld [vmem:[%s4752_s15 + $0x1a8] sm:$0xff]  }
 0x21e   : > { %v1357_v42 = vmul.f32 %v7562_v46, %v4728_v54  ;;  %v7565_v54 = vunpack.c.h.bf16 %v5181_v31  ;;  %v1535_v35 = vadd.f32 %v1534_v51, %v1533_v1  ;;  %v1560_v15 = vadd.f32 %v1559_v9, %v1558_v14  ;;  %7573 = vst [vmem:[#allocation69_spill] sm:$0xff] %v5349_v12 }
 0x21f   : > { %v1367_v13 = vmul.f32 %v7563_v10, %v4754_v6  ;;  %v1382_v44 = vmul.f32 %v7564_v26, %v4895_v5  ;;  %v1396_v46 = vmul.f32 %v7566_v4, %v5133_v59  ;;  %v7569_v6 = vunpack.c.l.bf16 %v4994_v36 }
 0x220   : > { %v5268_v33 = vpop.permute.xlu1 %1028  ;;  %v5270_v41 = vpop.permute.xlu0 %1024  ;;  %v1397_v63 = vmul.f32 %v7565_v54, %v5131_v40  ;;  %v7570_v26 = vunpack.c.l.bf16 %v5045_v53  ;;  %v1594_v54 = vsel %vm1444_vm1, %v1381_v24, 0.0  ;;  %v1593_v59 = vsel %vm1444_vm1, %v1380_v27, 0.0 }
 0x221   : > { %v1358_v10 = vmul.f32 %v7569_v6, %v4734_v58  ;;  %v7571_v4 = vunpack.c.l.bf16 %v5192_v22  ;;  %v1536_v51 = vsel %vm1444_vm1, %v1357_v42, 0.0  ;;  %v1561_v24 = vsel %vm1444_vm1, %v1367_v13, 0.0 }
 0x222   : > { %v1368_v40 = vmul.f32 %v7570_v26, %v4765_v11  ;;  %v1596_v27 = vsel %vm1444_vm1, %v1382_v44, 0.0  ;;  %v1631_v6 = vsel %vm1444_vm1, %v1397_v63, 0.0  ;;  %v7572_v42 = vunpack.c.h.bf16 %v4994_v36 }
 0x223   : > { %v1398_v1 = vmul.f32 %v7571_v4, %v5166_v20  ;;  %v1630_v20 = vsel %vm1444_vm1, %v1396_v46, 0.0  ;;  %v1537_v4 = vadd.f32 %v1536_v51, %v1535_v35  ;;  %v1562_v5 = vadd.f32 %v1561_v24, %v1560_v15 }
 0x224   : > { %v5297_v62 = vpop.permute.xlu1 %1036  ;;  %v5299_v56 = vpop.permute.xlu0 %1032  ;;  %v1359_v26 = vmul.f32 %v7572_v42, %v4732_v57  ;;  %v1595_v9 = vadd.f32 %v1594_v54, %v1593_v59  ;;  %v1538_v11 = vsel %vm1444_vm1, %v1358_v10, 0.0  ;;  %v1563_v13 = vsel %vm1444_vm1, %v1368_v40, 0.0  ;;  %v5366_v59 = vld [vmem:[%s4752_s15 + $0x1b0] sm:$0xff]   ;;  %v7576_v40 = vld [vmem:[#allocation34_spill] sm:$0xff] }
 0x225   : > { %v7574_v44 = vunpack.c.h.bf16 %v5113_v32  ;;  %v1633_v46 = vsel %vm1444_vm1, %v1398_v1, 0.0  ;;  %v7575_v14 = vunpack.c.h.bf16 %v5045_v53  ;;  %v1632_v35 = vadd.f32 %v1631_v6, %v1630_v20  ;;  %v7588_v53 = vld [vmem:[#allocation33_spill] sm:$0xff] }
 0x226   : > { %v1597_v57 = vadd.f32 %v1596_v27, %v1595_v9  ;;  %v7577_v51 = vunpack.c.l.bf16 %v5129_v28  ;;  %v7578_v1 = vunpack.c.h.bf16 %v5192_v22  ;;  %v7579_v27 = vld [vmem:[#allocation8_spill] sm:$0xff]  ;;  %v7580_v6 = vunpack.c.l.bf16 %v5007_v25  ;;  %v7584_v9 = vld [vmem:[#allocation14_spill] sm:$0xff] }
 0x227   : > { %v1383_v63 = vmul.f32 %v7574_v44, %v4893_v16  ;;  %v1369_v36 = vmul.f32 %v7575_v14, %v4763_v29  ;;  %v1539_v14 = vadd.f32 %v1538_v11, %v1537_v4  ;;  %v1564_v42 = vadd.f32 %v1563_v13, %v1562_v5 }
 0x228   : > { %v5334_v31 = vpop.permute.xlu1 %1044  ;;  %v5336_v58 = vpop.permute.xlu0 %1040  ;;  %v1384_v16 = vmul.f32 %v7577_v51, %v7576_v40  ;;  %v1399_v24 = vmul.f32 %v7578_v1, %v5164_v61  ;;  %v1360_v20 = vmul.f32 %v7580_v6, %v7579_v27  ;;  %v1634_v44 = vadd.f32 %v1633_v46, %v1632_v35  ;;  %v7582_v1 = vld [vmem:[#allocation7_spill] sm:$0xff] }
 0x229   : > { %v1540_v10 = vsel %vm1444_vm1, %v1359_v26, 0.0  ;;  %v1598_v32 = vsel %vm1444_vm1, %v1383_v63, 0.0  ;;  %v7581_v40 = vunpack.c.l.bf16 %v5199_v47  ;;  %v7583_v29 = vunpack.c.h.bf16 %v5007_v25 }
 0x22a   : > { %v1565_v4 = vsel %vm1444_vm1, %v1369_v36, 0.0  ;;  %v7585_v5 = vunpack.c.l.bf16 %v5058_v18  ;;  %v1599_v46 = vadd.f32 %v1598_v32, %v1597_v57  ;;  %v1600_v63 = vsel %vm1444_vm1, %v1384_v16, 0.0 }
 0x22b   : > { %v1400_v51 = vmul.f32 %v7581_v40, %v5203_v52  ;;  %v1361_v11 = vmul.f32 %v7583_v29, %v7582_v1  ;;  %v1635_v27 = vsel %vm1444_vm1, %v1399_v24, 0.0  ;;  %v7586_v52 = vunpack.c.h.bf16 %v5254_v50 }
 0x22c   : > { %v5360_v15 = vpop.permute.xlu1 %1052  ;;  %v5362_v54 = vpop.permute.xlu0 %1048  ;;  %v1370_v13 = vmul.f32 %v7585_v5, %v7584_v9  ;;  %v7587_v40 = vunpack.c.l.bf16 %v5254_v50  ;;  %v1541_v29 = vadd.f32 %v1540_v10, %v1539_v14  ;;  %v1542_v36 = vsel %vm1444_vm1, %v1360_v20, 0.0 }
 0x22d   : > { %v1566_v1 = vadd.f32 %v1565_v4, %v1564_v42  ;;  %v1636_v22 = vadd.f32 %v1635_v27, %v1634_v44  ;;  %v7589_v32 = vunpack.c.h.bf16 %v5129_v28  ;;  %v1637_v9 = vsel %vm1444_vm1, %v1400_v51, 0.0  ;;  %v7595_v27 = vld [vmem:[#allocation13_spill] sm:$0xff] }
 0x22e   : > { %v1567_v5 = vsel %vm1444_vm1, %v1370_v13, 0.0  ;;  %v7591_v10 = vunpack.c.l.bf16 %v5142_v21  ;;  %v1544_v4 = vsel %vm1444_vm1, %v1361_v11, 0.0  ;;  %v7594_v13 = vunpack.c.l.bf16 %v5265_v55 }
 0x22f   : > { %v1385_v57 = vmul.f32 %v7589_v32, %v7588_v53  ;;  %v7592_v53 = vunpack.c.h.bf16 %v5199_v47  ;;  %v1638_v32 = vadd.f32 %v1637_v9, %v1636_v22  ;;  %v7597_v44 = vunpack.c.l.bf16 %v5210_v19 }
 0x230   : > { %v1064_v26 = vpop.permute.xlu1 %1063  ;;  %v1060_v35 = vpop.permute.xlu0 %1059  ;;  %v7600_v9 = vunpack.c.h.bf16 %v5280_v23 }
 0x231   : > { %v1413_v6 = vmul.f32 %v7586_v52, %v1064_v26  ;;  %v1412_v61 = vmul.f32 %v7587_v40, %v1060_v35  ;;  %v1601_v26 = vadd.f32 %v1600_v63, %v1599_v46  ;;  %v7590_v52 = vld [vmem:[#allocation41_spill] sm:$0xff]  ;;  %v1401_v51 = vmul.f32 %v7592_v53, %v5201_v34 }
 0x232   : > { %v1386_v14 = vmul.f32 %v7591_v10, %v7590_v52  ;;  %v7593_v35 = vunpack.c.h.bf16 %v5265_v55  ;;  %v1543_v63 = vadd.f32 %v1542_v36, %v1541_v29  ;;  %v1568_v10 = vadd.f32 %v1567_v5, %v1566_v1  ;;  %v7602_v5 = vld [vmem:[#allocation9_spill] sm:$0xff] }
 0x233   : > { %v1668_v16 = vsel %vm1444_vm1, %v1413_v6, 0.0  ;;  %v1667_v24 = vsel %vm1444_vm1, %v1412_v61, 0.0  ;;  %v7596_v6 = vunpack.c.h.bf16 %v5058_v18  ;;  %v1602_v11 = vsel %vm1444_vm1, %v1385_v57, 0.0 }
 0x234   : > { %v1072_v20 = vpop.permute.xlu1 %1071  ;;  %v1068_v42 = vpop.permute.xlu0 %1067  ;;  %v1669_v52 = vadd.f32 %v1668_v16, %v1667_v24  ;;  %v1402_v34 = vmul.f32 %v7597_v44, %v5233_v48  ;;  %v1603_v29 = vadd.f32 %v1602_v11, %v1601_v26  ;;  %v1604_v36 = vsel %vm1444_vm1, %v1386_v14, 0.0  ;;  %v7604_v26 = vld [vmem:[#allocation10_spill] sm:$0xff] }
 0x235   : > { %v1415_v61 = vmul.f32 %v7593_v35, %v1072_v20  ;;  %v1414_v46 = vmul.f32 %v7594_v13, %v1068_v42  ;;  %v1371_v40 = vmul.f32 %v7596_v6, %v7595_v27  ;;  %v7598_v20 = vld [vmem:[#allocation18_spill] sm:$0xff]  ;;  %v7599_v35 = vunpack.c.l.bf16 %v5065_v38 }
 0x236   : > { %v1639_v1 = vsel %vm1444_vm1, %v1401_v51, 0.0  ;;  %v7601_v48 = vunpack.c.l.bf16 %v5280_v23  ;;  %v7603_v44 = vunpack.c.h.bf16 %v5016_v17  ;;  %v7605_v14 = vunpack.c.l.bf16 %v5016_v17 }
 0x237   : > { %v1670_v53 = vsel %vm1444_vm1, %v1414_v46, 0.0  ;;  %v1372_v42 = vmul.f32 %v7599_v35, %v7598_v20  ;;  %v1672_v57 = vsel %vm1444_vm1, %v1415_v61, 0.0  ;;  %v1569_v51 = vsel %vm1444_vm1, %v1371_v40, 0.0 }
 0x238   : > { %v1671_v13 = vadd.f32 %v1670_v53, %v1669_v52  ;;  %v1080_v27 = vpop.permute.xlu1 %1079  ;;  %v1076_v22 = vpop.permute.xlu0 %1075  ;;  %v1363_v46 = vmul.f32 %v7603_v44, %v7602_v5  ;;  %v1362_v6 = vmul.f32 %v7605_v14, %v7604_v26  ;;  %v1640_v52 = vadd.f32 %v1639_v1, %v1638_v32  ;;  %v7606_v53 = vld [vmem:[#allocation40_spill] sm:$0xff]  ;;  %v7608_v32 = vld [vmem:[#allocation47_spill] sm:$0xff] }
 0x239   : > { %v1417_v16 = vmul.f32 %v7600_v9, %v1080_v27  ;;  %v1416_v24 = vmul.f32 %v7601_v48, %v1076_v22  ;;  %v7607_v61 = vunpack.c.h.bf16 %v5142_v21  ;;  %v1641_v35 = vsel %vm1444_vm1, %v1402_v34, 0.0 }
 0x23a   : > { %v1673_v11 = vadd.f32 %v1672_v57, %v1671_v13  ;;  %v1570_v22 = vadd.f32 %v1569_v51, %v1568_v10  ;;  %v1571_v9 = vsel %vm1444_vm1, %v1372_v42, 0.0  ;;  %v1605_v48 = vadd.f32 %v1604_v36, %v1603_v29  ;;  %v7613_v51 = vld [vmem:[#allocation17_spill] sm:$0xff] }
 0x23b   : > { %v1387_v20 = vmul.f32 %v7607_v61, %v7606_v53  ;;  %v1674_v27 = vsel %vm1444_vm1, %v1416_v24, 0.0  ;;  %v7609_v13 = vunpack.c.l.bf16 %v5145_v45  ;;  %v7610_v1 = vunpack.c.h.bf16 %v5210_v19 }
 0x23c   : > { %v1675_v5 = vadd.f32 %v1674_v27, %v1673_v11  ;;  %v1088_v44 = vpop.permute.xlu1 %1087  ;;  %v1084_v26 = vpop.permute.xlu0 %1083  ;;  %v1676_v34 = vsel %vm1444_vm1, %v1417_v16, 0.0  ;;  %v7611_v24 = vunpack.c.l.bf16 %v5316_v0  ;;  %v1545_v14 = vadd.f32 %v1544_v4, %v1543_v63 }
 0x23d   : > { %v1388_v40 = vmul.f32 %v7609_v13, %v7608_v32  ;;  %v1403_v57 = vmul.f32 %v7610_v1, %v5230_v37  ;;  %v1642_v42 = vadd.f32 %v1641_v35, %v1640_v52  ;;  %v7612_v29 = vunpack.c.h.bf16 %v5316_v0  ;;  %v5469_v13 = vld [vmem:[%s4752_s15 + $0x1b8] sm:$0xff]   ;;  %v7617_v1 = vld [vmem:[#allocation55_spill] sm:$0xff]  ;;  %v7647_v0 = vld [vmem:[#allocation56_spill] sm:$0xff] }
 0x23e   : > { %v1418_v10 = vmul.f32 %v7611_v24, %v1084_v26  ;;  %v1677_v11 = vadd.f32 %v1676_v34, %v1675_v5  ;;  %v7614_v53 = vunpack.c.h.bf16 %v5065_v38  ;;  %v1606_v27 = vsel %vm1444_vm1, %v1387_v20, 0.0  ;;  %v7616_v26 = vld [vmem:[#allocation21_spill] sm:$0xff] }
 0x23f   : > { %v1419_v36 = vmul.f32 %v7612_v29, %v1088_v44  ;;  %v7615_v37 = vunpack.c.l.bf16 %v5216_v7  ;;  %v1546_v4 = vsel %vm1444_vm1, %v1362_v6, 0.0  ;;  %v1572_v63 = vadd.f32 %v1571_v9, %v1570_v22 }
 0x240   : > { %v1373_v61 = vmul.f32 %v7614_v53, %v7613_v51  ;;  %v1678_v16 = vsel %vm1444_vm1, %v1418_v10, 0.0  ;;  %v1607_v52 = vadd.f32 %v1606_v27, %v1605_v48  ;;  %v1096_v5 = vpop.permute.xlu1 %1095  ;;  %v1092_v44 = vpop.permute.xlu0 %1091  ;;  %v7618_v34 = vunpack.c.l.bf16 %v7617_v1 }
 0x241   : > { %v1404_v32 = vmul.f32 %v7615_v37, %v5270_v41  ;;  %v1679_v35 = vadd.f32 %v1678_v16, %v1677_v11  ;;  %v1608_v24 = vsel %vm1444_vm1, %v1388_v40, 0.0  ;;  %v1643_v41 = vsel %vm1444_vm1, %v1403_v57, 0.0  ;;  %v7620_v11 = vld [vmem:[#allocation46_spill] sm:$0xff]  ;;  %v5488_v57 = vld [vmem:[%s4752_s15 + $0x1c0] sm:$0xff]  }
 0x242   : > { %v1374_v20 = vmul.f32 %v7618_v34, %v7616_v26  ;;  %v7619_v10 = vunpack.c.l.bf16 %v5319_v2  ;;  %v1644_v51 = vadd.f32 %v1643_v41, %v1642_v42  ;;  %v1680_v6 = vsel %vm1444_vm1, %v1419_v36, 0.0  ;;  %7622 = vst [vmem:[#allocation34_spill] sm:$0xff] %v5488_v57 }
 0x243   : > { %v1573_v48 = vsel %vm1444_vm1, %v1373_v61, 0.0  ;;  %v7621_v53 = vunpack.c.h.bf16 %v5145_v45  ;;  %v1645_v40 = vsel %vm1444_vm1, %v1404_v32, 0.0  ;;  %v1681_v37 = vadd.f32 %v1680_v6, %v1679_v35 }
 0x244   : > { %v1420_v29 = vmul.f32 %v7619_v10, %v1092_v44  ;;  %v1547_v16 = vadd.f32 %v1546_v4, %v1545_v14  ;;  %v1574_v42 = vadd.f32 %v1573_v48, %v1572_v63  ;;  %v1609_v44 = vadd.f32 %v1608_v24, %v1607_v52  ;;  %v1104_v26 = vpop.permute.xlu1 %1103  ;;  %v1100_v34 = vpop.permute.xlu0 %1099  ;;  %v7623_v10 = vld [vmem:[#allocation50_spill] sm:$0xff]  ;;  %v7636_v52 = vld [vmem:[#allocation61_spill] sm:$0xff] }
 0x245   : > { %v1389_v27 = vmul.f32 %v7621_v53, %v7620_v11  ;;  %v1548_v61 = vsel %vm1444_vm1, %v1363_v46, 0.0  ;;  %v1575_v41 = vsel %vm1444_vm1, %v1374_v20, 0.0  ;;  %v7624_v11 = vunpack.c.l.bf16 %v5153_v3  ;;  %v7627_v46 = vld [vmem:[#allocation20_spill] sm:$0xff] }
 0x246   : > { %v1682_v36 = vsel %vm1444_vm1, %v1420_v29, 0.0  ;;  %v7625_v35 = vunpack.c.h.bf16 %v5216_v7  ;;  %v1646_v14 = vadd.f32 %v1645_v40, %v1644_v51  ;;  %v7626_v4 = vunpack.c.h.bf16 %v5319_v2  ;;  %v5504_v29 = vld [vmem:[%s4752_s15 + $0x1c8] sm:$0xff]   ;;  %v5514_v40 = vld [vmem:[%s4752_s15 + $0x1d0] sm:$0xff]  }
 0x247   : > { %v1390_v32 = vmul.f32 %v7624_v11, %v7623_v10  ;;  %v7628_v20 = vunpack.c.h.bf16 %v7617_v1  ;;  %v1610_v53 = vsel %vm1444_vm1, %v1389_v27, 0.0  ;;  %v7629_v10 = vunpack.c.l.bf16 %v5223_v60  ;;  %v7631_v27 = vld [vmem:[#allocation24_spill] sm:$0xff] }
 0x248   : > { %v1405_v6 = vmul.f32 %v7625_v35, %v5268_v33  ;;  %v1421_v63 = vmul.f32 %v7626_v4, %v1096_v5  ;;  %v1683_v51 = vadd.f32 %v1682_v36, %v1681_v37  ;;  %v5516_v5 = vadd.f32 %v1548_v61, %v1547_v16  ;;  %v5520_v9 = vpop.permute.xlu1 %1111  ;;  %v5532_v61 = vld [vmem:[%s4752_s15 + $0x1d8] sm:$0xff]  }
 0x249   : > { %v1375_v48 = vmul.f32 %v7628_v20, %v7627_v46  ;;  %v1406_v33 = vmul.f32 %v7629_v10, %v5299_v56  ;;  %v1576_v11 = vadd.f32 %v1575_v41, %v1574_v42  ;;  %v1611_v35 = vadd.f32 %v1610_v53, %v1609_v44  ;;  %v1108_v46 = vpop.permute.xlu0 %1107  ;;  %v7633_v53 = vld [vmem:[#allocation49_spill] sm:$0xff]  ;;  %v7635_v16 = vld [vmem:[#allocation54_spill] sm:$0xff]  ;;  %v7646_v44 = vld [vmem:[#allocation27_spill] sm:$0xff] }
 0x24a   : > { %v7630_v4 = vunpack.c.l.bf16 %v5349_v12  ;;  %v7632_v20 = vunpack.c.l.bf16 %v5087_v43  ;;  %v1612_v56 = vsel %vm1444_vm1, %v1390_v32, 0.0  ;;  %v1647_v37 = vsel %vm1444_vm1, %v1405_v6, 0.0 }
 0x24b   : > { %v1648_v36 = vadd.f32 %v1647_v37, %v1646_v14  ;;  %v1684_v42 = vsel %vm1444_vm1, %v1421_v63, 0.0  ;;  %v1577_v41 = vsel %vm1444_vm1, %v1375_v48, 0.0  ;;  %v7634_v10 = vunpack.c.h.bf16 %v5153_v3 }
 0x24c   : > { %v1422_v22 = vmul.f32 %v7630_v4, %v1100_v34  ;;  %v1376_v24 = vmul.f32 %v7632_v20, %v7631_v27  ;;  %v1649_v32 = vsel %vm1444_vm1, %v1406_v33, 0.0  ;;  %v1685_v6 = vadd.f32 %v1684_v42, %v1683_v51  ;;  %v5540_v27 = vld [vmem:[%s4752_s15 + $0x1e0] sm:$0xff]   ;;  %v5543_v37 = vpop.permute.xlu1 %1119 }
 0x24d   : > { %v1391_v4 = vmul.f32 %v7634_v10, %v7633_v53  ;;  %v1578_v14 = vadd.f32 %v1577_v41, %v1576_v11  ;;  %v1613_v20 = vadd.f32 %v1612_v56, %v1611_v35  ;;  %v1116_v34 = vpop.permute.xlu0 %1115  ;;  %v7637_v2 = vunpack.c.l.bf16 %v7636_v52 }
 0x24e   : > { %v1686_v63 = vsel %vm1444_vm1, %v1422_v22, 0.0  ;;  %v1579_v48 = vsel %vm1444_vm1, %v1376_v24, 0.0  ;;  %v7638_v33 = vunpack.c.h.bf16 %v5223_v60  ;;  %v1650_v35 = vadd.f32 %v1649_v32, %v1648_v36 }
 0x24f   : > { %v1392_v53 = vmul.f32 %v7637_v2, %v7635_v16  ;;  %v7639_v22 = vunpack.c.h.bf16 %v5349_v12  ;;  %v1614_v24 = vsel %vm1444_vm1, %v1391_v4, 0.0  ;;  %v7640_v10 = vunpack.c.l.bf16 %v5236_v49 }
 0x250   : > { %v1407_v51 = vmul.f32 %v7638_v33, %v5297_v62  ;;  %v1687_v16 = vadd.f32 %v1686_v63, %v1685_v6  ;;  %v7641_v62 = vld [vmem:[#allocation23_spill] sm:$0xff]  ;;  %v7642_v33 = vunpack.c.h.bf16 %v5087_v43  ;;  %v1580_v32 = vadd.f32 %v1579_v48, %v1578_v14  ;;  %v1131_v42 = vpop.permute.xlu1 %1130 }
 0x251   : > { %v1423_v56 = vmul.f32 %v7639_v22, %v1104_v26  ;;  %v1408_v2 = vmul.f32 %v7640_v10, %v5336_v58  ;;  %v1615_v11 = vadd.f32 %v1614_v24, %v1613_v20  ;;  %v7643_v26 = vunpack.c.l.bf16 %v5366_v59  ;;  %v1127_v41 = vpop.permute.xlu0 %1126  ;;  %v7649_v20 = vld [vmem:[#allocation53_spill] sm:$0xff] }
 0x252   : > { %v1377_v36 = vmul.f32 %v7642_v33, %v7641_v62  ;;  %v1616_v4 = vsel %vm1444_vm1, %v1392_v53, 0.0  ;;  %v1651_v12 = vsel %vm1444_vm1, %v1407_v51, 0.0  ;;  %v7644_v58 = vunpack.c.h.bf16 %v5488_v57 }
 0x253   : > { %v1424_v22 = vmul.f32 %v7643_v26, %v1108_v46  ;;  %v7645_v63 = vunpack.c.l.bf16 %v5488_v57  ;;  %v7648_v62 = vunpack.c.l.bf16 %v7647_v0  ;;  %v7650_v48 = vunpack.c.h.bf16 %v7636_v52  ;;  %v7652_v57 = vld [vmem:[#allocation62_spill] sm:$0xff] }
 0x254   : > { %v1429_v6 = vmul.f32 %v7644_v58, %v1131_v42  ;;  %v1652_v24 = vadd.f32 %v1651_v12, %v1650_v35  ;;  %v1688_v33 = vsel %vm1444_vm1, %v1423_v56, 0.0  ;;  %v1653_v53 = vsel %vm1444_vm1, %v1408_v2, 0.0 }
 0x255   : > { %v1428_v10 = vmul.f32 %v7645_v63, %v1127_v41  ;;  %v1378_v14 = vmul.f32 %v7648_v62, %v7646_v44  ;;  %v1393_v46 = vmul.f32 %v7650_v48, %v7649_v20  ;;  %v1689_v51 = vadd.f32 %v1688_v33, %v1687_v16  ;;  %v7651_v63 = vld [vmem:[#allocation58_spill] sm:$0xff]  ;;  %v1139_v20 = vpop.permute.xlu1 %1138  ;;  %v1135_v12 = vpop.permute.xlu0 %1134 }
 0x256   : > { %v1705_v26 = vsel %vm1444_vm1, %v1429_v6, 0.0  ;;  %v1581_v41 = vsel %vm1444_vm1, %v1377_v36, 0.0  ;;  %v1617_v58 = vadd.f32 %v1616_v4, %v1615_v11  ;;  %v7653_v44 = vunpack.c.l.bf16 %v7652_v57 }
 0x257   : > { %v1704_v42 = vsel %vm1444_vm1, %v1428_v10, 0.0  ;;  %v1690_v23 = vsel %vm1444_vm1, %v1424_v22, 0.0  ;;  %v1582_v35 = vadd.f32 %v1581_v41, %v1580_v32  ;;  %v7654_v56 = vunpack.c.h.bf16 %v5236_v49 }
 0x258   : > { %v1394_v62 = vmul.f32 %v7653_v44, %v7651_v63  ;;  %v7655_v16 = vunpack.c.h.bf16 %v5504_v29  ;;  %v7656_v10 = vunpack.c.l.bf16 %v5504_v29  ;;  %v1583_v11 = vsel %vm1444_vm1, %v1378_v14, 0.0 }
 0x259   : > { %v1409_v2 = vmul.f32 %v7654_v56, %v5334_v31  ;;  %v1654_v4 = vadd.f32 %v1653_v53, %v1652_v24  ;;  %v7657_v48 = vunpack.c.h.bf16 %v5366_v59  ;;  %v1706_v33 = vadd.f32 %v1705_v26, %v1704_v42  ;;  %v1147_v56 = vpop.permute.xlu1 %1146 }
 0x25a   : > { %v1431_v6 = vmul.f32 %v7655_v16, %v1139_v20  ;;  %v1430_v36 = vmul.f32 %v7656_v10, %v1135_v12  ;;  %v1618_v32 = vsel %vm1444_vm1, %v1393_v46, 0.0  ;;  %v7658_v41 = vunpack.c.l.bf16 %v5249_v39 }
 0x25b   : > { %v1425_v22 = vmul.f32 %v7657_v48, %v5520_v9  ;;  %v1691_v63 = vadd.f32 %v1690_v23, %v1689_v51  ;;  %v1619_v20 = vadd.f32 %v1618_v32, %v1617_v58  ;;  %v1620_v12 = vsel %vm1444_vm1, %v1394_v62, 0.0  ;;  %v1143_v9 = vpop.permute.xlu0 %1142  ;;  %v7662_v58 = vld [vmem:[#allocation26_spill] sm:$0xff]  ;;  %v7664_v48 = vld [vmem:[#allocation57_spill] sm:$0xff] }
 0x25c   : > { %v1410_v31 = vmul.f32 %v7658_v41, %v5362_v54  ;;  %v1707_v44 = vsel %vm1444_vm1, %v1430_v36, 0.0  ;;  %v7659_v14 = vunpack.c.l.bf16 %v5469_v13  ;;  %v1655_v26 = vsel %vm1444_vm1, %v1409_v2, 0.0 }
 0x25d   : > { %v1708_v53 = vadd.f32 %v1707_v44, %v1706_v33  ;;  %v1709_v46 = vsel %vm1444_vm1, %v1431_v6, 0.0  ;;  %v7660_v42 = vunpack.c.h.bf16 %v5514_v40  ;;  %v7661_v23 = vunpack.c.l.bf16 %v5514_v40  ;;  %v5624_v44 = vld [vmem:[%s4752_s15 + $0x1e8] sm:$0xff]  }
 0x25e   : > { %v1426_v24 = vmul.f32 %v7659_v14, %v1116_v34  ;;  %v7663_v62 = vunpack.c.h.bf16 %v7647_v0  ;;  %v1656_v10 = vadd.f32 %v1655_v26, %v1654_v4  ;;  %v1692_v34 = vsel %vm1444_vm1, %v1425_v22, 0.0  ;;  %v1155_v4 = vpop.permute.xlu1 %1154 }
 0x25f   : > { %v1433_v54 = vmul.f32 %v7660_v42, %v1147_v56  ;;  %v1432_v51 = vmul.f32 %v7661_v23, %v1143_v9  ;;  %v1710_v36 = vadd.f32 %v1709_v46, %v1708_v53  ;;  %v7665_v33 = vunpack.c.h.bf16 %v7652_v57  ;;  %v1151_v26 = vpop.permute.xlu0 %1150 }
 0x260   : > { %v1379_v16 = vmul.f32 %v7663_v62, %v7662_v58  ;;  %v1657_v6 = vsel %vm1444_vm1, %v1410_v31, 0.0  ;;  %v1693_v32 = vadd.f32 %v1692_v34, %v1691_v63  ;;  %v1584_v14 = vadd.f32 %v1583_v11, %v1582_v35 }
 0x261   : > { %v1395_v2 = vmul.f32 %v7665_v33, %v7664_v48  ;;  %v1711_v41 = vsel %vm1444_vm1, %v1432_v51, 0.0  ;;  %v1621_v56 = vadd.f32 %v1620_v12, %v1619_v20  ;;  %v1694_v9 = vsel %vm1444_vm1, %v1426_v24, 0.0 }
 0x262   : > { %v1712_v42 = vadd.f32 %v1711_v41, %v1710_v36  ;;  %v7666_v22 = vunpack.c.h.bf16 %v5249_v39  ;;  %v1713_v46 = vsel %vm1444_vm1, %v1433_v54, 0.0  ;;  %v7667_v31 = vunpack.c.h.bf16 %v5532_v61  ;;  %v1163_v33 = vpop.permute.xlu1 %1162 }
 0x263   : > { %v7668_v23 = vunpack.c.l.bf16 %v5532_v61  ;;  %v1658_v58 = vadd.f32 %v1657_v6, %v1656_v10  ;;  %v7669_v35 = vunpack.c.h.bf16 %v5469_v13  ;;  %v7439_v12 = vunpack.c.h.bf16 %v5624_v44  ;;  %v1159_v10 = vpop.permute.xlu0 %1158 }
 0x264   : > { %v1411_v53 = vmul.f32 %v7666_v22, %v5360_v15  ;;  %v1435_v63 = vmul.f32 %v7667_v31, %v1155_v4  ;;  %v1714_v20 = vadd.f32 %v1713_v46, %v1712_v42  ;;  %v1585_v24 = vsel %vm1444_vm1, %v1379_v16, 0.0  ;;  %v7673_v22 = vld [vmem:[#allocation65_spill] sm:$0xff] }
 0x265   : > { %v1434_v51 = vmul.f32 %v7668_v23, %v1151_v26  ;;  %v1427_v11 = vmul.f32 %v7669_v35, %v5543_v37  ;;  %v1622_v15 = vsel %vm1444_vm1, %v1395_v2, 0.0  ;;  %v1695_v54 = vadd.f32 %v1694_v9, %v1693_v32  ;;  %v5650_v32 = vld [vmem:[%s4752_s15 + $0x1f0] sm:$0xff]  }
 0x266   : > { %v1586_v34 = vadd.f32 %v1585_v24, %v1584_v14  ;;  %v1623_v36 = vadd.f32 %v1622_v15, %v1621_v56  ;;  %v7442_v6 = vunpack.c.l.bf16 %v5624_v44  ;;  %v1659_v37 = vsel %vm1444_vm1, %v1411_v53, 0.0  ;;  %7672 = vst [vmem:[#allocation8_spill] sm:$0xff] %v5650_v32  ;;  %v1171_v35 = vpop.permute.xlu1 %1170 }
 0x267   : > { %v1715_v62 = vsel %vm1444_vm1, %v1434_v51, 0.0  ;;  %v1717_v41 = vsel %vm1444_vm1, %v1435_v63, 0.0  ;;  %v7670_v42 = vunpack.c.h.bf16 %v5540_v27  ;;  %v7671_v16 = vunpack.c.l.bf16 %v5540_v27 }
 0x268   : > { %v1716_v48 = vadd.f32 %v1715_v62, %v1714_v20  ;;  %v1513_v14 = vrot.slane %v5282_v8, 4  ;;  %v1660_v56 = vadd.f32 %v1659_v37, %v1658_v58  ;;  %v1696_v9 = vsel %vm1444_vm1, %v1427_v11, 0.0  ;;  %v1167_v20 = vpop.permute.xlu0 %1166 }
 0x269   : > { %v1437_v4 = vmul.f32 %v7670_v42, %v1163_v33  ;;  %v1436_v2 = vmul.f32 %v7671_v16, %v1159_v10  ;;  %v1476_v46 = vrot.slane %v7673_v22, 4  ;;  %v1550_v53 = vrot.slane %v5516_v5, 4 }
 0x26a   : > { %v1718_v26 = vadd.f32 %v1717_v41, %v1716_v48  ;;  %v1697_v31 = vadd.f32 %v1696_v9, %v1695_v54  ;;  %v1587_v23 = vrot.slane %v1586_v34, 4  ;;  %v7440_v24 = vunpack.c.h.bf16 %v5650_v32  ;;  %v5665_v54 = vld [vmem:[%s4752_s15 + $0x1f8] sm:$0xff]  }
 0x26b   : > { %v1719_v63 = vsel %vm1444_vm1, %v1436_v2, 0.0  ;;  %v7441_v15 = vunpack.c.l.bf16 %v5650_v32  ;;  %v1624_v58 = vrot.slane %v1623_v36, 4  ;;  %v1721_v11 = vsel %vm1444_vm1, %v1437_v4, 0.0  ;;  %7674 = vst [vmem:[#allocation7_spill] sm:$0xff] %v5665_v54 }
 0x26c   : > { %v1720_v51 = vadd.f32 %v1719_v63, %v1718_v26  ;;  %v1439_v62 = vmul.f32 %v7439_v12, %v1171_v35  ;;  %v1438_v48 = vmul.f32 %v7442_v6, %v1167_v20  ;;  %v1514_v33 = vadd.f32 %v1513_v14, %v5282_v8  ;;  %v1179_v26 = vpop.permute.xlu1 %1178  ;;  %v1175_v63 = vpop.permute.xlu0 %1174 }
 0x26d   : > { %v1661_v10 = vrot.slane %v1660_v56, 4  ;;  %v1477_v41 = vadd.f32 %v1476_v46, %v7673_v22  ;;  %v1551_v42 = vadd.f32 %v1550_v53, %v5516_v5  ;;  %v1698_v16 = vrot.slane %v1697_v31, 4 }
 0x26e   : > { %v1722_v37 = vadd.f32 %v1721_v11, %v1720_v51  ;;  %v1723_v2 = vsel %vm1444_vm1, %v1438_v48, 0.0  ;;  %v1588_v4 = vadd.f32 %v1587_v23, %v1586_v34  ;;  %v7445_v35 = vunpack.c.h.bf16 %v5665_v54 }
 0x26f   : > { %v4100_v20 = vunpack.c.l.bf16 %v5665_v54  ;;  %v1625_v12 = vadd.f32 %v1624_v58, %v1623_v36  ;;  %v1725_v8 = vsel %vm1444_vm1, %v1439_v62, 0.0  ;;  %v1441_v14 = vmul.f32 %v7440_v24, %v1179_v26 }
 0x270   : > { %v1724_v9 = vadd.f32 %v1723_v2, %v1722_v37  ;;  %v1440_v5 = vmul.f32 %v7441_v15, %v1175_v63  ;;  %v1515_v22 = vrot.slane %v1514_v33, 2  ;;  %v1662_v46 = vadd.f32 %v1661_v10, %v1660_v56  ;;  %v1187_v2 = vpop.permute.xlu1 %1186  ;;  %v1183_v36 = vpop.permute.xlu0 %1182 }
 0x271   : > { %v1552_v34 = vrot.slane %v1551_v42, 2  ;;  %v1699_v23 = vadd.f32 %v1698_v16, %v1697_v31  ;;  %v1478_v11 = vrot.slane %v1477_v41, 2  ;;  %v1589_v48 = vrot.slane %v1588_v4, 2 }
 0x272   : > { %v1726_v53 = vadd.f32 %v1725_v8, %v1724_v9  ;;  %v1727_v51 = vsel %vm1444_vm1, %v1440_v5, 0.0  ;;  %v1626_v58 = vrot.slane %v1625_v12, 2  ;;  %v1729_v62 = vsel %vm1444_vm1, %v1441_v14, 0.0 }
 0x273   : > { %v1443_v26 = vmul.f32 %v7445_v35, %v1187_v2  ;;  %v1442_v63 = vmul.f32 %v4100_v20, %v1183_v36  ;;  %v1516_v56 = vadd.f32 %v1515_v22, %v1514_v33  ;;  %v1663_v10 = vrot.slane %v1662_v46, 2 }
 0x274   : > { %v1728_v37 = vadd.f32 %v1727_v51, %v1726_v53  ;;  %v1553_v31 = vadd.f32 %v1552_v34, %v1551_v42  ;;  %v1700_v16 = vrot.slane %v1699_v23, 2  ;;  %v1479_v5 = vadd.f32 %v1478_v11, %v1477_v41 }
 0x275   : > { %v1731_v8 = vsel %vm1444_vm1, %v1442_v63, 0.0  ;;  %v1590_v53 = vadd.f32 %v1589_v48, %v1588_v4  ;;  %v1627_v24 = vadd.f32 %v1626_v58, %v1625_v12  ;;  %v1733_v15 = vsel %vm1444_vm1, %v1443_v26, 0.0 }
 0x276   : > { %v1730_v9 = vadd.f32 %v1729_v62, %v1728_v37  ;;  %v1517_v14 = vrot.slane %v1516_v56, 1  ;;  %v1664_v6 = vadd.f32 %v1663_v10, %v1662_v46  ;;  %v1554_v2 = vrot.slane %v1553_v31, 1 }
 0x277   : > { %v1701_v35 = vadd.f32 %v1700_v16, %v1699_v23  ;;  %v1480_v54 = vrot.slane %v1479_v5, 1  ;;  %v1591_v36 = vrot.slane %v1590_v53, 1  ;;  %v1628_v22 = vrot.slane %v1627_v24, 1 }
 0x278   : > { %v1732_v51 = vadd.f32 %v1731_v8, %v1730_v9  ;;  %v1518_v37 = vadd.f32 %v1517_v14, %v1516_v56  ;;  %v1665_v42 = vrot.slane %v1664_v6, 1  ;;  %v5686_v62 = vadd.f32 %v1554_v2, %v1553_v31  ;;  %v7676_v2 = vld [vmem:[#allocation12_spill] sm:$0xff] }
 0x279   : > { %v1702_v41 = vrot.slane %v1701_v35, 1  ;;  %v1481_v4 = vadd.f32 %v1480_v54, %v1479_v5  ;;  %v5688_v12 = vadd.f32 %v1591_v36, %v1590_v53  ;;  %v5690_v46 = vadd.f32 %v1628_v22, %v1627_v24  ;;  %v7678_v22 = vld [vmem:[#allocation11_spill] sm:$0xff] }
 0x27a   : > { %v1734_v32 = vadd.f32 %v1733_v15, %v1732_v51  ;;  %v5692_v15 = vadd.f32 %v1665_v42, %v1664_v6  ;;  %v7675_v51 = vld [vmem:[#allocation6_spill] sm:$0xff]  ;;  %v7677_v36 = vunpack.c.l.bf16 %v7676_v2  ;;  %v7679_v42 = vunpack.c.l.bf16 %v7678_v22 }
 0x27b   : > { %v1750_v48 = vsel %vm1749_vm2, %v1518_v37, %v1481_v4  ;;  %v5695_v58 = vadd.f32 %v1702_v41, %v1701_v35 }
 0x27c   : > { %v1735_v33 = vrot.slane %v1734_v32, 4 }
 0x27e   : > { %v1736_v34 = vadd.f32 %v1735_v33, %v1734_v32  ;;  %v1752_v32 = vsel %vm7453_vm3, %v5686_v62, %v1750_v48 }
 0x27f   : > { %v1754_v26 = vsel %vm7452_vm4, %v5688_v12, %v1752_v32 }
 0x280   : > { %v1737_v11 = vrot.slane %v1736_v34, 2  ;;  %v1756_v24 = vsel %vm7451_vm5, %v5690_v46, %v1754_v26 }
 0x281   : > { %v1758_v63 = vsel %vm7450_vm6, %v5692_v15, %v1756_v24 }
 0x282   : > { %v1738_v23 = vadd.f32 %v1737_v11, %v1736_v34  ;;  %v1760_v35 = vsel %vm7449_vm7, %v5695_v58, %v1758_v63  ;;  %v7683_v63 = vld [vmem:[#allocation25_spill] sm:$0xff] }
 0x284   : > { %v1739_v54 = vrot.slane %v1738_v23, 1 }
 0x286   : > { %v5703_v6 = vadd.f32 %v1739_v54, %v1738_v23  ;;  %v7680_v23 = vld [vmem:[#allocation19_spill] sm:$0xff]  ;;  %v7682_v54 = vunpack.c.h.bf16 %v7678_v22 }
 0x287   : > { %v7681_v48 = vunpack.c.l.bf16 %v7680_v23  ;;  %v7688_v22 = vunpack.c.h.bf16 %v7680_v23 }
 0x288   : > { %v1762_v56 = vsel %vm7448_vm8, %v5703_v6, %v1760_v35  ;;  %v7684_v35 = vunpack.c.l.bf16 %v7683_v63 }
 0x289   : > { %v1764_v10 = vsel %vm1444_vm1, %v1762_v56, -inf }
 0x28a   : > { %1765 = vmax.xlane.f32.xlu0 %v1764_v10  ;;  %v7685_v10 = vunpack.c.h.bf16 %v7676_v2  ;;  %v7689_v2 = vld [vmem:[#allocation30_spill] sm:$0xff] }
 0x313   : > { %v5712_v9 = vpop.xlane.xlu0 %1765 }
 0x314   : > { %v1783_v31 = vsub.f32 %v1481_v4, %v5712_v9  ;;  %v1768_v8 = vrot.slane %v5712_v9, 1 }
 0x316   : > { %v1791_v16 = vmul.f32 1.442695, %v1783_v31  ;;  %v1784_v53 = vsub.f32 %v1518_v37, %v1768_v8 }
 0x318   : > { %4261 = vpow2.f32 %v1791_v16  ;;  %v1793_v41 = vmul.f32 1.442695, %v1784_v53  ;;  %v7686_v53 = vld [vmem:[#allocation29_spill] sm:$0xff] }
 0x31a   : > { %4263 = vpow2.f32 %v1793_v41 }
 0x325   : > { %v5716_v5 = vpop.eup %4261 }
 0x326   : > { %v1836_v14 = vrot.slane %v5716_v5, %v7675_v51 }
 0x328   : > { %v1867_v33 = vmul.f32 %v7677_v36, %v1836_v14  ;;  %v1865_v34 = vmul.f32 %v7679_v42, %v1836_v14  ;;  %v1869_v32 = vmul.f32 %v7681_v48, %v1836_v14  ;;  %v1866_v37 = vmul.f32 %v7682_v54, %v1836_v14  ;;  %v5748_v54 = vpop.eup %4263 }
 0x329   : > { %v1871_v56 = vmul.f32 %v7684_v35, %v1836_v14  ;;  %v1868_v31 = vmul.f32 %v7685_v10, %v1836_v14  ;;  %v7687_v36 = vunpack.c.l.bf16 %v7686_v53  ;;  %v1870_v42 = vmul.f32 %v7688_v22, %v1836_v14 }
 0x32a   : > { %v1999_v11 = vsel %vm1444_vm1, %v1867_v33, 0.0  ;;  %v1993_v4 = vsel %vm1444_vm1, %v1865_v34, 0.0  ;;  %v2005_v26 = vsel %vm1444_vm1, %v1869_v32, 0.0  ;;  %v1996_v24 = vsel %vm1444_vm1, %v1866_v37, 0.0 }
 0x32b   : > { %2000 = vadd.xlane.f32.xlu1 %v1999_v11  ;;  %1994 = vadd.xlane.f32.xlu0 %v1993_v4  ;;  %v2011_v16 = vsel %vm1444_vm1, %v1871_v56, 0.0  ;;  %v2002_v8 = vsel %vm1444_vm1, %v1868_v31, 0.0  ;;  %v1873_v33 = vmul.f32 %v7687_v36, %v1836_v14  ;;  %v2008_v41 = vsel %vm1444_vm1, %v1870_v42, 0.0 }
 0x32c   : > { %v7690_v11 = vunpack.c.l.bf16 %v7689_v2  ;;  %v7691_v48 = vunpack.c.h.bf16 %v7683_v63  ;;  %v7694_v56 = vunpack.c.h.bf16 %v7686_v53  ;;  %v5758_v63 = vrot.slane %v5748_v54, %v7675_v51 }
 0x32d   : > { %v2017_v34 = vsel %vm1444_vm1, %v1873_v33, 0.0  ;;  %v7697_v22 = vunpack.c.h.bf16 %v7689_v2  ;;  %v1769_v53 = vrot.slane %v5712_v9, 2 }
 0x32e   : > { %v1875_v4 = vmul.f32 %v7690_v11, %v1836_v14  ;;  %v1872_v32 = vmul.f32 %v7691_v48, %v1836_v14  ;;  %v1874_v10 = vmul.f32 %v7694_v56, %v1836_v14  ;;  %v7699_v48 = vld [vmem:[#allocation15_spill] sm:$0xff] }
 0x32f   : > { %2006 = vadd.xlane.f32.xlu1 %v2005_v26  ;;  %1997 = vadd.xlane.f32.xlu0 %v1996_v24  ;;  %v7692_v26 = vld [vmem:[#allocation31_spill] sm:$0xff]  ;;  %v1876_v42 = vmul.f32 %v7697_v22, %v1836_v14  ;;  %v1785_v2 = vsub.f32 %v5686_v62, %v1769_v53  ;;  %v7704_v62 = vunpack.c.h.bf16 %v7699_v48 }
 0x330   : > { %v2023_v37 = vsel %vm1444_vm1, %v1875_v4, 0.0  ;;  %v2014_v23 = vsel %vm1444_vm1, %v1872_v32, 0.0  ;;  %v7693_v24 = vunpack.c.l.bf16 %v7692_v26  ;;  %v7698_v11 = vunpack.c.h.bf16 %v7692_v26 }
 0x331   : > { %v7700_v32 = vunpack.c.l.bf16 %v7699_v48  ;;  %v1882_v22 = vmul.f32 %v7704_v62, %v5758_v63 }
 0x332   : > { %v1877_v35 = vmul.f32 %v7693_v24, %v1836_v14  ;;  %v1878_v4 = vmul.f32 %v7698_v11, %v1836_v14 }
 0x333   : > { %2012 = vadd.xlane.f32.xlu1 %v2011_v16  ;;  %2003 = vadd.xlane.f32.xlu0 %v2002_v8  ;;  %v2020_v16 = vsel %vm1444_vm1, %v1874_v10, 0.0  ;;  %v7695_v8 = vld [vmem:[#allocation35_spill] sm:$0xff]  ;;  %v7702_v10 = vld [vmem:[#allocation16_spill] sm:$0xff] }
 0x334   : > { %v2029_v31 = vsel %vm1444_vm1, %v1877_v35, 0.0  ;;  %v7696_v36 = vunpack.c.l.bf16 %v7695_v8  ;;  %v7701_v35 = vunpack.c.h.bf16 %v7695_v8 }
 0x336   : > { %v1879_v33 = vmul.f32 %v7696_v36, %v1836_v14  ;;  %v1880_v56 = vmul.f32 %v7701_v35, %v1836_v14  ;;  %v1770_v14 = vrot.slane %v5712_v9, 3 }
 0x337   : > { %2018 = vadd.xlane.f32.xlu1 %v2017_v34  ;;  %2009 = vadd.xlane.f32.xlu0 %v2008_v41  ;;  %v2026_v41 = vsel %vm1444_vm1, %v1876_v42, 0.0  ;;  %v7705_v42 = vld [vmem:[#allocation22_spill] sm:$0xff] }
 0x338   : > { %v2035_v34 = vsel %vm1444_vm1, %v1879_v33, 0.0  ;;  %v2038_v36 = vsel %vm1444_vm1, %v1880_v56, 0.0  ;;  %v7706_v53 = vunpack.c.l.bf16 %v7705_v42  ;;  %v1786_v35 = vsub.f32 %v5688_v12, %v1770_v14 }
 0x33a   : > { %v1885_v8 = vmul.f32 %v7706_v53, %v5758_v63  ;;  %v1797_v53 = vmul.f32 1.442695, %v1786_v35 }
 0x33b   : > { %2024 = vadd.xlane.f32.xlu1 %v2023_v37  ;;  %2015 = vadd.xlane.f32.xlu0 %v2014_v23  ;;  %v1881_v37 = vmul.f32 %v7700_v32, %v5758_v63  ;;  %v2032_v23 = vsel %vm1444_vm1, %v1878_v4, 0.0  ;;  %v7707_v4 = vunpack.c.h.bf16 %v7702_v10  ;;  %v7708_v32 = vld [vmem:[#allocation28_spill] sm:$0xff] }
 0x33c   : > { %v2053_v11 = vsel %vm1444_vm1, %v1885_v8, 0.0 }
 0x33d   : > { %v2041_v24 = vsel %vm1444_vm1, %v1881_v37, 0.0  ;;  %v1884_v48 = vmul.f32 %v7707_v4, %v5758_v63  ;;  %v7709_v37 = vunpack.c.l.bf16 %v7708_v32 }
 0x33f   : > { %2030 = vadd.xlane.f32.xlu1 %v2029_v31  ;;  %2021 = vadd.xlane.f32.xlu0 %v2020_v16  ;;  %v7703_v31 = vunpack.c.l.bf16 %v7702_v10  ;;  %v1795_v16 = vmul.f32 1.442695, %v1785_v2  ;;  %v1887_v2 = vmul.f32 %v7709_v37, %v5758_v63  ;;  %v7710_v10 = vunpack.c.h.bf16 %v7705_v42 }
 0x340   : > { %v7713_v42 = vunpack.c.h.bf16 %v7708_v32 }
 0x341   : > { %v1883_v26 = vmul.f32 %v7703_v31, %v5758_v63  ;;  %4265 = vpow2.f32 %v1795_v16  ;;  %v2050_v31 = vsel %vm1444_vm1, %v1884_v48, 0.0  ;;  %v1886_v16 = vmul.f32 %v7710_v10, %v5758_v63 }
 0x342   : > { %4267 = vpow2.f32 %v1797_v53 }
 0x343   : > { %2036 = vadd.xlane.f32.xlu1 %v2035_v34  ;;  %2027 = vadd.xlane.f32.xlu0 %v2026_v41  ;;  %v2047_v33 = vsel %vm1444_vm1, %v1883_v26, 0.0  ;;  %v1771_v34 = vrot.slane %v5712_v9, 4  ;;  %v2044_v41 = vsel %vm1444_vm1, %v1882_v22, 0.0  ;;  %v2059_v26 = vsel %vm1444_vm1, %v1887_v2, 0.0 }
 0x344   : > { %v2056_v8 = vsel %vm1444_vm1, %v1886_v16, 0.0 }
 0x345   : > { %v1787_v56 = vsub.f32 %v5690_v46, %v1771_v34  ;;  %v1888_v34 = vmul.f32 %v7713_v42, %v5758_v63 }
 0x347   : > { %2033 = vadd.xlane.f32.xlu0 %v2032_v23  ;;  %2042 = vadd.xlane.f32.xlu1 %v2041_v24  ;;  %v1772_v23 = vrot.slane %v5712_v9, 5  ;;  %v1773_v24 = vrot.slane %v5712_v9, 6  ;;  %v1799_v46 = vmul.f32 1.442695, %v1787_v56  ;;  %v2062_v37 = vsel %vm1444_vm1, %v1888_v34, 0.0 }
 0x349   : > { %v1788_v22 = vsub.f32 %v5692_v15, %v1772_v23  ;;  %v1789_v12 = vsub.f32 %v5695_v58, %v1773_v24  ;;  %4269 = vpow2.f32 %v1799_v46  ;;  %v7717_v24 = vld [vmem:[#allocation37_spill] sm:$0xff] }
 0x34a   : > { %v7718_v35 = vunpack.c.l.bf16 %v7717_v24  ;;  %v7722_v46 = vunpack.c.h.bf16 %v7717_v24 }
 0x34b   : > { %2039 = vadd.xlane.f32.xlu0 %v2038_v36  ;;  %2048 = vadd.xlane.f32.xlu1 %v2047_v33  ;;  %v7711_v36 = vld [vmem:[#allocation32_spill] sm:$0xff]  ;;  %v1801_v48 = vmul.f32 1.442695, %v1788_v22  ;;  %v1803_v15 = vmul.f32 1.442695, %v1789_v12 }
 0x34c   : > { %v7712_v33 = vunpack.c.l.bf16 %v7711_v36  ;;  %v7716_v23 = vunpack.c.h.bf16 %v7711_v36  ;;  %v1893_v56 = vmul.f32 %v7718_v35, %v5758_v63 }
 0x34d   : > { %4271 = vpow2.f32 %v1801_v48 }
 0x34e   : > { %v1889_v62 = vmul.f32 %v7712_v33, %v5758_v63  ;;  %v4266_v58 = vpop.eup %4265  ;;  %v1890_v32 = vmul.f32 %v7716_v23, %v5758_v63  ;;  %4273 = vpow2.f32 %v1803_v15  ;;  %v2077_v10 = vsel %vm1444_vm1, %v1893_v56, 0.0  ;;  %v7720_v33 = vld [vmem:[#allocation38_spill] sm:$0xff] }
 0x34f   : > { %2045 = vadd.xlane.f32.xlu0 %v2044_v41  ;;  %2054 = vadd.xlane.f32.xlu1 %v2053_v11  ;;  %v7714_v41 = vld [vmem:[#allocation36_spill] sm:$0xff]  ;;  %v7726_v23 = vld [vmem:[#allocation42_spill] sm:$0xff]  ;;  %v1817_v56 = vrot.slane %v4266_v58, 6 }
 0x350   : > { %v2065_v14 = vsel %vm1444_vm1, %v1889_v62, 0.0  ;;  %v7715_v11 = vunpack.c.l.bf16 %v7714_v41  ;;  %v7719_v16 = vunpack.c.h.bf16 %v7714_v41  ;;  %v7721_v62 = vunpack.c.l.bf16 %v7720_v33 }
 0x351   : > { %v1815_v41 = vrot.slane %v5748_v54, 7 }
 0x352   : > { %v1891_v4 = vmul.f32 %v7715_v11, %v5758_v63  ;;  %v1892_v36 = vmul.f32 %v7719_v16, %v5758_v63  ;;  %v1895_v22 = vmul.f32 %v7721_v62, %v5758_v63  ;;  %v4268_v11 = vpop.eup %4267 }
 0x353   : > { %2051 = vadd.xlane.f32.xlu0 %v2050_v31  ;;  %2060 = vadd.xlane.f32.xlu1 %v2059_v26  ;;  %v5831_v31 = vrot.slane %v4266_v58, %v7675_v51  ;;  %v2068_v26 = vsel %vm1444_vm1, %v1890_v32, 0.0  ;;  %v7727_v32 = vunpack.c.l.bf16 %v7726_v23  ;;  %v1816_v54 = vsel %vm1749_vm2, %v1815_v41, %v5716_v5 }
 0x354   : > { %v2071_v2 = vsel %vm1444_vm1, %v1891_v4, 0.0  ;;  %v2074_v12 = vsel %vm1444_vm1, %v1892_v36, 0.0  ;;  %v2083_v53 = vsel %vm1444_vm1, %v1895_v22, 0.0  ;;  %v1819_v62 = vrot.slane %v4268_v11, 5 }
 0x355   : > { %v1899_v24 = vmul.f32 %v7727_v32, %v5831_v31 }
 0x356   : > { %v5850_v4 = vpop.eup %4269 }
 0x357   : > { %2057 = vadd.xlane.f32.xlu0 %v2056_v8  ;;  %2066 = vadd.xlane.f32.xlu1 %v2065_v14  ;;  %v1894_v8 = vmul.f32 %v7722_v46, %v5758_v63  ;;  %v7723_v14 = vld [vmem:[#allocation39_spill] sm:$0xff]  ;;  %v1821_v5 = vrot.slane %v5850_v4, 4 }
 0x358   : > { %v7724_v42 = vunpack.c.l.bf16 %v7723_v14 }
 0x359   : > { %v2080_v48 = vsel %vm1444_vm1, %v1894_v8, 0.0 }
 0x35a   : > { %v1897_v34 = vmul.f32 %v7724_v42, %v5831_v31  ;;  %v5860_v35 = vpop.eup %4271  ;;  %v7731_v42 = vunpack.c.h.bf16 %v7726_v23 }
 0x35b   : > { %2063 = vadd.xlane.f32.xlu0 %v2062_v37  ;;  %2072 = vadd.xlane.f32.xlu1 %v2071_v2  ;;  %v7725_v37 = vunpack.c.h.bf16 %v7720_v33  ;;  %v1823_v46 = vrot.slane %v5860_v35, 3 }
 0x35c   : > { %v2089_v15 = vsel %vm1444_vm1, %v1897_v34, 0.0  ;;  %v1900_v34 = vmul.f32 %v7731_v42, %v5831_v31  ;;  %v7740_v42 = vunpack.c.l.bf16 %v5007_v25 }
 0x35d   : > { %v1896_v2 = vmul.f32 %v7725_v37, %v5758_v63  ;;  %v7729_v63 = vld [vmem:[#allocation43_spill] sm:$0xff]  ;;  %v7732_v37 = vld [vmem:[#allocation44_spill] sm:$0xff] }
 0x35e   : > { %v7730_v36 = vunpack.c.l.bf16 %v7729_v63 }
 0x35f   : > { %2069 = vadd.xlane.f32.xlu0 %v2068_v26  ;;  %2078 = vadd.xlane.f32.xlu1 %v2077_v10  ;;  %v5864_v26 = vpop.eup %4273  ;;  %v7728_v10 = vunpack.c.h.bf16 %v7723_v14  ;;  %v2086_v22 = vsel %vm1444_vm1, %v1896_v2, 0.0  ;;  %v7733_v2 = vunpack.c.l.bf16 %v7732_v37 }
 0x360   : > { %v1901_v33 = vmul.f32 %v7730_v36, %v5831_v31  ;;  %v1825_v14 = vrot.slane %v5864_v26, 2 }
 0x361   : > { %v1898_v16 = vmul.f32 %v7728_v10, %v5831_v31  ;;  %v1903_v32 = vmul.f32 %v7733_v2, %v5831_v31 }
 0x363   : > { %2075 = vadd.xlane.f32.xlu0 %v2074_v12  ;;  %2084 = vadd.xlane.f32.xlu1 %v2083_v53  ;;  %v2095_v12 = vsel %vm1444_vm1, %v1899_v24, 0.0  ;;  %v1818_v53 = vsel %vm7453_vm3, %v1817_v56, %v1816_v54  ;;  %v2098_v54 = vsel %vm1444_vm1, %v1900_v34, 0.0  ;;  %v2107_v23 = vsel %vm1444_vm1, %v1903_v32, 0.0 }
 0x364   : > { %v1820_v58 = vsel %vm7452_vm4, %v1819_v62, %v1818_v53  ;;  %v7734_v56 = vunpack.c.h.bf16 %v7729_v63  ;;  %v7737_v53 = vld [vmem:[#allocation45_spill] sm:$0xff]  ;;  %v1909_v34 = vmul.f32 %v7740_v42, %v5831_v31  ;;  %vm3161_vm4 = vcmask 982912  }
 0x365   : > { %v1822_v8 = vsel %vm7451_vm5, %v1821_v5, %v1820_v58  ;;  %v7738_v5 = vunpack.c.l.bf16 %v7737_v53  ;;  %vm7454_vm5 = vcmask 917312   ;;  %vm3168_vm3 = vcmask 1048512  }
 0x366   : > { %v1824_v41 = vsel %vm7450_vm6, %v1823_v46, %v1822_v8  ;;  %v1902_v10 = vmul.f32 %v7734_v56, %v5831_v31  ;;  %v7739_v8 = vunpack.c.h.bf16 %v4991_v30  ;;  %vm3147_vm6 = vcmask 851712  }
 0x367   : > { %2081 = vadd.xlane.f32.xlu0 %v2080_v48  ;;  %2090 = vadd.xlane.f32.xlu1 %v2089_v15  ;;  %v2092_v48 = vsel %vm1444_vm1, %v1898_v16, 0.0  ;;  %v2101_v15 = vsel %vm1444_vm1, %v1901_v33, 0.0  ;;  %v5890_v24 = vsel %vm7449_vm7, %v1825_v14, %v1824_v41  ;;  %v7735_v16 = vunpack.c.l.bf16 %v4991_v30 }
 0x368   : > { %v2104_v33 = vsel %vm1444_vm1, %v1902_v10, 0.0  ;;  %v1907_v58 = vmul.f32 %v7738_v5, %v5831_v31  ;;  %v1906_v14 = vmul.f32 %v7739_v8, %v5831_v31  ;;  %v5917_v41 = vrot.slane %v4268_v11, %v7675_v51  ;;  %v7744_v10 = vld [vmem:[#allocation48_spill] sm:$0xff] }
 0x369   : > { %v1905_v36 = vmul.f32 %v7735_v16, %v5831_v31  ;;  %v7742_v30 = vunpack.c.l.bf16 %v5016_v17  ;;  %v7743_v11 = vunpack.c.h.bf16 %v5007_v25  ;;  %v7745_v16 = vunpack.c.l.bf16 %v7744_v10 }
 0x36a   : > { %v2119_v46 = vsel %vm1444_vm1, %v1907_v58, 0.0  ;;  %vm3140_vm7 = vcmask 786112  }
 0x36b   : > { %2087 = vadd.xlane.f32.xlu0 %v2086_v22  ;;  %2096 = vadd.xlane.f32.xlu1 %v2095_v12  ;;  %v2113_v62 = vsel %vm1444_vm1, %v1905_v36, 0.0  ;;  %v7736_v22 = vunpack.c.h.bf16 %v7732_v37  ;;  %v7741_v37 = vunpack.c.h.bf16 %v7737_v53  ;;  %v1911_v32 = vmul.f32 %v7742_v30, %v5831_v31  ;;  %v7747_v53 = vld [vmem:[#allocation51_spill] sm:$0xff] }
 0x36c   : > { %v1910_v56 = vmul.f32 %v7743_v11, %v5831_v31  ;;  %v1913_v36 = vmul.f32 %v7745_v16, %v5917_v41  ;;  %v7748_v5 = vunpack.c.l.bf16 %v7747_v53  ;;  %v7755_v11 = vunpack.c.l.bf16 %v5065_v38 }
 0x36d   : > { %v1904_v12 = vmul.f32 %v7736_v22, %v5831_v31  ;;  %v1908_v2 = vmul.f32 %v7741_v37, %v5831_v31  ;;  %v7746_v22 = vunpack.c.h.bf16 %v5016_v17  ;;  %v7753_v37 = vunpack.c.l.bf16 %v5058_v18 }
 0x36e   : > { %v1915_v58 = vmul.f32 %v7748_v5, %v5917_v41  ;;  %v7758_v5 = vunpack.c.h.bf16 %v5065_v38  ;;  %v7761_v38 = vunpack.c.l.bf16 %v7647_v0 }
 0x36f   : > { %2093 = vadd.xlane.f32.xlu0 %v2092_v48  ;;  %2102 = vadd.xlane.f32.xlu1 %v2101_v15  ;;  %v2110_v63 = vsel %vm1444_vm1, %v1904_v12, 0.0  ;;  %v2116_v48 = vsel %vm1444_vm1, %v1906_v14, 0.0  ;;  %v2125_v15 = vsel %vm1444_vm1, %v1909_v34, 0.0  ;;  %v1912_v12 = vmul.f32 %v7746_v22, %v5831_v31  ;;  %v7750_v14 = vld [vmem:[#allocation52_spill] sm:$0xff] }
 0x370   : > { %v7751_v42 = vunpack.c.l.bf16 %v7750_v14 }
 0x371   : > { %v2134_v25 = vsel %vm1444_vm1, %v1912_v12, 0.0 }
 0x372   : > { %v1917_v34 = vmul.f32 %v7751_v42, %v5917_v41 }
 0x373   : > { %2099 = vadd.xlane.f32.xlu0 %v2098_v54  ;;  %2108 = vadd.xlane.f32.xlu1 %v2107_v23  ;;  %v2122_v54 = vsel %vm1444_vm1, %v1908_v2, 0.0  ;;  %v2131_v23 = vsel %vm1444_vm1, %v1911_v32, 0.0  ;;  %v1919_v2 = vmul.f32 %v7753_v37, %v5917_v41 }
 0x374   : > { %v2149_v31 = vsel %vm1444_vm1, %v1917_v34, 0.0  ;;  %v1927_v34 = vmul.f32 %v7761_v38, %v5917_v41 }
 0x375   : > { %v2155_v32 = vsel %vm1444_vm1, %v1919_v2, 0.0 }
 0x377   : > { %2105 = vadd.xlane.f32.xlu0 %v2104_v33  ;;  %2114 = vadd.xlane.f32.xlu1 %v2113_v62  ;;  %v2128_v33 = vsel %vm1444_vm1, %v1910_v56, 0.0  ;;  %v2137_v62 = vsel %vm1444_vm1, %v1913_v36, 0.0  ;;  %v1921_v56 = vmul.f32 %v7755_v11, %v5917_v41  ;;  %v7756_v36 = vunpack.c.h.bf16 %v5058_v18 }
 0x378   : > { %v5985_v18 = vrot.slane %v5850_v4, %v7675_v51  ;;  %v7762_v4 = vunpack.c.h.bf16 %v5087_v43 }
 0x379   : > { %v2161_v16 = vsel %vm1444_vm1, %v1921_v56, 0.0 }
 0x37b   : > { %2111 = vadd.xlane.f32.xlu0 %v2110_v63  ;;  %2120 = vadd.xlane.f32.xlu1 %v2119_v46  ;;  %v2143_v63 = vsel %vm1444_vm1, %v1915_v58, 0.0  ;;  %v7749_v46 = vunpack.c.h.bf16 %v7744_v10  ;;  %v1922_v58 = vmul.f32 %v7758_v5, %v5917_v41 }
 0x37d   : > { %v1914_v8 = vmul.f32 %v7749_v46, %v5917_v41  ;;  %v2164_v46 = vsel %vm1444_vm1, %v1922_v58, 0.0 }
 0x37f   : > { %2117 = vadd.xlane.f32.xlu0 %v2116_v48  ;;  %2126 = vadd.xlane.f32.xlu1 %v2125_v15  ;;  %v2140_v17 = vsel %vm1444_vm1, %v1914_v8, 0.0  ;;  %v7752_v48 = vunpack.c.h.bf16 %v7747_v53 }
 0x381   : > { %v1916_v15 = vmul.f32 %v7752_v48, %v5917_v41  ;;  %v1926_v48 = vmul.f32 %v7762_v4, %v5917_v41 }
 0x383   : > { %2123 = vadd.xlane.f32.xlu0 %v2122_v54  ;;  %2132 = vadd.xlane.f32.xlu1 %v2131_v23  ;;  %v2146_v30 = vsel %vm1444_vm1, %v1916_v15, 0.0  ;;  %v7754_v54 = vunpack.c.h.bf16 %v7750_v14  ;;  %v7760_v14 = vunpack.c.h.bf16 %v7617_v1  ;;  %v7763_v15 = vld [vmem:[#allocation59_spill] sm:$0xff] }
 0x384   : > { %v7764_v37 = vunpack.c.l.bf16 %v7763_v15 }
 0x385   : > { %v1918_v23 = vmul.f32 %v7754_v54, %v5917_v41  ;;  %v1924_v42 = vmul.f32 %v7760_v14, %v5917_v41 }
 0x386   : > { %v1929_v2 = vmul.f32 %v7764_v37, %v5985_v18 }
 0x387   : > { %2129 = vadd.xlane.f32.xlu0 %v2128_v33  ;;  %2138 = vadd.xlane.f32.xlu1 %v2137_v62  ;;  %v2152_v10 = vsel %vm1444_vm1, %v1918_v23, 0.0  ;;  %v1920_v33 = vmul.f32 %v7756_v36, %v5917_v41  ;;  %v7757_v62 = vunpack.c.l.bf16 %v7617_v1  ;;  %v2176_v1 = vsel %vm1444_vm1, %v1926_v48, 0.0  ;;  %v7766_v23 = vld [vmem:[#allocation60_spill] sm:$0xff] }
 0x388   : > { %v7767_v11 = vunpack.c.l.bf16 %v7766_v23 }
 0x389   : > { %v1923_v22 = vmul.f32 %v7757_v62, %v5917_v41  ;;  %v2158_v12 = vsel %vm1444_vm1, %v1920_v33, 0.0  ;;  %v7769_v33 = vunpack.c.l.bf16 %v5129_v28 }
 0x38a   : > { %v1931_v56 = vmul.f32 %v7767_v11, %v5985_v18 }
 0x38b   : > { %2135 = vadd.xlane.f32.xlu0 %v2134_v25  ;;  %2144 = vadd.xlane.f32.xlu1 %v2143_v63  ;;  %v2167_v53 = vsel %vm1444_vm1, %v1923_v22, 0.0  ;;  %v7759_v25 = vunpack.c.l.bf16 %v5087_v43  ;;  %v1933_v62 = vmul.f32 %v7769_v33, %v5985_v18  ;;  %v7770_v22 = vunpack.c.h.bf16 %v7766_v23 }
 0x38c   : > { %v6061_v23 = vrot.slane %v5860_v35, %v7675_v51 }
 0x38d   : > { %v1925_v63 = vmul.f32 %v7759_v25, %v5917_v41 }
 0x38f   : > { %2141 = vadd.xlane.f32.xlu0 %v2140_v17  ;;  %2150 = vadd.xlane.f32.xlu1 %v2149_v31  ;;  %v2173_v8 = vsel %vm1444_vm1, %v1925_v63, 0.0  ;;  %v2170_v17 = vsel %vm1444_vm1, %v1924_v42, 0.0  ;;  %v2179_v31 = vsel %vm1444_vm1, %v1927_v34, 0.0  ;;  %v7772_v63 = vunpack.c.h.bf16 %v5129_v28 }
 0x390   : > { %v7775_v28 = vunpack.c.l.bf16 %v5153_v3 }
 0x392   : > { %v1939_v4 = vmul.f32 %v7775_v28, %v5985_v18 }
 0x393   : > { %2147 = vadd.xlane.f32.xlu0 %v2146_v30  ;;  %2156 = vadd.xlane.f32.xlu1 %v2155_v32  ;;  %v2185_v30 = vsel %vm1444_vm1, %v1929_v2, 0.0  ;;  %v7765_v32 = vunpack.c.h.bf16 %v7647_v0 }
 0x394   : > { %v2215_v2 = vsel %vm1444_vm1, %v1939_v4, 0.0 }
 0x395   : > { %v1928_v54 = vmul.f32 %v7765_v32, %v5917_v41  ;;  %v2197_v41 = vsel %vm1444_vm1, %v1933_v62, 0.0 }
 0x397   : > { %2153 = vadd.xlane.f32.xlu0 %v2152_v10  ;;  %2162 = vadd.xlane.f32.xlu1 %v2161_v16  ;;  %v2182_v43 = vsel %vm1444_vm1, %v1928_v54, 0.0  ;;  %v2191_v10 = vsel %vm1444_vm1, %v1931_v56, 0.0  ;;  %v7768_v16 = vunpack.c.h.bf16 %v7763_v15 }
 0x399   : > { %v1930_v36 = vmul.f32 %v7768_v16, %v5985_v18 }
 0x39b   : > { %2159 = vadd.xlane.f32.xlu0 %v2158_v12  ;;  %2168 = vadd.xlane.f32.xlu1 %v2167_v53  ;;  %v2188_v0 = vsel %vm1444_vm1, %v1930_v36, 0.0  ;;  %v1932_v12 = vmul.f32 %v7770_v22, %v5985_v18  ;;  %v7771_v53 = vunpack.c.l.bf16 %v5142_v21 }
 0x39d   : > { %v1935_v5 = vmul.f32 %v7771_v53, %v5985_v18  ;;  %v2194_v58 = vsel %vm1444_vm1, %v1932_v12, 0.0 }
 0x39f   : > { %2165 = vadd.xlane.f32.xlu0 %v2164_v46  ;;  %2174 = vadd.xlane.f32.xlu1 %v2173_v8  ;;  %v2203_v25 = vsel %vm1444_vm1, %v1935_v5, 0.0  ;;  %v1934_v46 = vmul.f32 %v7772_v63, %v5985_v18  ;;  %v7773_v8 = vunpack.c.l.bf16 %v5145_v45  ;;  %v7783_v63 = vunpack.c.h.bf16 %v7652_v57 }
 0x3a1   : > { %v1937_v14 = vmul.f32 %v7773_v8, %v5985_v18  ;;  %v2200_v38 = vsel %vm1444_vm1, %v1934_v46, 0.0  ;;  %v1944_v46 = vmul.f32 %v7783_v63, %v5985_v18 }
 0x3a3   : > { %2171 = vadd.xlane.f32.xlu0 %v2170_v17  ;;  %2180 = vadd.xlane.f32.xlu1 %v2179_v31  ;;  %v2209_v34 = vsel %vm1444_vm1, %v1937_v14, 0.0  ;;  %v7774_v17 = vunpack.c.h.bf16 %v5142_v21  ;;  %v7777_v21 = vunpack.c.l.bf16 %v7636_v52 }
 0x3a5   : > { %v1936_v31 = vmul.f32 %v7774_v17, %v5985_v18  ;;  %v1941_v32 = vmul.f32 %v7777_v21, %v5985_v18 }
 0x3a7   : > { %2177 = vadd.xlane.f32.xlu0 %v2176_v1  ;;  %2186 = vadd.xlane.f32.xlu1 %v2185_v30  ;;  %v2206_v37 = vsel %vm1444_vm1, %v1936_v31, 0.0  ;;  %v7776_v1 = vunpack.c.h.bf16 %v5145_v45  ;;  %v2221_v56 = vsel %vm1444_vm1, %v1941_v32, 0.0  ;;  %v7778_v45 = vunpack.c.h.bf16 %v5153_v3  ;;  %v7781_v3 = vld [vmem:[#allocation63_spill] sm:$0xff] }
 0x3a8   : > { %v7782_v22 = vunpack.c.l.bf16 %v7781_v3  ;;  %v7786_v31 = vunpack.c.h.bf16 %v7781_v3  ;;  %v7789_v32 = vunpack.c.l.bf16 %v5210_v19 }
 0x3a9   : > { %v1938_v30 = vmul.f32 %v7776_v1, %v5985_v18 }
 0x3aa   : > { %v1945_v12 = vmul.f32 %v7782_v22, %v6061_v23  ;;  %v1946_v28 = vmul.f32 %v7786_v31, %v6061_v23 }
 0x3ab   : > { %2183 = vadd.xlane.f32.xlu0 %v2182_v43  ;;  %2192 = vadd.xlane.f32.xlu1 %v2191_v10  ;;  %v2212_v11 = vsel %vm1444_vm1, %v1938_v30, 0.0  ;;  %v1940_v43 = vmul.f32 %v7778_v45, %v5985_v18  ;;  %v7779_v10 = vunpack.c.l.bf16 %v7652_v57  ;;  %v7787_v57 = vunpack.c.l.bf16 %v5199_v47 }
 0x3ad   : > { %v1943_v16 = vmul.f32 %v7779_v10, %v5985_v18  ;;  %v2218_v35 = vsel %vm1444_vm1, %v1940_v43, 0.0 }
 0x3af   : > { %2189 = vadd.xlane.f32.xlu0 %v2188_v0  ;;  %2198 = vadd.xlane.f32.xlu1 %v2197_v41  ;;  %v2227_v62 = vsel %vm1444_vm1, %v1943_v16, 0.0  ;;  %v7780_v0 = vunpack.c.h.bf16 %v7636_v52  ;;  %v7784_v52 = vld [vmem:[#allocation64_spill] sm:$0xff]  ;;  %v7790_v16 = vunpack.c.h.bf16 %v5199_v47  ;;  %v7793_v47 = vunpack.c.l.bf16 %v5223_v60 }
 0x3b0   : > { %v7785_v8 = vunpack.c.l.bf16 %v7784_v52  ;;  %v7788_v30 = vunpack.c.h.bf16 %v7784_v52 }
 0x3b1   : > { %v1942_v41 = vmul.f32 %v7780_v0, %v5985_v18  ;;  %v1949_v18 = vmul.f32 %v7787_v57, %v6061_v23 }
 0x3b2   : > { %v1947_v14 = vmul.f32 %v7785_v8, %v6061_v23  ;;  %v1948_v21 = vmul.f32 %v7788_v30, %v6061_v23  ;;  %v7797_v30 = vunpack.c.l.bf16 %v5249_v39 }
 0x3b3   : > { %2195 = vadd.xlane.f32.xlu0 %v2194_v58  ;;  %2204 = vadd.xlane.f32.xlu1 %v2203_v25  ;;  %v2224_v58 = vsel %vm1444_vm1, %v1942_v41, 0.0  ;;  %v2233_v25 = vsel %vm1444_vm1, %v1945_v12, 0.0  ;;  %v2245_v1 = vsel %vm1444_vm1, %v1949_v18, 0.0  ;;  %v7792_v12 = vunpack.c.h.bf16 %v5210_v19 }
 0x3b4   : > { %v6035_v42 = vpop.xlane.xlu1 %2000  ;;  %v6047_v15 = vpop.xlane.xlu0 %1994  ;;  %v2239_v17 = vsel %vm1444_vm1, %v1947_v14, 0.0  ;;  %v2242_v43 = vsel %vm1444_vm1, %v1948_v21, 0.0  ;;  %v7794_v14 = vunpack.c.h.bf16 %v5216_v7  ;;  %v7795_v19 = vunpack.c.l.bf16 %v5236_v49 }
 0x3b5   : > { %v1959_v21 = vmul.f32 %v7797_v30, %v6061_v23 }
 0x3b7   : > { %2201 = vadd.xlane.f32.xlu0 %v2200_v38  ;;  %2210 = vadd.xlane.f32.xlu1 %v2209_v34  ;;  %v2230_v34 = vsel %vm1444_vm1, %v1944_v46, 0.0 }
 0x3b8   : > { %v6045_v48 = vpop.xlane.xlu1 %2006  ;;  %v6071_v36 = vpop.xlane.xlu0 %1997 }
 0x3bb   : > { %2207 = vadd.xlane.f32.xlu0 %v2206_v37  ;;  %2216 = vadd.xlane.f32.xlu1 %v2215_v2  ;;  %v2236_v2 = vsel %vm1444_vm1, %v1946_v28, 0.0  ;;  %v6155_v28 = vrot.slane %v5864_v26, %v7675_v51  ;;  %v1774_v26 = vrot.slane %v5712_v9, 7 }
 0x3bc   : > { %v6057_v54 = vpop.xlane.xlu1 %2012  ;;  %v6085_v5 = vpop.xlane.xlu0 %2003 }
 0x3bd   : > { %v1790_v9 = vsub.f32 %v5703_v6, %v1774_v26 }
 0x3bf   : > { %2213 = vadd.xlane.f32.xlu0 %v2212_v11  ;;  %2222 = vadd.xlane.f32.xlu1 %v2221_v56  ;;  %v1951_v11 = vmul.f32 %v7789_v32, %v6061_v23 }
 0x3c0   : > { %v6073_v33 = vpop.xlane.xlu1 %2018  ;;  %v6105_v4 = vpop.xlane.xlu0 %2009 }
 0x3c1   : > { %v2251_v10 = vsel %vm1444_vm1, %v1951_v11, 0.0 }
 0x3c3   : > { %2219 = vadd.xlane.f32.xlu0 %v2218_v35  ;;  %2228 = vadd.xlane.f32.xlu1 %v2227_v62  ;;  %v1950_v35 = vmul.f32 %v7790_v16, %v6061_v23  ;;  %v7791_v62 = vunpack.c.l.bf16 %v5216_v7  ;;  %v7796_v7 = vunpack.c.h.bf16 %v5223_v60  ;;  %v7799_v60 = vunpack.c.l.bf16 %v5254_v50 }
 0x3c4   : > { %v6083_v53 = vpop.xlane.xlu1 %2024  ;;  %v6119_v45 = vpop.xlane.xlu0 %2015 }
 0x3c5   : > { %v1953_v0 = vmul.f32 %v7791_v62, %v6061_v23  ;;  %v2248_v3 = vsel %vm1444_vm1, %v1950_v35, 0.0  ;;  %v1961_v35 = vmul.f32 %v7799_v60, %v6155_v28 }
 0x3c7   : > { %2225 = vadd.xlane.f32.xlu0 %v2224_v58  ;;  %2234 = vadd.xlane.f32.xlu1 %v2233_v25  ;;  %v2257_v22 = vsel %vm1444_vm1, %v1953_v0, 0.0  ;;  %v1952_v58 = vmul.f32 %v7792_v12, %v6061_v23  ;;  %v1955_v25 = vmul.f32 %v7793_v47, %v6061_v23 }
 0x3c8   : > { %v6095_v38 = vpop.xlane.xlu1 %2030  ;;  %v6139_v63 = vpop.xlane.xlu0 %2021 }
 0x3c9   : > { %v2254_v52 = vsel %vm1444_vm1, %v1952_v58, 0.0  ;;  %v2263_v8 = vsel %vm1444_vm1, %v1955_v25, 0.0  ;;  %v7801_v58 = vunpack.c.l.bf16 %v5265_v55 }
 0x3cb   : > { %2231 = vadd.xlane.f32.xlu0 %v2230_v34  ;;  %2240 = vadd.xlane.f32.xlu1 %v2239_v17  ;;  %v1954_v34 = vmul.f32 %v7794_v14, %v6061_v23  ;;  %v1957_v17 = vmul.f32 %v7795_v19, %v6061_v23  ;;  %v1963_v47 = vmul.f32 %v7801_v58, %v6155_v28 }
 0x3cc   : > { %v6107_v37 = vpop.xlane.xlu1 %2036  ;;  %v6157_v57 = vpop.xlane.xlu0 %2027 }
 0x3cd   : > { %v2260_v18 = vsel %vm1444_vm1, %v1954_v34, 0.0  ;;  %v2287_v14 = vsel %vm1444_vm1, %v1963_v47, 0.0  ;;  %v7802_v34 = vunpack.c.h.bf16 %v5254_v50  ;;  %v7806_v50 = vld [vmem:[#allocation67_spill] sm:$0xff] }
 0x3ce   : > { %v7811_v47 = vunpack.c.h.bf16 %v7806_v50 }
 0x3cf   : > { %2237 = vadd.xlane.f32.xlu0 %v2236_v2  ;;  %2246 = vadd.xlane.f32.xlu1 %v2245_v1  ;;  %v2269_v2 = vsel %vm1444_vm1, %v1957_v17, 0.0  ;;  %v1956_v1 = vmul.f32 %v7796_v7, %v6061_v23 }
 0x3d0   : > { %v6117_v56 = vpop.xlane.xlu1 %2042  ;;  %v6178_v62 = vpop.xlane.xlu0 %2033 }
 0x3d1   : > { %v2266_v11 = vsel %vm1444_vm1, %v1956_v1, 0.0  ;;  %v7805_v1 = vunpack.c.h.bf16 %v5265_v55  ;;  %v7809_v55 = vld [vmem:[#allocation68_spill] sm:$0xff] }
 0x3d3   : > { %2243 = vadd.xlane.f32.xlu0 %v2242_v43  ;;  %2252 = vadd.xlane.f32.xlu1 %v2251_v10  ;;  %v2275_v43 = vsel %vm1444_vm1, %v1959_v21, 0.0  ;;  %v7798_v10 = vunpack.c.h.bf16 %v5236_v49  ;;  %v7800_v49 = vunpack.c.h.bf16 %v5249_v39  ;;  %v1962_v39 = vmul.f32 %v7802_v34, %v6155_v28 }
 0x3d4   : > { %v6129_v41 = vpop.xlane.xlu1 %2048  ;;  %v1964_v30 = vmul.f32 %v7805_v1, %v6155_v28  ;;  %v7807_v21 = vunpack.c.l.bf16 %v7806_v50  ;;  %v7815_v1 = vunpack.c.l.bf16 %v5366_v59 }
 0x3d5   : > { %v1958_v16 = vmul.f32 %v7798_v10, %v6061_v23  ;;  %v1960_v12 = vmul.f32 %v7800_v49, %v6061_v23  ;;  %v7803_v23 = vld [vmem:[#allocation66_spill] sm:$0xff] }
 0x3d6   : > { %v7804_v19 = vunpack.c.l.bf16 %v7803_v23  ;;  %v1967_v26 = vmul.f32 %v7807_v21, %v6155_v28  ;;  %v2290_v10 = vsel %vm1444_vm1, %v1964_v30, 0.0  ;;  %v7808_v60 = vunpack.c.h.bf16 %v7803_v23 }
 0x3d7   : > { %2249 = vadd.xlane.f32.xlu0 %v2248_v3  ;;  %2258 = vadd.xlane.f32.xlu1 %v2257_v22  ;;  %v2272_v3 = vsel %vm1444_vm1, %v1958_v16, 0.0  ;;  %v2281_v22 = vsel %vm1444_vm1, %v1961_v35, 0.0  ;;  %v2278_v6 = vsel %vm1444_vm1, %v1960_v12, 0.0  ;;  %v1973_v30 = vmul.f32 %v7815_v1, %v6155_v28 }
 0x3d8   : > { %v6141_v46 = vpop.xlane.xlu1 %2054  ;;  %v1965_v17 = vmul.f32 %v7804_v19, %v6155_v28  ;;  %v2299_v16 = vsel %vm1444_vm1, %v1967_v26, 0.0  ;;  %v1966_v35 = vmul.f32 %v7808_v60, %v6155_v28  ;;  %v7821_v1 = vunpack.c.h.bf16 %v5469_v13 }
 0x3da   : > { %v2293_v7 = vsel %vm1444_vm1, %v1965_v17, 0.0  ;;  %v2296_v12 = vsel %vm1444_vm1, %v1966_v35, 0.0 }
 0x3db   : > { %2255 = vadd.xlane.f32.xlu0 %v2254_v52  ;;  %2264 = vadd.xlane.f32.xlu1 %v2263_v8  ;;  %v1805_v52 = vmul.f32 1.442695, %v1790_v9  ;;  %v6193_v8 = vpop.xlane.xlu0 %2039  ;;  %v7810_v9 = vunpack.c.l.bf16 %v7809_v55 }
 0x3dc   : > { %v6151_v31 = vpop.xlane.xlu1 %2060 }
 0x3dd   : > { %4275 = vpow2.f32 %v1805_v52  ;;  %v1968_v52 = vmul.f32 %v7811_v47, %v6155_v28 }
 0x3df   : > { %2261 = vadd.xlane.f32.xlu0 %v2260_v18  ;;  %2270 = vadd.xlane.f32.xlu1 %v2269_v2  ;;  %v2284_v2 = vsel %vm1444_vm1, %v1962_v39, 0.0  ;;  %v2302_v19 = vsel %vm1444_vm1, %v1968_v52, 0.0  ;;  %v7818_v52 = vunpack.c.h.bf16 %v5366_v59  ;;  %v7822_v59 = vunpack.c.l.bf16 %v5504_v29 }
 0x3e0   : > { %v6167_v32 = vpop.xlane.xlu1 %2066 }
 0x3e3   : > { %2267 = vadd.xlane.f32.xlu0 %v2266_v11  ;;  %2276 = vadd.xlane.f32.xlu1 %v2275_v43  ;;  %v6213_v11 = vpop.xlane.xlu0 %2045 }
 0x3e4   : > { %v6180_v0 = vpop.xlane.xlu1 %2072 }
 0x3e7   : > { %2273 = vadd.xlane.f32.xlu0 %v2272_v3  ;;  %2282 = vadd.xlane.f32.xlu1 %v2281_v22  ;;  %v1969_v3 = vmul.f32 %v7810_v9, %v6155_v28  ;;  %v6227_v49 = vpop.xlane.xlu0 %2051 }
 0x3e8   : > { %v6191_v25 = vpop.xlane.xlu1 %2078 }
 0x3e9   : > { %v2305_v58 = vsel %vm1444_vm1, %v1969_v3, 0.0 }
 0x3ea   : > { %v6239_v23 = vpop.eup %4275 }
 0x3eb   : > { %2279 = vadd.xlane.f32.xlu0 %v2278_v6  ;;  %2288 = vadd.xlane.f32.xlu1 %v2287_v14  ;;  %v7812_v6 = vld [vmem:[#allocation69_spill] sm:$0xff]  ;;  %v6249_v50 = vpop.xlane.xlu0 %2057  ;;  %v6255_v26 = vrot.slane %v6239_v23, %v7675_v51 }
 0x3ec   : > { %v6203_v18 = vpop.xlane.xlu1 %2084  ;;  %v7813_v14 = vunpack.c.l.bf16 %v7812_v6  ;;  %v7816_v60 = vunpack.c.h.bf16 %v7812_v6  ;;  %v7819_v6 = vld [vmem:[#allocation34_spill] sm:$0xff] }
 0x3ee   : > { %v1971_v34 = vmul.f32 %v7813_v14, %v6155_v28  ;;  %v1972_v35 = vmul.f32 %v7816_v60, %v6155_v28  ;;  %v1974_v14 = vmul.f32 %v7818_v52, %v6155_v28 }
 0x3ef   : > { %2285 = vadd.xlane.f32.xlu0 %v2284_v2  ;;  %2294 = vadd.xlane.f32.xlu1 %v2293_v7  ;;  %v7814_v2 = vunpack.c.h.bf16 %v7809_v55  ;;  %v7817_v55 = vunpack.c.l.bf16 %v5469_v13  ;;  %v7824_v13 = vunpack.c.l.bf16 %v5514_v40 }
 0x3f0   : > { %v6215_v43 = vpop.xlane.xlu1 %2090  ;;  %v2311_v17 = vsel %vm1444_vm1, %v1971_v34, 0.0  ;;  %v7820_v34 = vunpack.c.l.bf16 %v7819_v6 }
 0x3f1   : > { %v1970_v7 = vmul.f32 %v7814_v2, %v6155_v28  ;;  %v1975_v9 = vmul.f32 %v7817_v55, %v6155_v28  ;;  %v2320_v2 = vsel %vm1444_vm1, %v1974_v14, 0.0 }
 0x3f3   : > { %2291 = vadd.xlane.f32.xlu0 %v2290_v10  ;;  %2300 = vadd.xlane.f32.xlu1 %v2299_v16  ;;  %v2308_v10 = vsel %vm1444_vm1, %v1970_v7, 0.0  ;;  %v2317_v16 = vsel %vm1444_vm1, %v1973_v30, 0.0  ;;  %v2323_v47 = vsel %vm1444_vm1, %v1975_v9, 0.0  ;;  %v1976_v30 = vmul.f32 %v7821_v1, %v6155_v28 }
 0x3f4   : > { %v6225_v22 = vpop.xlane.xlu1 %2096  ;;  %v7823_v9 = vunpack.c.h.bf16 %v7819_v6  ;;  %v1981_v28 = vmul.f32 %v7824_v13, %v6255_v26  ;;  %v7826_v6 = vunpack.c.l.bf16 %v5532_v61 }
 0x3f7   : > { %2297 = vadd.xlane.f32.xlu0 %v2296_v12  ;;  %2306 = vadd.xlane.f32.xlu1 %v2305_v58  ;;  %v6267_v12 = vpop.xlane.xlu0 %2063  ;;  %v2314_v58 = vsel %vm1444_vm1, %v1972_v35, 0.0  ;;  %v2326_v35 = vsel %vm1444_vm1, %v1976_v30, 0.0 }
 0x3f8   : > { %v6237_v39 = vpop.xlane.xlu1 %2102 }
 0x3fb   : > { %2303 = vadd.xlane.f32.xlu0 %v2302_v19  ;;  %2312 = vadd.xlane.f32.xlu1 %v2311_v17  ;;  %v1977_v19 = vmul.f32 %v7820_v34, %v6255_v26  ;;  %v2341_v34 = vsel %vm1444_vm1, %v1981_v28, 0.0 }
 0x3fc   : > { %v6251_v21 = vpop.xlane.xlu1 %2108 }
 0x3fd   : > { %v2329_v7 = vsel %vm1444_vm1, %v1977_v19, 0.0  ;;  %v7825_v19 = vunpack.c.h.bf16 %v5504_v29  ;;  %v7828_v29 = vunpack.c.l.bf16 %v5540_v27 }
 0x3ff   : > { %2309 = vadd.xlane.f32.xlu0 %v2308_v10  ;;  %2318 = vadd.xlane.f32.xlu1 %v2317_v16  ;;  %v1979_v10 = vmul.f32 %v7822_v59, %v6255_v26  ;;  %v6287_v16 = vpop.xlane.xlu0 %2069 }
 0x400   : > { %v6265_v3 = vpop.xlane.xlu1 %2114 }
 0x401   : > { %v2335_v55 = vsel %vm1444_vm1, %v1979_v10, 0.0  ;;  %v7827_v10 = vunpack.c.h.bf16 %v5514_v40  ;;  %v7830_v40 = vunpack.c.l.bf16 %v5624_v44 }
 0x403   : > { %2315 = vadd.xlane.f32.xlu0 %v2314_v58  ;;  %2324 = vadd.xlane.f32.xlu1 %v2323_v47  ;;  %v1978_v58 = vmul.f32 %v7823_v9, %v6255_v26  ;;  %v6301_v52 = vpop.xlane.xlu0 %2075 }
 0x404   : > { %v6277_v17 = vpop.xlane.xlu1 %2120 }
 0x405   : > { %v2332_v14 = vsel %vm1444_vm1, %v1978_v58, 0.0 }
 0x407   : > { %2321 = vadd.xlane.f32.xlu0 %v2320_v2  ;;  %2330 = vadd.xlane.f32.xlu1 %v2329_v7  ;;  %v1980_v2 = vmul.f32 %v7825_v19, %v6255_v26  ;;  %v1983_v7 = vmul.f32 %v7826_v6, %v6255_v26  ;;  %v6321_v9 = vpop.xlane.xlu0 %2081  ;;  %v1987_v19 = vmul.f32 %v7830_v40, %v6255_v26  ;;  %v7835_v40 = vld [vmem:[#allocation7_spill] sm:$0xff] }
 0x408   : > { %v6289_v60 = vpop.xlane.xlu1 %2126 }
 0x409   : > { %v2338_v30 = vsel %vm1444_vm1, %v1980_v2, 0.0  ;;  %v2347_v59 = vsel %vm1444_vm1, %v1983_v7, 0.0 }
 0x40b   : > { %2327 = vadd.xlane.f32.xlu0 %v2326_v35  ;;  %2336 = vadd.xlane.f32.xlu1 %v2335_v55  ;;  %v1982_v35 = vmul.f32 %v7827_v10, %v6255_v26  ;;  %v1985_v55 = vmul.f32 %v7828_v29, %v6255_v26  ;;  %v6335_v6 = vpop.xlane.xlu0 %2087 }
 0x40c   : > { %v6299_v47 = vpop.xlane.xlu1 %2132 }
 0x40d   : > { %v2344_v13 = vsel %vm1444_vm1, %v1982_v35, 0.0  ;;  %v2353_v28 = vsel %vm1444_vm1, %v1985_v55, 0.0 }
 0x40f   : > { %2333 = vadd.xlane.f32.xlu0 %v2332_v14  ;;  %2342 = vadd.xlane.f32.xlu1 %v2341_v34  ;;  %v7829_v14 = vunpack.c.h.bf16 %v5532_v61  ;;  %v7832_v61 = vld [vmem:[#allocation8_spill] sm:$0xff] }
 0x410   : > { %v6311_v1 = vpop.xlane.xlu1 %2138  ;;  %v7833_v35 = vunpack.c.l.bf16 %v7832_v61 }
 0x411   : > { %v1984_v34 = vmul.f32 %v7829_v14, %v6255_v26  ;;  %v7834_v14 = vunpack.c.h.bf16 %v5624_v44  ;;  %v7836_v44 = vunpack.c.h.bf16 %v7832_v61 }
 0x412   : > { %v1989_v29 = vmul.f32 %v7833_v35, %v6255_v26 }
 0x413   : > { %2339 = vadd.xlane.f32.xlu0 %v2338_v30  ;;  %2348 = vadd.xlane.f32.xlu1 %v2347_v59  ;;  %v2350_v7 = vsel %vm1444_vm1, %v1984_v34, 0.0  ;;  %v2359_v30 = vsel %vm1444_vm1, %v1987_v19, 0.0  ;;  %v7831_v59 = vunpack.c.h.bf16 %v5540_v27  ;;  %v1988_v34 = vmul.f32 %v7834_v14, %v6255_v26  ;;  %v6355_v19 = vpop.xlane.xlu0 %2093 }
 0x414   : > { %v6323_v58 = vpop.xlane.xlu1 %2144  ;;  %v1991_v27 = vmul.f32 %v4100_v20, %v6255_v26  ;;  %v1990_v35 = vmul.f32 %v7836_v44, %v6255_v26  ;;  %v7837_v14 = vunpack.c.h.bf16 %v7835_v40 }
 0x415   : > { %v1986_v10 = vmul.f32 %v7831_v59, %v6255_v26  ;;  %v2362_v59 = vsel %vm1444_vm1, %v1988_v34, 0.0 }
 0x416   : > { %v1992_v34 = vmul.f32 %v7837_v14, %v6255_v26 }
 0x417   : > { %2345 = vadd.xlane.f32.xlu0 %v2344_v13  ;;  %2354 = vadd.xlane.f32.xlu1 %v2353_v28  ;;  %v2356_v13 = vsel %vm1444_vm1, %v1986_v10, 0.0  ;;  %v2365_v28 = vsel %vm1444_vm1, %v1989_v29, 0.0  ;;  %v2371_v10 = vsel %vm1444_vm1, %v1991_v27, 0.0 }
 0x418   : > { %v6333_v2 = vpop.xlane.xlu1 %2150  ;;  %v2374_v27 = vsel %vm1444_vm1, %v1992_v34, 0.0 }
 0x41b   : > { %2351 = vadd.xlane.f32.xlu0 %v2350_v7  ;;  %2360 = vadd.xlane.f32.xlu1 %v2359_v30  ;;  %v1827_v30 = vrot.slane %v6239_v23, 1 }
 0x41c   : > { %v6345_v55 = vpop.xlane.xlu1 %2156 }
 0x41d   : > { %v1828_v20 = vsel %vm7448_vm8, %v1827_v30, %v5890_v24  ;;  %vm3133_vm8 = vcmask 720512  }
 0x41e   : > { %v1830_v23 = vsel %vm1444_vm1, %v1828_v20, 0.0 }
 0x41f   : > { %2357 = vadd.xlane.f32.xlu0 %v2356_v13  ;;  %2366 = vadd.xlane.f32.xlu1 %v2365_v28  ;;  %v6369_v13 = vpop.xlane.xlu0 %2099  ;;  %v2368_v28 = vsel %vm1444_vm1, %v1990_v35, 0.0  ;;  %vm3126_vm1 = vcmask 654912  }
 0x420   : > { %v6357_v7 = vpop.xlane.xlu1 %2162 }
 0x423   : > { %2363 = vadd.xlane.f32.xlu0 %v2362_v59  ;;  %2372 = vadd.xlane.f32.xlu1 %v2371_v10  ;;  %v6379_v24 = vpop.xlane.xlu0 %2105 }
 0x424   : > { %v6367_v29 = vpop.xlane.xlu1 %2168 }
 0x427   : > { %2369 = vadd.xlane.f32.xlu0 %v2368_v28  ;;  %1831 = vadd.xlane.f32.xlu1 %v1830_v23  ;;  %v6385_v10 = vpop.xlane.xlu0 %2111  ;;  %v4343_v23 = vmov 0  }
 0x428   : > { %v6376_v61 = vpop.xlane.xlu1 %2174  ;;  %4260 = vset.pattern.permute.xlu0 %v4343_v23  ;;  %4259 = vset.pattern.permute.xlu1 %v4343_v23 }
 0x429   : > { %7838 = vst [vmem:[#allocation14_spill] sm:$0xff] %v6376_v61 }
 0x42b   : > { %2375 = vadd.xlane.f32.xlu0 %v2374_v27  ;;  %v6389_v35 = vpop.xlane.xlu0 %2117 }
 0x42c   : > { %v6381_v30 = vpop.xlane.xlu1 %2180 }
 0x42d   : > { %7839 = vst [vmem:[#allocation33_spill] sm:$0xff] %v6381_v30 }
 0x42f   : > { %v6395_v20 = vpop.xlane.xlu0 %2123 }
 0x430   : > { %v6383_v59 = vpop.xlane.xlu1 %2186 }
 0x431   : > { %7840 = vst [vmem:[#allocation41_spill] sm:$0xff] %v6383_v59 }
 0x433   : > { %v6399_v14 = vpop.xlane.xlu0 %2129 }
 0x434   : > { %v6387_v44 = vpop.xlane.xlu1 %2192  ;;  %7845 = vst [vmem:[#allocation40_spill] sm:$0xff] %v6399_v14 }
 0x435   : > { %7841 = vst [vmem:[#allocation13_spill] sm:$0xff] %v6387_v44 }
 0x437   : > { %v6405_v44 = vpop.xlane.xlu0 %2135 }
 0x438   : > { %v6391_v26 = vpop.xlane.xlu1 %2198  ;;  %7848 = vst [vmem:[#allocation21_spill] sm:$0xff] %v6405_v44 }
 0x439   : > { %7842 = vst [vmem:[#allocation18_spill] sm:$0xff] %v6391_v26 }
 0x43b   : > { %v6409_v26 = vpop.xlane.xlu0 %2141 }
 0x43c   : > { %v6393_v40 = vpop.xlane.xlu1 %2204  ;;  %7850 = vst [vmem:[#allocation46_spill] sm:$0xff] %v6409_v26 }
 0x43d   : > { %7843 = vst [vmem:[#allocation9_spill] sm:$0xff] %v6393_v40 }
 0x440   : > { %v6397_v28 = vpop.xlane.xlu1 %2210 }
 0x441   : > { %7844 = vst [vmem:[#allocation10_spill] sm:$0xff] %v6397_v28  ;;  %v6415_v28 = vpop.xlane.xlu0 %2147 }
 0x442   : > { %7853 = vst [vmem:[#allocation24_spill] sm:$0xff] %v6415_v28 }
 0x444   : > { %v6401_v34 = vpop.xlane.xlu1 %2216 }
 0x445   : > { %7846 = vst [vmem:[#allocation47_spill] sm:$0xff] %v6401_v34  ;;  %v6419_v23 = vpop.xlane.xlu0 %2153 }
 0x446   : > { %7855 = vst [vmem:[#allocation54_spill] sm:$0xff] %v6419_v23 }
 0x448   : > { %v6403_v27 = vpop.xlane.xlu1 %2222 }
 0x449   : > { %7847 = vst [vmem:[#allocation17_spill] sm:$0xff] %v6403_v27  ;;  %v6425_v27 = vpop.xlane.xlu0 %2159 }
 0x44a   : > { %7858 = vst [vmem:[#allocation27_spill] sm:$0xff] %v6425_v27 }
 0x44c   : > { %v6407_v59 = vpop.xlane.xlu1 %2228 }
 0x44d   : > { %7849 = vst [vmem:[#allocation55_spill] sm:$0xff] %v6407_v59  ;;  %v6429_v59 = vpop.xlane.xlu0 %2165 }
 0x44e   : > { %7860 = vst [vmem:[#allocation53_spill] sm:$0xff] %v6429_v59 }
 0x450   : > { %v6411_v40 = vpop.xlane.xlu1 %2234 }
 0x451   : > { %7851 = vst [vmem:[#allocation50_spill] sm:$0xff] %v6411_v40 }
 0x454   : > { %v6413_v30 = vpop.xlane.xlu1 %2240 }
 0x455   : > { %7852 = vst [vmem:[#allocation20_spill] sm:$0xff] %v6413_v30  ;;  %v6435_v30 = vpop.xlane.xlu0 %2171 }
 0x456   : > { %7863 = vst [vmem:[#allocation26_spill] sm:$0xff] %v6435_v30 }
 0x458   : > { %v6417_v61 = vpop.xlane.xlu1 %2246 }
 0x459   : > { %7854 = vst [vmem:[#allocation49_spill] sm:$0xff] %v6417_v61  ;;  %v6439_v61 = vpop.xlane.xlu0 %2177 }
 0x45a   : > { %7865 = vst [vmem:[#allocation65_spill] sm:$0xff] %v6439_v61 }
 0x45c   : > { %v6421_v14 = vpop.xlane.xlu1 %2252 }
 0x45d   : > { %7856 = vst [vmem:[#allocation61_spill] sm:$0xff] %v6421_v14 }
 0x460   : > { %v6423_v34 = vpop.xlane.xlu1 %2258 }
 0x461   : > { %7857 = vst [vmem:[#allocation23_spill] sm:$0xff] %v6423_v34  ;;  %v6445_v34 = vpop.xlane.xlu0 %2183 }
 0x462   : > { %7868 = vst [vmem:[#allocation11_spill] sm:$0xff] %v6445_v34 }
 0x464   : > { %v6427_v44 = vpop.xlane.xlu1 %2264 }
 0x465   : > { %7859 = vst [vmem:[#allocation56_spill] sm:$0xff] %v6427_v44  ;;  %v6449_v44 = vpop.xlane.xlu0 %2189 }
 0x466   : > { %7870 = vst [vmem:[#allocation25_spill] sm:$0xff] %v6449_v44 }
 0x468   : > { %v6431_v26 = vpop.xlane.xlu1 %2270 }
 0x469   : > { %7861 = vst [vmem:[#allocation58_spill] sm:$0xff] %v6431_v26 }
 0x46c   : > { %v6433_v40 = vpop.xlane.xlu1 %2276 }
 0x46d   : > { %7862 = vst [vmem:[#allocation62_spill] sm:$0xff] %v6433_v40  ;;  %v6455_v40 = vpop.xlane.xlu0 %2195 }
 0x46e   : > { %7873 = vst [vmem:[#allocation31_spill] sm:$0xff] %v6455_v40 }
 0x470   : > { %v6437_v28 = vpop.xlane.xlu1 %2282 }
 0x471   : > { %7864 = vst [vmem:[#allocation57_spill] sm:$0xff] %v6437_v28  ;;  %v6459_v28 = vpop.xlane.xlu0 %2201 }
 0x472   : > { %7875 = vst [vmem:[#allocation15_spill] sm:$0xff] %v6459_v28 }
 0x474   : > { %v6441_v23 = vpop.xlane.xlu1 %2288 }
 0x475   : > { %7866 = vst [vmem:[#allocation6_spill] sm:$0xff] %v6441_v23 }
 0x478   : > { %v6443_v14 = vpop.xlane.xlu1 %2294 }
 0x479   : > { %7867 = vst [vmem:[#allocation12_spill] sm:$0xff] %v6443_v14  ;;  %v6465_v14 = vpop.xlane.xlu0 %2207 }
 0x47a   : > { %7878 = vst [vmem:[#allocation28_spill] sm:$0xff] %v6465_v14 }
 0x47c   : > { %v6447_v27 = vpop.xlane.xlu1 %2300 }
 0x47d   : > { %7869 = vst [vmem:[#allocation19_spill] sm:$0xff] %v6447_v27  ;;  %v6469_v27 = vpop.xlane.xlu0 %2213 }
 0x47e   : > { %7880 = vst [vmem:[#allocation36_spill] sm:$0xff] %v6469_v27 }
 0x480   : > { %v6451_v59 = vpop.xlane.xlu1 %2306 }
 0x481   : > { %7871 = vst [vmem:[#allocation29_spill] sm:$0xff] %v6451_v59 }
 0x484   : > { %v6453_v26 = vpop.xlane.xlu1 %2312 }
 0x485   : > { %7872 = vst [vmem:[#allocation30_spill] sm:$0xff] %v6453_v26  ;;  %v6475_v26 = vpop.xlane.xlu0 %2219 }
 0x486   : > { %7883 = vst [vmem:[#allocation39_spill] sm:$0xff] %v6475_v26 }
 0x488   : > { %v6457_v30 = vpop.xlane.xlu1 %2318 }
 0x489   : > { %7874 = vst [vmem:[#allocation35_spill] sm:$0xff] %v6457_v30  ;;  %v6479_v30 = vpop.xlane.xlu0 %2225 }
 0x48c   : > { %v6461_v61 = vpop.xlane.xlu1 %2324 }
 0x48d   : > { %7876 = vst [vmem:[#allocation16_spill] sm:$0xff] %v6461_v61 }
 0x490   : > { %v6463_v23 = vpop.xlane.xlu1 %2330 }
 0x491   : > { %7877 = vst [vmem:[#allocation22_spill] sm:$0xff] %v6463_v23  ;;  %v6485_v23 = vpop.xlane.xlu0 %2231 }
 0x492   : > { %7887 = vst [vmem:[#allocation45_spill] sm:$0xff] %v6485_v23 }
 0x494   : > { %v6467_v34 = vpop.xlane.xlu1 %2336 }
 0x495   : > { %7879 = vst [vmem:[#allocation32_spill] sm:$0xff] %v6467_v34  ;;  %v6489_v34 = vpop.xlane.xlu0 %2237 }
 0x498   : > { %v6471_v44 = vpop.xlane.xlu1 %2342 }
 0x499   : > { %7881 = vst [vmem:[#allocation37_spill] sm:$0xff] %v6471_v44  ;;  %v6491_v44 = vpop.xlane.xlu0 %2243 }
 0x49a   : > { %7889 = vst [vmem:[#allocation51_spill] sm:$0xff] %v6491_v44 }
 0x49c   : > { %v6473_v59 = vpop.xlane.xlu1 %2348 }
 0x49d   : > { %7882 = vst [vmem:[#allocation38_spill] sm:$0xff] %v6473_v59  ;;  %v6493_v59 = vpop.xlane.xlu0 %2249 }
 0x49e   : > { %7890 = vst [vmem:[#allocation52_spill] sm:$0xff] %v6493_v59 }
 0x4a0   : > { %v6477_v40 = vpop.xlane.xlu1 %2354 }
 0x4a1   : > { %7884 = vst [vmem:[#allocation42_spill] sm:$0xff] %v6477_v40  ;;  %v6501_v23 = vpop.xlane.xlu0 %2255 }
 0x4a4   : > { %v6481_v28 = vpop.xlane.xlu1 %2360 }
 0x4a5   : > { %7885 = vst [vmem:[#allocation43_spill] sm:$0xff] %v6481_v28  ;;  %v6505_v59 = vpop.xlane.xlu0 %2261 }
 0x4a8   : > { %v6483_v61 = vpop.xlane.xlu1 %2366 }
 0x4a9   : > { %7886 = vst [vmem:[#allocation44_spill] sm:$0xff] %v6483_v61 }
 0x4ac   : > { %v6487_v14 = vpop.xlane.xlu1 %2372 }
 0x4ad   : > { %7888 = vst [vmem:[#allocation48_spill] sm:$0xff] %v6487_v14 }
 0x4b0   : > { %v1832_v27 = vpop.xlane.xlu1 %1831 }
 0x4b1   : > { %4277 = vrcp.f32 %v1832_v27 }
 0x4be   : > { %v6495_v26 = vpop.eup %4277 }
 0x4bf   : > { %v2382_v40 = vrot.slane %v6495_v26, %v7675_v51 }
 0x4c1   : > { %v2420_v28 = vmul.f32 %v2382_v40, %v6071_v36  ;;  %v2419_v61 = vmul.f32 %v2382_v40, %v6047_v15  ;;  %v2429_v14 = vmul.f32 %v2382_v40, %v6083_v53  ;;  %v2421_v27 = vmul.f32 %v2382_v40, %v6035_v42  ;;  %v6516_v42 = vpop.xlane.xlu0 %2267 }
 0x4c2   : > { %v2431_v44 = vmul.f32 %v2382_v40, %v6095_v38  ;;  %v2422_v51 = vmul.f32 %v2382_v40, %v6085_v5  ;;  %v2433_v15 = vmul.f32 %v2382_v40, %v6107_v37  ;;  %v2423_v36 = vmul.f32 %v2382_v40, %v6045_v48 }
 0x4c3   : > { %2679 = vperm.xlu0 %4260, %v2420_v28   ;;  %2676 = vperm.xlu1 %4259, %v2419_v61   ;;  %v7891_v28 = vld [vmem:[#allocation5_spill] sm:$0xff]  ;;  %v2424_v5 = vmul.f32 %v2382_v40, %v6105_v4  ;;  %v2425_v37 = vmul.f32 %v2382_v40, %v6057_v54 }
 0x4c4   : > { %v7892_v61 = vsub.s32 1, %v7891_v28 }
 0x4c6   : > { %v6514_v53 = vrot.slane %v6495_v26, %v7892_v61 }
 0x4c7   : > { %2706 = vperm.xlu0 %4260, %v2429_v14   ;;  %2682 = vperm.xlu1 %4259, %v2421_v27   ;;  %v2426_v27 = vmul.f32 %v2382_v40, %v6119_v45 }
 0x4c8   : > { %v2435_v38 = vmul.f32 %v6514_v53, %v6117_v56  ;;  %v2437_v48 = vmul.f32 %v6514_v53, %v6129_v41  ;;  %v2439_v14 = vmul.f32 %v6514_v53, %v6141_v46  ;;  %v2441_v4 = vmul.f32 %v6514_v53, %v6151_v31 }
 0x4c9   : > { %v2427_v56 = vmul.f32 %v2382_v40, %v6073_v33  ;;  %v2443_v54 = vmul.f32 %v6514_v53, %v6167_v32  ;;  %v2428_v46 = vmul.f32 %v2382_v40, %v6139_v63  ;;  %v2445_v45 = vmul.f32 %v6514_v53, %v6180_v0 }
 0x4ca   : > { %v2447_v33 = vmul.f32 %v6514_v53, %v6191_v25  ;;  %v2432_v31 = vmul.f32 %v2382_v40, %v6178_v62  ;;  %v2449_v63 = vmul.f32 %v6514_v53, %v6203_v18  ;;  %v2434_v0 = vmul.f32 %v2382_v40, %v6193_v8 }
 0x4cb   : > { %2712 = vperm.xlu0 %4260, %v2431_v44   ;;  %2685 = vperm.xlu1 %4259, %v2422_v51   ;;  %v6521_v44 = vpop.xlane.xlu0 %2273  ;;  %v2436_v62 = vmul.f32 %v6514_v53, %v6213_v11  ;;  %v2438_v18 = vmul.f32 %v6514_v53, %v6227_v49  ;;  %v2440_v11 = vmul.f32 %v6514_v53, %v6249_v50 }
 0x4cf   : > { %2718 = vperm.xlu0 %4260, %v2433_v15   ;;  %2688 = vperm.xlu1 %4259, %v2423_v36   ;;  %v6529_v51 = vpop.xlane.xlu0 %2279  ;;  %v2430_v15 = vmul.f32 %v2382_v40, %v6157_v57  ;;  %v7893_v57 = vsub.s32 2, %v7891_v28 }
 0x4d1   : > { %v6555_v61 = vrot.slane %v6495_v26, %v7893_v57 }
 0x4d3   : > { %2724 = vperm.xlu0 %4260, %v2435_v38   ;;  %2691 = vperm.xlu1 %4259, %v2424_v5   ;;  %v6534_v41 = vpop.xlane.xlu0 %2285  ;;  %v2451_v25 = vmul.f32 %v6555_v61, %v6215_v43  ;;  %v2453_v8 = vmul.f32 %v6555_v61, %v6225_v22  ;;  %v2455_v43 = vmul.f32 %v6555_v61, %v6237_v39 }
 0x4d4   : > { %v2457_v5 = vmul.f32 %v6555_v61, %v6251_v21  ;;  %v2442_v22 = vmul.f32 %v6514_v53, %v6267_v12  ;;  %v2459_v49 = vmul.f32 %v6555_v61, %v6265_v3  ;;  %v2444_v39 = vmul.f32 %v6514_v53, %v6287_v16 }
 0x4d5   : > { %v2461_v21 = vmul.f32 %v6555_v61, %v6277_v17  ;;  %v2446_v12 = vmul.f32 %v6514_v53, %v6301_v52  ;;  %v2448_v3 = vmul.f32 %v6514_v53, %v6321_v9  ;;  %v2465_v16 = vmul.f32 %v6555_v61, %v6299_v47 }
 0x4d6   : > { %v2450_v17 = vmul.f32 %v6514_v53, %v6335_v6  ;;  %v7897_v52 = vsub.s32 3, %v7891_v28  ;;  %v2454_v6 = vmul.f32 %v6555_v61, %v6369_v13  ;;  %v2458_v13 = vmul.f32 %v6555_v61, %v6385_v10 }
 0x4d7   : > { %2730 = vperm.xlu0 %4260, %v2437_v48   ;;  %2694 = vperm.xlu1 %4259, %v2425_v37   ;;  %v6542_v36 = vpop.xlane.xlu0 %2291  ;;  %v2463_v37 = vmul.f32 %v6555_v61, %v6289_v60 }
 0x4db   : > { %2736 = vperm.xlu0 %4260, %v2439_v14   ;;  %2697 = vperm.xlu1 %4259, %v2426_v27   ;;  %v6547_v32 = vpop.xlane.xlu0 %2297  ;;  %v6602_v27 = vrot.slane %v6495_v26, %v7897_v52 }
 0x4dd   : > { %v2467_v9 = vmul.f32 %v6602_v27, %v6311_v1  ;;  %v2469_v47 = vmul.f32 %v6602_v27, %v6323_v58  ;;  %v2456_v1 = vmul.f32 %v6555_v61, %v6379_v24  ;;  %v2473_v58 = vmul.f32 %v6602_v27, %v6345_v55 }
 0x4de   : > { %v2477_v24 = vmul.f32 %v6602_v27, %v6367_v29  ;;  %v2462_v55 = vmul.f32 %v6555_v61, %v6395_v20  ;;  %v7907_v20 = vsub.s32 4, %v7891_v28 }
 0x4df   : > { %2742 = vperm.xlu0 %4260, %v2441_v4   ;;  %2700 = vperm.xlu1 %4259, %v2427_v56   ;;  %v6561_v38 = vpop.xlane.xlu0 %2303  ;;  %v2452_v4 = vmul.f32 %v6555_v61, %v6355_v19  ;;  %v2471_v56 = vmul.f32 %v6602_v27, %v6333_v2  ;;  %v2460_v2 = vmul.f32 %v6555_v61, %v6389_v35 }
 0x4e3   : > { %2748 = vperm.xlu0 %4260, %v2443_v54   ;;  %2703 = vperm.xlu1 %4259, %v2428_v46   ;;  %v6567_v40 = vpop.xlane.xlu0 %2309  ;;  %v2475_v54 = vmul.f32 %v6602_v27, %v6357_v7 }
 0x4e7   : > { %2754 = vperm.xlu0 %4260, %v2445_v45   ;;  %2709 = vperm.xlu1 %4259, %v2430_v15   ;;  %v6577_v48 = vpop.xlane.xlu0 %2315  ;;  %v7903_v45 = vld [vmem:[#allocation14_spill] sm:$0xff]  ;;  %v7904_v15 = vld [vmem:[#allocation40_spill] sm:$0xff] }
 0x4e8   : > { %7894 = vst [vmem:[#allocation59_spill] sm:$0xff] %v6577_v48  ;;  %v2479_v7 = vmul.f32 %v6602_v27, %v7903_v45  ;;  %v2464_v35 = vmul.f32 %v6555_v61, %v7904_v15  ;;  %v7922_v15 = vld [vmem:[#allocation17_spill] sm:$0xff] }
 0x4eb   : > { %2760 = vperm.xlu0 %4260, %v2447_v33   ;;  %2715 = vperm.xlu1 %4259, %v2432_v31   ;;  %v6583_v50 = vpop.xlane.xlu0 %2321  ;;  %v7905_v33 = vld [vmem:[#allocation33_spill] sm:$0xff] }
 0x4ec   : > { %7895 = vst [vmem:[#allocation60_spill] sm:$0xff] %v6583_v50  ;;  %v2481_v31 = vmul.f32 %v6602_v27, %v7905_v33  ;;  %v7923_v33 = vld [vmem:[#allocation65_spill] sm:$0xff] }
 0x4ed   : > { %v7946_v50 = vld [vmem:[#allocation57_spill] sm:$0xff] }
 0x4ef   : > { %2766 = vperm.xlu0 %4260, %v2449_v63   ;;  %2721 = vperm.xlu1 %4259, %v2434_v0   ;;  %v6593_v14 = vpop.xlane.xlu0 %2327  ;;  %v7906_v63 = vld [vmem:[#allocation21_spill] sm:$0xff]  ;;  %v6649_v0 = vrot.slane %v6495_v26, %v7907_v20  ;;  %v7925_v20 = vld [vmem:[#allocation55_spill] sm:$0xff] }
 0x4f0   : > { %7896 = vst [vmem:[#allocation63_spill] sm:$0xff] %v6593_v14  ;;  %v2466_v29 = vmul.f32 %v6555_v61, %v7906_v63  ;;  %v7911_v61 = vld [vmem:[#allocation13_spill] sm:$0xff] }
 0x4f3   : > { %2772 = vperm.xlu0 %4260, %v2451_v25   ;;  %2727 = vperm.xlu1 %4259, %v2436_v62   ;;  %v6604_v60 = vpop.xlane.xlu0 %2333  ;;  %v7908_v25 = vld [vmem:[#allocation41_spill] sm:$0xff] }
 0x4f4   : > { %7898 = vst [vmem:[#allocation64_spill] sm:$0xff] %v6604_v60  ;;  %v2483_v62 = vmul.f32 %v6649_v0, %v7908_v25  ;;  %v2497_v25 = vmul.f32 %v6649_v0, %v7925_v20 }
 0x4f7   : > { %2778 = vperm.xlu0 %4260, %v2453_v8   ;;  %2733 = vperm.xlu1 %4259, %v2438_v18   ;;  %v6614_v53 = vpop.xlane.xlu0 %2339  ;;  %v7909_v8 = vld [vmem:[#allocation46_spill] sm:$0xff] }
 0x4f8   : > { %7899 = vst [vmem:[#allocation66_spill] sm:$0xff] %v6614_v53  ;;  %v2468_v18 = vmul.f32 %v6602_v27, %v7909_v8 }
 0x4fb   : > { %2784 = vperm.xlu0 %4260, %v2455_v43   ;;  %2739 = vperm.xlu1 %4259, %v2440_v11   ;;  %v6620_v19 = vpop.xlane.xlu0 %2345  ;;  %v2485_v11 = vmul.f32 %v6649_v0, %v7911_v61 }
 0x4fc   : > { %7900 = vst [vmem:[#allocation67_spill] sm:$0xff] %v6620_v19 }
 0x4ff   : > { %2790 = vperm.xlu0 %4260, %v2457_v5   ;;  %2745 = vperm.xlu1 %4259, %v2442_v22   ;;  %v6630_v46 = vpop.xlane.xlu0 %2351  ;;  %v7912_v5 = vld [vmem:[#allocation24_spill] sm:$0xff] }
 0x500   : > { %7901 = vst [vmem:[#allocation68_spill] sm:$0xff] %v6630_v46  ;;  %v2470_v22 = vmul.f32 %v6602_v27, %v7912_v5  ;;  %v7947_v46 = vld [vmem:[#allocation6_spill] sm:$0xff] }
 0x503   : > { %2796 = vperm.xlu0 %4260, %v2459_v49   ;;  %2751 = vperm.xlu1 %4259, %v2444_v39   ;;  %v6636_v10 = vpop.xlane.xlu0 %2357  ;;  %v7913_v49 = vld [vmem:[#allocation18_spill] sm:$0xff] }
 0x504   : > { %7902 = vst [vmem:[#allocation69_spill] sm:$0xff] %v6636_v10  ;;  %v2487_v39 = vmul.f32 %v6649_v0, %v7913_v49 }
 0x507   : > { %2802 = vperm.xlu0 %4260, %v2461_v21   ;;  %2757 = vperm.xlu1 %4259, %v2446_v12   ;;  %v6651_v57 = vpop.xlane.xlu0 %2363  ;;  %v7914_v21 = vld [vmem:[#allocation54_spill] sm:$0xff] }
 0x508   : > { %v2472_v12 = vmul.f32 %v6602_v27, %v7914_v21 }
 0x50b   : > { %2808 = vperm.xlu0 %4260, %v2463_v37   ;;  %2763 = vperm.xlu1 %4259, %v2448_v3   ;;  %v6657_v43 = vpop.xlane.xlu0 %2369  ;;  %v7916_v3 = vld [vmem:[#allocation9_spill] sm:$0xff] }
 0x50c   : > { %7910 = vst [vmem:[#allocation34_spill] sm:$0xff] %v6657_v43 }
 0x50f   : > { %2814 = vperm.xlu0 %4260, %v2465_v16   ;;  %2769 = vperm.xlu1 %4259, %v2450_v17   ;;  %v6667_v37 = vpop.xlane.xlu0 %2375  ;;  %v2489_v16 = vmul.f32 %v6649_v0, %v7916_v3  ;;  %v7917_v17 = vld [vmem:[#allocation27_spill] sm:$0xff]  ;;  %v7930_v3 = vld [vmem:[#allocation20_spill] sm:$0xff] }
 0x510   : > { %7915 = vst [vmem:[#allocation8_spill] sm:$0xff] %v6667_v37  ;;  %v2474_v52 = vmul.f32 %v6602_v27, %v7917_v17  ;;  %v7931_v17 = vld [vmem:[#allocation31_spill] sm:$0xff] }
 0x513   : > { %2820 = vperm.xlu0 %4260, %v2467_v9   ;;  %2775 = vperm.xlu1 %4259, %v2452_v4  }
 0x517   : > { %2826 = vperm.xlu0 %4260, %v2469_v47   ;;  %2781 = vperm.xlu1 %4259, %v2454_v6   ;;  %v7918_v47 = vld [vmem:[#allocation10_spill] sm:$0xff] }
 0x518   : > { %v2491_v6 = vmul.f32 %v6649_v0, %v7918_v47 }
 0x51b   : > { %2832 = vperm.xlu0 %4260, %v2471_v56   ;;  %2787 = vperm.xlu1 %4259, %v2456_v1   ;;  %v7919_v56 = vld [vmem:[#allocation53_spill] sm:$0xff] }
 0x51c   : > { %v2476_v1 = vmul.f32 %v6602_v27, %v7919_v56  ;;  %v7932_v56 = vld [vmem:[#allocation49_spill] sm:$0xff] }
 0x51f   : > { %2838 = vperm.xlu0 %4260, %v2473_v58   ;;  %2793 = vperm.xlu1 %4259, %v2458_v13  }
 0x523   : > { %2844 = vperm.xlu0 %4260, %v2475_v54   ;;  %2799 = vperm.xlu1 %4259, %v2460_v2   ;;  %v7920_v54 = vld [vmem:[#allocation47_spill] sm:$0xff] }
 0x524   : > { %v2493_v2 = vmul.f32 %v6649_v0, %v7920_v54  ;;  %v7933_v54 = vld [vmem:[#allocation15_spill] sm:$0xff] }
 0x527   : > { %2850 = vperm.xlu0 %4260, %v2477_v24   ;;  %2805 = vperm.xlu1 %4259, %v2462_v55   ;;  %v7921_v24 = vld [vmem:[#allocation26_spill] sm:$0xff] }
 0x528   : > { %v2478_v55 = vmul.f32 %v6602_v27, %v7921_v24 }
 0x52b   : > { %2856 = vperm.xlu0 %4260, %v2479_v7   ;;  %2811 = vperm.xlu1 %4259, %v2464_v35   ;;  %v2495_v35 = vmul.f32 %v6649_v0, %v7922_v15  ;;  %v7934_v15 = vld [vmem:[#allocation61_spill] sm:$0xff] }
 0x52f   : > { %2862 = vperm.xlu0 %4260, %v2481_v31   ;;  %2817 = vperm.xlu1 %4259, %v2466_v29   ;;  %v2480_v31 = vmul.f32 %v6602_v27, %v7923_v33  ;;  %v7935_v33 = vld [vmem:[#allocation28_spill] sm:$0xff] }
 0x533   : > { %2868 = vperm.xlu0 %4260, %v2483_v62   ;;  %2823 = vperm.xlu1 %4259, %v2468_v18   ;;  %v7926_v62 = vld [vmem:[#allocation11_spill] sm:$0xff]  ;;  %v7927_v18 = vsub.s32 5, %v7891_v28 }
 0x534   : > { %v2482_v8 = vmul.f32 %v6602_v27, %v7926_v62  ;;  %v7936_v62 = vld [vmem:[#allocation23_spill] sm:$0xff] }
 0x535   : > { %v6708_v61 = vrot.slane %v6495_v26, %v7927_v18  ;;  %v7937_v18 = vld [vmem:[#allocation36_spill] sm:$0xff] }
 0x537   : > { %2874 = vperm.xlu0 %4260, %v2485_v11   ;;  %2829 = vperm.xlu1 %4259, %v2470_v22   ;;  %v7928_v22 = vld [vmem:[#allocation50_spill] sm:$0xff] }
 0x538   : > { %v2499_v49 = vmul.f32 %v6708_v61, %v7928_v22  ;;  %v2492_v22 = vmul.f32 %v6649_v0, %v7937_v18 }
 0x53b   : > { %2880 = vperm.xlu0 %4260, %v2487_v39   ;;  %2835 = vperm.xlu1 %4259, %v2472_v12   ;;  %v7929_v39 = vld [vmem:[#allocation25_spill] sm:$0xff] }
 0x53c   : > { %v2484_v21 = vmul.f32 %v6649_v0, %v7929_v39 }
 0x53e   : > { %v6673_v9 = vpop.permute.xlu0 %2679  ;;  %v6675_v4 = vpop.permute.xlu1 %2676 }
 0x53f   : > { %2886 = vperm.xlu0 %4260, %v2489_v16   ;;  %2841 = vperm.xlu1 %4259, %v2474_v52   ;;  %v2501_v16 = vmul.f32 %v6708_v61, %v7930_v3  ;;  %v2486_v52 = vmul.f32 %v6649_v0, %v7931_v17 }
 0x542   : > { %v6681_v58 = vpop.permute.xlu0 %2706  ;;  %v6683_v13 = vpop.permute.xlu1 %2682 }
 0x543   : > { %2892 = vperm.xlu0 %4260, %v2491_v6   ;;  %2847 = vperm.xlu1 %4259, %v2476_v1   ;;  %v2503_v1 = vmul.f32 %v6708_v61, %v7932_v56 }
 0x546   : > { %v6689_v45 = vpop.permute.xlu0 %2712  ;;  %v6691_v7 = vpop.permute.xlu1 %2685 }
 0x547   : > { %2898 = vperm.xlu0 %4260, %v2493_v2   ;;  %2853 = vperm.xlu1 %4259, %v2478_v55   ;;  %v2488_v2 = vmul.f32 %v6649_v0, %v7933_v54 }
 0x54a   : > { %v6697_v63 = vpop.permute.xlu0 %2718  ;;  %v6699_v29 = vpop.permute.xlu1 %2688 }
 0x54b   : > { %7924 = vst [vmem:[#allocation7_spill] sm:$0xff] %v6697_v63  ;;  %2904 = vperm.xlu0 %4260, %v2495_v35   ;;  %2859 = vperm.xlu1 %4259, %v2480_v31   ;;  %v2505_v35 = vmul.f32 %v6708_v61, %v7934_v15  ;;  %v2490_v31 = vmul.f32 %v6649_v0, %v7935_v33  ;;  %v7941_v15 = vld [vmem:[#allocation58_spill] sm:$0xff] }
 0x54c   : > { %v2496_v33 = vmul.f32 %v6649_v0, %v6479_v30 }
 0x54e   : > { %v6710_v11 = vpop.permute.xlu0 %2724  ;;  %v6712_v5 = vpop.permute.xlu1 %2691 }
 0x54f   : > { %2910 = vperm.xlu0 %4260, %v2497_v25   ;;  %2865 = vperm.xlu1 %4259, %v2482_v8   ;;  %v2507_v8 = vmul.f32 %v6708_v61, %v7936_v62 }
 0x552   : > { %v6718_v12 = vpop.permute.xlu0 %2730  ;;  %v6720_v27 = vpop.permute.xlu1 %2694 }
 0x553   : > { %2916 = vperm.xlu0 %4260, %v2499_v49   ;;  %2871 = vperm.xlu1 %4259, %v2484_v21   ;;  %v7938_v21 = vlaneseq }
 0x555   : > { %v6755_v3 = vand.u32 127, %v7938_v21 }
 0x556   : > { %v6726_v47 = vpop.permute.xlu0 %2736  ;;  %v6728_v6 = vpop.permute.xlu1 %2697 }
 0x557   : > { %2922 = vperm.xlu0 %4260, %v2501_v16   ;;  %2877 = vperm.xlu1 %4259, %v2486_v52   ;;  %v7939_v16 = vld [vmem:[#allocation56_spill] sm:$0xff]  ;;  %v7940_v52 = vld [vmem:[#allocation39_spill] sm:$0xff]  ;;  %v3072_v18 = vadd.s32 4294967280, %v6755_v3  ;;  %v6781_v21 = vsub.s32 %v6755_v3, %v7891_v28  ;;  %v3128_v43 = vadd.s32 4294967216, %v6755_v3 }
 0x558   : > { %v2509_v17 = vmul.f32 %v6708_v61, %v7939_v16  ;;  %v2494_v56 = vmul.f32 %v6649_v0, %v7940_v52  ;;  %v7943_v16 = vld [vmem:[#allocation62_spill] sm:$0xff] }
 0x559   : > { %v2513_v30 = vmul.f32 %v6708_v61, %v7943_v16  ;;  %v6798_v16 = vsub.s32 %v3072_v18, %v7891_v28 }
 0x55a   : > { %v6734_v24 = vpop.permute.xlu0 %2742  ;;  %v6736_v55 = vpop.permute.xlu1 %2700 }
 0x55b   : > { %2928 = vperm.xlu0 %4260, %v2503_v1   ;;  %2883 = vperm.xlu1 %4259, %v2488_v2   ;;  %v3065_v2 = vadd.s32 4294967288, %v6755_v3 }
 0x55e   : > { %v6742_v20 = vpop.permute.xlu0 %2748  ;;  %v6744_v25 = vpop.permute.xlu1 %2703 }
 0x55f   : > { %2934 = vperm.xlu0 %4260, %v2505_v35   ;;  %2889 = vperm.xlu1 %4259, %v2490_v31   ;;  %v2511_v35 = vmul.f32 %v6708_v61, %v7941_v15 }
 0x562   : > { %v6750_v49 = vpop.permute.xlu0 %2754  ;;  %v6752_v39 = vpop.permute.xlu1 %2709 }
 0x563   : > { %2940 = vperm.xlu0 %4260, %v2507_v8   ;;  %2895 = vperm.xlu1 %4259, %v2492_v22   ;;  %v6775_v8 = vsub.s32 %v3065_v2, %v7891_v28  ;;  %v3079_v22 = vadd.s32 4294967272, %v6755_v3 }
 0x566   : > { %v6761_v1 = vpop.permute.xlu0 %2760  ;;  %v6763_v54 = vpop.permute.xlu1 %2715 }
 0x567   : > { %2946 = vperm.xlu0 %4260, %v2509_v17   ;;  %2901 = vperm.xlu1 %4259, %v2494_v56   ;;  %v7944_v17 = vld [vmem:[#allocation45_spill] sm:$0xff]  ;;  %v7945_v56 = vsub.s32 6, %v7891_v28 }
 0x568   : > { %v2498_v52 = vmul.f32 %v6649_v0, %v7944_v17  ;;  %v6801_v0 = vsub.s32 %v3079_v22, %v7891_v28  ;;  %v3086_v17 = vadd.s32 4294967264, %v6755_v3 }
 0x569   : > { %v6790_v15 = vrot.slane %v6495_v26, %v7945_v56  ;;  %v3093_v56 = vadd.s32 4294967256, %v6755_v3 }
 0x56a   : > { %v6770_v31 = vpop.permute.xlu0 %2766  ;;  %v6772_v62 = vpop.permute.xlu1 %2721 }
 0x56b   : > { %7942 = vst [vmem:[#allocation5_spill] sm:$0xff] %v6772_v62  ;;  %2952 = vperm.xlu0 %4260, %v2511_v35   ;;  %2907 = vperm.xlu1 %4259, %v2496_v33   ;;  %v3173_v33 = vrot.slane %v6710_v11, %v6781_v21  ;;  %v2515_v11 = vmul.f32 %v6790_v15, %v7946_v50  ;;  %v3100_v50 = vadd.s32 4294967248, %v6755_v3 }
 0x56c   : > { %v2517_v19 = vmul.f32 %v6790_v15, %v7947_v46 }
 0x56e   : > { %v6792_v2 = vpop.permute.xlu0 %2772  ;;  %v2728_v35 = vpop.permute.xlu1 %2727 }
 0x56f   : > { %v3177_v37 = vrot.slane %v2728_v35, %v6775_v8  ;;  %2958 = vperm.xlu0 %4260, %v2513_v30   ;;  %2913 = vperm.xlu1 %4259, %v2498_v52   ;;  %v2500_v30 = vmul.f32 %v6708_v61, %v6489_v34  ;;  %v3182_v52 = vrot.slane %v6718_v12, %v6798_v16 }
 0x570   : > { %v6822_v12 = vsub.s32 %v3093_v56, %v7891_v28  ;;  %v6835_v56 = vsub.s32 %v3100_v50, %v7891_v28 }
 0x571   : > { %v3178_v14 = vsel %vm3070_vm9, %v3177_v37, %v3173_v33  ;;  %v6816_v37 = vsub.s32 %v3086_v17, %v7891_v28  ;;  %v3107_v33 = vadd.s32 4294967240, %v6755_v3 }
 0x572   : > { %v6812_v18 = vpop.permute.xlu0 %2778  ;;  %v2734_v35 = vpop.permute.xlu1 %2733  ;;  %v3183_v34 = vsel %vm3077_vm10, %v3182_v52, %v3178_v14  ;;  %v3114_v52 = vadd.s32 4294967232, %v6755_v3  ;;  %v3202_v50 = vrot.slane %v6734_v24, %v6835_v56 }
 0x573   : > { %v3187_v22 = vrot.slane %v2734_v35, %v6801_v0  ;;  %2964 = vperm.xlu0 %4260, %v2515_v11   ;;  %2919 = vperm.xlu1 %4259, %v2500_v30   ;;  %v7948_v35 = vld [vmem:[#allocation51_spill] sm:$0xff]  ;;  %v3192_v17 = vrot.slane %v6726_v47, %v6816_v37  ;;  %v6838_v46 = vsub.s32 %v3107_v33, %v7891_v28  ;;  %v3121_v47 = vadd.s32 4294967224, %v6755_v3 }
 0x574   : > { %v2502_v11 = vmul.f32 %v6708_v61, %v7948_v35  ;;  %v7949_v35 = vld [vmem:[#allocation12_spill] sm:$0xff] }
 0x575   : > { %v3188_v10 = vsel %vm3084_vm11, %v3187_v22, %v3183_v34  ;;  %v2519_v60 = vmul.f32 %v6790_v15, %v7949_v35  ;;  %v6861_v24 = vsub.s32 %v3121_v47, %v7891_v28 }
 0x576   : > { %v6831_v30 = vpop.permute.xlu0 %2784  ;;  %v2740_v53 = vpop.permute.xlu1 %2739  ;;  %v3193_v22 = vsel %vm3091_vm12, %v3192_v17, %v3188_v10  ;;  %v6855_v17 = vsub.s32 %v3114_v52, %v7891_v28 }
 0x577   : > { %v3197_v14 = vrot.slane %v2740_v53, %v6822_v12  ;;  %2970 = vperm.xlu0 %4260, %v2517_v19   ;;  %2925 = vperm.xlu1 %4259, %v2502_v11   ;;  %v7950_v53 = vld [vmem:[#allocation52_spill] sm:$0xff] }
 0x578   : > { %v2504_v19 = vmul.f32 %v6708_v61, %v7950_v53  ;;  %v3135_v53 = vadd.s32 4294967208, %v6755_v3 }
 0x579   : > { %v3198_v34 = vsel %vm3098_vm13, %v3197_v14, %v3193_v22  ;;  %v7951_v22 = vld [vmem:[#allocation19_spill] sm:$0xff] }
 0x57a   : > { %v6850_v11 = vpop.permute.xlu0 %2790  ;;  %v2746_v33 = vpop.permute.xlu1 %2745  ;;  %v3203_v14 = vsel %vm3105_vm14, %v3202_v50, %v3198_v34  ;;  %v2521_v35 = vmul.f32 %v6790_v15, %v7951_v22  ;;  %v6872_v34 = vsub.s32 %v3128_v43, %v7891_v28  ;;  %v3142_v50 = vadd.s32 4294967200, %v6755_v3 }
 0x57b   : > { %v3207_v10 = vrot.slane %v2746_v33, %v6838_v46  ;;  %2976 = vperm.xlu0 %4260, %v2519_v60   ;;  %2931 = vperm.xlu1 %4259, %v2504_v19   ;;  %v2506_v60 = vmul.f32 %v6708_v61, %v6501_v23  ;;  %v3212_v19 = vrot.slane %v6742_v20, %v6855_v17  ;;  %v7952_v23 = vld [vmem:[#allocation29_spill] sm:$0xff]  ;;  %v3149_v22 = vadd.s32 4294967192, %v6755_v3 }
 0x57c   : > { %v6880_v20 = vsub.s32 %v3135_v53, %v7891_v28  ;;  %v3156_v53 = vadd.s32 4294967184, %v6755_v3 }
 0x57d   : > { %v3208_v63 = vsel %vm3112_vm15, %v3207_v10, %v3203_v14  ;;  %v2523_v14 = vmul.f32 %v6790_v15, %v7952_v23  ;;  %v6904_v48 = vsub.s32 %v3149_v22, %v7891_v28 }
 0x57e   : > { %v6869_v52 = vpop.permute.xlu0 %2796  ;;  %v2752_v33 = vpop.permute.xlu1 %2751  ;;  %v3213_v10 = vsel %vm3119_vm0, %v3212_v19, %v3208_v63  ;;  %v7953_v63 = vsub.s32 7, %v7891_v28  ;;  %v6916_v22 = vsub.s32 %v3156_v53, %v7891_v28 }
 0x57f   : > { %v3217_v47 = vrot.slane %v2752_v33, %v6861_v24  ;;  %2982 = vperm.xlu0 %4260, %v2521_v35   ;;  %2937 = vperm.xlu1 %4259, %v2506_v60   ;;  %v2508_v33 = vmul.f32 %v6708_v61, %v6505_v59  ;;  %v3222_v35 = vrot.slane %v6750_v49, %v6872_v34 }
 0x580   : > { %v6893_v19 = vrot.slane %v6495_v26, %v7953_v63  ;;  %v6898_v59 = vsub.s32 %v3142_v50, %v7891_v28  ;;  %v3163_v26 = vadd.s32 4294967176, %v6755_v3 }
 0x581   : > { %v3218_v43 = vsel %vm3126_vm1, %v3217_v47, %v3213_v10  ;;  %v7954_v47 = vld [vmem:[#allocation30_spill] sm:$0xff] }
 0x582   : > { %v6888_v60 = vpop.permute.xlu0 %2802  ;;  %v2758_v62 = vpop.permute.xlu1 %2757  ;;  %v3223_v49 = vsel %vm3133_vm8, %v3222_v35, %v3218_v43  ;;  %v2525_v10 = vmul.f32 %v6790_v15, %v7954_v47  ;;  %v3232_v50 = vrot.slane %v6761_v1, %v6898_v59  ;;  %v6920_v35 = vsub.s32 %v3163_v26, %v7891_v28  ;;  %v7955_v1 = vld [vmem:[#allocation22_spill] sm:$0xff] }
 0x583   : > { %v3227_v23 = vrot.slane %v2758_v62, %v6880_v20  ;;  %2988 = vperm.xlu0 %4260, %v2523_v14   ;;  %2943 = vperm.xlu1 %4259, %v2508_v33   ;;  %v2510_v62 = vmul.f32 %v6708_v61, %v6516_v42  ;;  %v3242_v47 = vrot.slane %v6770_v31, %v6916_v22 }
 0x584   : > { %v2514_v31 = vmul.f32 %v6708_v61, %v6529_v51  ;;  %v2516_v51 = vmul.f32 %v6790_v15, %v6534_v41  ;;  %v3076_v41 = vrot.slane %v6683_v13, %v6798_v16 }
 0x585   : > { %v3228_v63 = vsel %vm3140_vm7, %v3227_v23, %v3223_v49  ;;  %v2531_v23 = vmul.f32 %v6893_v19, %v7955_v1  ;;  %v2512_v49 = vmul.f32 %v6708_v61, %v6521_v44 }
 0x586   : > { %v6912_v14 = vpop.permute.xlu0 %2808  ;;  %v2764_v33 = vpop.permute.xlu1 %2763  ;;  %v3233_v3 = vsel %vm3147_vm6, %v3232_v50, %v3228_v63 }
 0x587   : > { %v3237_v43 = vrot.slane %v2764_v33, %v6904_v48  ;;  %2994 = vperm.xlu0 %4260, %v2525_v10   ;;  %2949 = vperm.xlu1 %4259, %v2510_v62   ;;  %v7956_v62 = vld [vmem:[#allocation32_spill] sm:$0xff] }
 0x588   : > { %v2533_v44 = vmul.f32 %v6893_v19, %v7956_v62 }
 0x589   : > { %v3238_v42 = vsel %vm7454_vm5, %v3237_v43, %v3233_v3  ;;  %v3252_v43 = vrot.slane %v6792_v2, %v6781_v21 }
 0x58a   : > { %v6929_v10 = vpop.permute.xlu0 %2814  ;;  %v2770_v53 = vpop.permute.xlu1 %2769  ;;  %v3243_v28 = vsel %vm3161_vm4, %v3242_v47, %v3238_v42  ;;  %v3261_v42 = vrot.slane %v6812_v18, %v6798_v16  ;;  %v3069_v18 = vrot.slane %v6673_v9, %v6775_v8  ;;  %v3083_v9 = vrot.slane %v6691_v7, %v6801_v0 }
 0x58b   : > { %v3247_v63 = vrot.slane %v2770_v53, %v6920_v35  ;;  %3012 = vperm.xlu0 %4260, %v2531_v23   ;;  %2955 = vperm.xlu1 %4259, %v2512_v49   ;;  %v7957_v23 = vld [vmem:[#allocation37_spill] sm:$0xff]  ;;  %v3281_v7 = vrot.slane %v6850_v11, %v6835_v56 }
 0x58c   : > { %v2535_v49 = vmul.f32 %v6893_v19, %v7957_v23 }
 0x58d   : > { %v6934_v26 = vsel %vm3168_vm3, %v3247_v63, %v3243_v28  ;;  %v3064_v63 = vrot.slane %v6675_v4, %v6781_v21  ;;  %v3271_v28 = vrot.slane %v6831_v30, %v6816_v37  ;;  %v3090_v30 = vrot.slane %v6699_v29, %v6816_v37 }
 0x58e   : > { %v6940_v50 = vpop.permute.xlu0 %2820  ;;  %v2776_v33 = vpop.permute.xlu1 %2775  ;;  %v3104_v29 = vrot.slane %v6720_v27, %v6835_v56  ;;  %v3118_v27 = vrot.slane %v6736_v55, %v6855_v17  ;;  %v2522_v55 = vmul.f32 %v6790_v15, %v6561_v38  ;;  %v3301_v38 = vrot.slane %v6888_v60, %v6872_v34 }
 0x58f   : > { %v3256_v3 = vrot.slane %v2776_v33, %v6775_v8  ;;  %3018 = vperm.xlu0 %4260, %v2533_v44   ;;  %2961 = vperm.xlu1 %4259, %v2514_v31   ;;  %v7958_v44 = vld [vmem:[#allocation38_spill] sm:$0xff]  ;;  %v2518_v33 = vmul.f32 %v6790_v15, %v6542_v36  ;;  %v3097_v36 = vrot.slane %v6712_v5, %v6822_v12 }
 0x590   : > { %v2537_v31 = vmul.f32 %v6893_v19, %v7958_v44  ;;  %v3111_v5 = vrot.slane %v6728_v6, %v6838_v46  ;;  %v3291_v6 = vrot.slane %v6869_v52, %v6855_v17 }
 0x591   : > { %v3257_v1 = vsel %vm3070_vm9, %v3256_v3, %v3252_v43 }
 0x592   : > { %v6952_v61 = vpop.permute.xlu0 %2826  ;;  %v3262_v47 = vsel %vm3077_vm10, %v3261_v42, %v3257_v1  ;;  %v2782_v2 = vpop.permute.xlu1 %2781  ;;  %v3071_v42 = vsel %vm3070_vm9, %v3069_v18, %v3064_v63  ;;  %v7959_v1 = vld [vmem:[#allocation42_spill] sm:$0xff] }
 0x593   : > { %v3266_v53 = vrot.slane %v2782_v2, %v6801_v0  ;;  %3024 = vperm.xlu0 %4260, %v2535_v49   ;;  %2967 = vperm.xlu1 %4259, %v2516_v51   ;;  %v2539_v23 = vmul.f32 %v6893_v19, %v7959_v1  ;;  %v3078_v49 = vsel %vm3077_vm10, %v3076_v41, %v3071_v42 }
 0x594   : > { %v3085_v2 = vsel %vm3084_vm11, %v3083_v9, %v3078_v49  ;;  %v3125_v41 = vrot.slane %v6744_v25, %v6861_v24  ;;  %v3139_v42 = vrot.slane %v6752_v39, %v6880_v20  ;;  %v2542_v1 = vmul.f32 %v6893_v19, %v6651_v57 }
 0x595   : > { %v3267_v62 = vsel %vm3084_vm11, %v3266_v53, %v3262_v47  ;;  %v2520_v47 = vmul.f32 %v6790_v15, %v6547_v32  ;;  %v3092_v63 = vsel %vm3091_vm12, %v3090_v30, %v3085_v2  ;;  %v3311_v57 = vrot.slane %v6912_v14, %v6898_v59 }
 0x596   : > { %v6971_v43 = vpop.permute.xlu0 %2832  ;;  %v3272_v4 = vsel %vm3091_vm12, %v3271_v28, %v3267_v62  ;;  %v2788_v3 = vpop.permute.xlu1 %2787  ;;  %v3099_v32 = vsel %vm3098_vm13, %v3097_v36, %v3092_v63  ;;  %v3132_v36 = vrot.slane %v6681_v58, %v6872_v34 }
 0x597   : > { %v3276_v13 = vrot.slane %v2788_v3, %v6822_v12  ;;  %3030 = vperm.xlu0 %4260, %v2537_v31   ;;  %2973 = vperm.xlu1 %4259, %v2518_v33   ;;  %v3106_v62 = vsel %vm3105_vm14, %v3104_v29, %v3099_v32  ;;  %v7960_v31 = vld [vmem:[#allocation43_spill] sm:$0xff] }
 0x598   : > { %v2541_v33 = vmul.f32 %v6893_v19, %v7960_v31  ;;  %v3113_v9 = vsel %vm3112_vm15, %v3111_v5, %v3106_v62  ;;  %v7961_v5 = vld [vmem:[#allocation44_spill] sm:$0xff]  ;;  %v3321_v62 = vrot.slane %v6929_v10, %v6916_v22 }
 0x599   : > { %v3277_v51 = vsel %vm3098_vm13, %v3276_v13, %v3272_v4  ;;  %v3120_v30 = vsel %vm3119_vm0, %v3118_v27, %v3113_v9 }
 0x59a   : > { %v6993_v53 = vpop.permute.xlu0 %2838  ;;  %v3282_v11 = vsel %vm3105_vm14, %v3281_v7, %v3277_v51  ;;  %v2794_v18 = vpop.permute.xlu1 %2793  ;;  %v3127_v13 = vsel %vm3126_vm1, %v3125_v41, %v3120_v30  ;;  %v7963_v41 = vld [vmem:[#allocation5_spill] sm:$0xff] }
 0x59b   : > { %v3286_v28 = vrot.slane %v2794_v18, %v6838_v46  ;;  %3036 = vperm.xlu0 %4260, %v2539_v23   ;;  %2979 = vperm.xlu1 %4259, %v2520_v47   ;;  %v2524_v23 = vmul.f32 %v6790_v15, %v6567_v40  ;;  %v3134_v39 = vsel %vm3133_vm8, %v3132_v36, %v3127_v13  ;;  %v7962_v18 = vld [vmem:[#allocation59_spill] sm:$0xff] }
 0x59c   : > { %v3141_v58 = vsel %vm3140_vm7, %v3139_v42, %v3134_v39  ;;  %v3153_v47 = vrot.slane %v6763_v54, %v6904_v48  ;;  %v3146_v40 = vrot.slane %v6689_v45, %v6898_v59  ;;  %v2526_v63 = vmul.f32 %v6790_v15, %v7962_v18 }
 0x59d   : > { %v3287_v44 = vsel %vm3112_vm15, %v3286_v28, %v3282_v11  ;;  %v2543_v11 = vmul.f32 %v6893_v19, %v7961_v5 }
 0x59e   : > { %v7012_v4 = vpop.permute.xlu0 %2844  ;;  %v3292_v3 = vsel %vm3119_vm0, %v3291_v6, %v3287_v44  ;;  %v2800_v25 = vpop.permute.xlu1 %2799  ;;  %v3148_v54 = vsel %vm3147_vm6, %v3146_v40, %v3141_v58  ;;  %v3167_v6 = vrot.slane %v7963_v41, %v6920_v35  ;;  %v7964_v44 = vld [vmem:[#allocation7_spill] sm:$0xff] }
 0x59f   : > { %v3296_v52 = vrot.slane %v2800_v25, %v6861_v24  ;;  %3042 = vperm.xlu0 %4260, %v2541_v33   ;;  %2985 = vperm.xlu1 %4259, %v2522_v55   ;;  %v3155_v45 = vsel %vm7454_vm5, %v3153_v47, %v3148_v54  ;;  %v3160_v31 = vrot.slane %v7964_v44, %v6916_v22  ;;  %v7965_v55 = vld [vmem:[#allocation34_spill] sm:$0xff]  ;;  %v7971_v54 = vld [vmem:[#allocation68_spill] sm:$0xff] }
 0x5a0   : > { %v2544_v9 = vmul.f32 %v6893_v19, %v7965_v55  ;;  %v3331_v47 = vrot.slane %v6940_v50, %v6781_v21  ;;  %v3350_v50 = vrot.slane %v6971_v43, %v6816_v37 }
 0x5a1   : > { %v3297_v7 = vsel %vm3126_vm1, %v3296_v52, %v3292_v3  ;;  %v7966_v3 = vld [vmem:[#allocation64_spill] sm:$0xff]  ;;  %v3162_v42 = vsel %vm3161_vm4, %v3160_v31, %v3155_v45  ;;  %v7972_v31 = vld [vmem:[#allocation69_spill] sm:$0xff] }
 0x5a2   : > { %v7029_v49 = vpop.permute.xlu0 %2850  ;;  %v3302_v29 = vsel %vm3133_vm8, %v3301_v38, %v3297_v7  ;;  %v2806_v51 = vpop.permute.xlu1 %2805  ;;  %v2532_v25 = vmul.f32 %v6893_v19, %v7966_v3  ;;  %v3169_v38 = vsel %vm3168_vm3, %v3167_v6, %v3162_v42  ;;  %v2540_v43 = vmul.f32 %v6893_v19, %v7972_v31 }
 0x5a3   : > { %v3306_v60 = vrot.slane %v2806_v51, %v6880_v20  ;;  %3045 = vperm.xlu0 %4260, %v2542_v1   ;;  %2991 = vperm.xlu1 %4259, %v2524_v23   ;;  %v3723_v36 = vsel %vm1749_vm2, %v6934_v26, %v3169_v38  ;;  %v7967_v1 = vld [vmem:[#allocation48_spill] sm:$0xff]  ;;  %v3340_v26 = vrot.slane %v6952_v61, %v6798_v16  ;;  %vm7976_vm2 = vcmask 917312  }
 0x5a4   : > { %v2545_v23 = vmul.f32 %v6893_v19, %v7967_v1  ;;  %v2538_v61 = vmul.f32 %v6893_v19, %v7971_v54 }
 0x5a5   : > { %v3307_v2 = vsel %vm3140_vm7, %v3306_v60, %v3302_v29  ;;  %v7968_v29 = vld [vmem:[#allocation66_spill] sm:$0xff] }
 0x5a6   : > { %v7046_v27 = vpop.permute.xlu0 %2856  ;;  %v3312_v28 = vsel %vm3147_vm6, %v3311_v57, %v3307_v2  ;;  %v2812_v32 = vpop.permute.xlu1 %2811  ;;  %v2534_v51 = vmul.f32 %v6893_v19, %v7968_v29  ;;  %v7970_v2 = vld [vmem:[#allocation67_spill] sm:$0xff] }
 0x5a7   : > { %v3316_v14 = vrot.slane %v2812_v32, %v6904_v48  ;;  %3048 = vperm.xlu0 %4260, %v2543_v11   ;;  %2997 = vperm.xlu1 %4259, %v2526_v63   ;;  %v2536_v5 = vmul.f32 %v6893_v19, %v7970_v2 }
 0x5a9   : > { %v3317_v33 = vsel %vm7454_vm5, %v3316_v14, %v3312_v28  ;;  %vm7969_vm5 = vcmask 1042434  }
 0x5aa   : > { %v7063_v30 = vpop.permute.xlu0 %2862  ;;  %v3322_v52 = vsel %vm3161_vm4, %v3321_v62, %v3317_v33  ;;  %v2818_v13 = vpop.permute.xlu1 %2817  ;;  %v3360_v62 = vrot.slane %v6993_v53, %v6835_v56 }
 0x5ab   : > { %v3326_v10 = vrot.slane %v2818_v13, %v6920_v35  ;;  %3051 = vperm.xlu0 %4260, %v2544_v9   ;;  %3015 = vperm.xlu1 %4259, %v2532_v25   ;;  %v3370_v25 = vrot.slane %v7012_v4, %v6855_v17  ;;  %v7973_v13 = vld [vmem:[#allocation35_spill] sm:$0xff] }
 0x5ac   : > { %v2527_v53 = vmul.f32 %v6790_v15, %v7973_v13 }
 0x5ad   : > { %v3327_v7 = vsel %vm3168_vm3, %v3326_v10, %v3322_v52 }
 0x5ae   : > { %v7077_v39 = vsel %vm7969_vm5, %v3327_v7, %v3723_v36  ;;  %v7079_v60 = vpop.permute.xlu0 %2868  ;;  %v2824_v58 = vpop.permute.xlu1 %2823  ;;  %v3380_v7 = vrot.slane %v7029_v49, %v6872_v34  ;;  %vm7979_vm5 = vcmask 1043459  }
 0x5af   : > { %v3335_v57 = vrot.slane %v2824_v58, %v6775_v8  ;;  %3054 = vperm.xlu0 %4260, %v2545_v23   ;;  %3021 = vperm.xlu1 %4259, %v2534_v51   ;;  %v7974_v23 = vld [vmem:[#allocation60_spill] sm:$0xff] }
 0x5b0   : > { %v2528_v4 = vmul.f32 %v6790_v15, %v7974_v23 }
 0x5b1   : > { %v3336_v40 = vsel %vm3070_vm9, %v3335_v57, %v3331_v47  ;;  %v3390_v57 = vrot.slane %v7046_v27, %v6898_v59 }
 0x5b2   : > { %v7089_v11 = vpop.permute.xlu0 %2874  ;;  %v3341_v18 = vsel %vm3077_vm10, %v3340_v26, %v3336_v40  ;;  %v2830_v63 = vpop.permute.xlu1 %2829  ;;  %v7975_v40 = vld [vmem:[#allocation16_spill] sm:$0xff] }
 0x5b3   : > { %v3345_v28 = vrot.slane %v2830_v63, %v6801_v0  ;;  %3027 = vperm.xlu1 %4259, %v2536_v5   ;;  %v2529_v49 = vmul.f32 %v6790_v15, %v7975_v40 }
 0x5b5   : > { %v3346_v32 = vsel %vm3084_vm11, %v3345_v28, %v3341_v18  ;;  %v3400_v28 = vrot.slane %v7063_v30, %v6916_v22 }
 0x5b6   : > { %v7098_v14 = vpop.permute.xlu0 %2880  ;;  %v3351_v45 = vsel %vm3091_vm12, %v3350_v50, %v3346_v32  ;;  %v2836_v41 = vpop.permute.xlu1 %2835  ;;  %v7977_v32 = vld [vmem:[#allocation63_spill] sm:$0xff] }
 0x5b7   : > { %v3355_v6 = vrot.slane %v2836_v41, %v6822_v12  ;;  %3033 = vperm.xlu1 %4259, %v2538_v61   ;;  %v2530_v27 = vmul.f32 %v6790_v15, %v7977_v32  ;;  %v3410_v15 = vrot.slane %v7079_v60, %v6781_v21 }
 0x5b9   : > { %v3356_v44 = vsel %vm3098_vm13, %v3355_v6, %v3351_v45  ;;  %v7978_v6 = vld [vmem:[#allocation8_spill] sm:$0xff] }
 0x5ba   : > { %v2887_v33 = vpop.permute.xlu0 %2886  ;;  %v3361_v55 = vsel %vm3105_vm14, %v3360_v62, %v3356_v44  ;;  %v2842_v9 = vpop.permute.xlu1 %2841  ;;  %v2546_v62 = vmul.f32 %v6893_v19, %v7978_v6 }
 0x5bb   : > { %v3365_v3 = vrot.slane %v2842_v9, %v6838_v46  ;;  %3039 = vperm.xlu1 %4259, %v2540_v43   ;;  %v3419_v9 = vrot.slane %v7089_v11, %v6798_v16  ;;  %v3439_v11 = vrot.slane %v2887_v33, %v6835_v56 }
 0x5bd   : > { %v3366_v52 = vsel %vm3112_vm15, %v3365_v3, %v3361_v55 }
 0x5be   : > { %v2893_v42 = vpop.permute.xlu0 %2892  ;;  %v3371_v10 = vsel %vm3119_vm0, %v3370_v25, %v3366_v52  ;;  %v2848_v38 = vpop.permute.xlu1 %2847 }
 0x5bf   : > { %v3375_v36 = vrot.slane %v2848_v38, %v6861_v24  ;;  %3000 = vperm.xlu1 %4259, %v2527_v53  }
 0x5c1   : > { %v3376_v1 = vsel %vm3126_vm1, %v3375_v36, %v3371_v10 }
 0x5c2   : > { %v2899_v29 = vpop.permute.xlu0 %2898  ;;  %v3381_v51 = vsel %vm3133_vm8, %v3380_v7, %v3376_v1  ;;  %v2854_v58 = vpop.permute.xlu1 %2853 }
 0x5c3   : > { %v3385_v47 = vrot.slane %v2854_v58, %v6880_v20  ;;  %3003 = vperm.xlu1 %4259, %v2528_v4   ;;  %v3459_v33 = vrot.slane %v2899_v29, %v6872_v34 }
 0x5c5   : > { %v3386_v26 = vsel %vm3140_vm7, %v3385_v47, %v3381_v51 }
 0x5c6   : > { %v2905_v2 = vpop.permute.xlu0 %2904  ;;  %v3391_v5 = vsel %vm3147_vm6, %v3390_v57, %v3386_v26  ;;  %v2860_v18 = vpop.permute.xlu1 %2859 }
 0x5c7   : > { %v3395_v63 = vrot.slane %v2860_v18, %v6904_v48  ;;  %3006 = vperm.xlu1 %4259, %v2529_v49  }
 0x5c9   : > { %v3396_v50 = vsel %vm7976_vm2, %v3395_v63, %v3391_v5 }
 0x5ca   : > { %v2911_v54 = vpop.permute.xlu0 %2910  ;;  %v3401_v61 = vsel %vm3161_vm4, %v3400_v28, %v3396_v50  ;;  %v2866_v45 = vpop.permute.xlu1 %2865 }
 0x5cb   : > { %v3405_v41 = vrot.slane %v2866_v45, %v6920_v35  ;;  %3009 = vperm.xlu1 %4259, %v2530_v27   ;;  %v3479_v29 = vrot.slane %v2911_v54, %v6916_v22 }
 0x5cd   : > { %v3406_v44 = vsel %vm3168_vm3, %v3405_v41, %v3401_v61 }
 0x5ce   : > { %v3725_v30 = vsel %vm7979_vm5, %v3406_v44, %v7077_v39  ;;  %v2917_v31 = vpop.permute.xlu0 %2916  ;;  %v2872_v43 = vpop.permute.xlu1 %2871  ;;  %v3429_v39 = vrot.slane %v7098_v14, %v6816_v37  ;;  %v3449_v14 = vrot.slane %v2893_v42, %v6855_v17  ;;  %v3469_v42 = vrot.slane %v2905_v2, %v6898_v59 }
 0x5cf   : > { %v3414_v55 = vrot.slane %v2872_v43, %v6775_v8  ;;  %3057 = vperm.xlu1 %4259, %v2546_v62   ;;  %vm7980_vm5 = vcmask 1044484  }
 0x5d1   : > { %v3415_v3 = vsel %vm3070_vm9, %v3414_v55, %v3410_v15 }
 0x5d2   : > { %v2923_v25 = vpop.permute.xlu0 %2922  ;;  %v3420_v19 = vsel %vm3077_vm10, %v3419_v9, %v3415_v3  ;;  %v2878_v52 = vpop.permute.xlu1 %2877  ;;  %v3489_v3 = vrot.slane %v2917_v31, %v6781_v21 }
 0x5d3   : > { %v3424_v13 = vrot.slane %v2878_v52, %v6801_v0  ;;  %v3498_v54 = vrot.slane %v2923_v25, %v6798_v16 }
 0x5d5   : > { %v3425_v53 = vsel %vm3084_vm11, %v3424_v13, %v3420_v19 }
 0x5d6   : > { %v2929_v60 = vpop.permute.xlu0 %2928  ;;  %v3430_v10 = vsel %vm3091_vm12, %v3429_v39, %v3425_v53  ;;  %v2884_v38 = vpop.permute.xlu1 %2883 }
 0x5d7   : > { %v3434_v36 = vrot.slane %v2884_v38, %v6822_v12 }
 0x5d9   : > { %v3435_v7 = vsel %vm3098_vm13, %v3434_v36, %v3430_v10 }
 0x5da   : > { %v2935_v1 = vpop.permute.xlu0 %2934  ;;  %v3440_v23 = vsel %vm3105_vm14, %v3439_v11, %v3435_v7  ;;  %v2890_v4 = vpop.permute.xlu1 %2889 }
 0x5db   : > { %v3444_v51 = vrot.slane %v2890_v4, %v6838_v46  ;;  %v3518_v25 = vrot.slane %v2935_v1, %v6835_v56 }
 0x5dd   : > { %v3445_v58 = vsel %vm3112_vm15, %v3444_v51, %v3440_v23 }
 0x5de   : > { %v2941_v47 = vpop.permute.xlu0 %2940  ;;  %v3450_v57 = vsel %vm3119_vm0, %v3449_v14, %v3445_v58  ;;  %v2896_v26 = vpop.permute.xlu1 %2895 }
 0x5df   : > { %v3454_v40 = vrot.slane %v2896_v26, %v6861_v24 }
 0x5e1   : > { %v3455_v49 = vsel %vm3126_vm1, %v3454_v40, %v3450_v57 }
 0x5e2   : > { %v2947_v5 = vpop.permute.xlu0 %2946  ;;  %v3460_v18 = vsel %vm3133_vm8, %v3459_v33, %v3455_v49  ;;  %v2902_v63 = vpop.permute.xlu1 %2901 }
 0x5e3   : > { %v3464_v28 = vrot.slane %v2902_v63, %v6880_v20  ;;  %v3538_v33 = vrot.slane %v2947_v5, %v6872_v34 }
 0x5e5   : > { %v3465_v50 = vsel %vm3140_vm7, %v3464_v28, %v3460_v18 }
 0x5e6   : > { %v2953_v32 = vpop.permute.xlu0 %2952  ;;  %v3470_v27 = vsel %vm3147_vm6, %v3469_v42, %v3465_v50  ;;  %v2908_v61 = vpop.permute.xlu1 %2907 }
 0x5e7   : > { %v3474_v45 = vrot.slane %v2908_v61, %v6904_v48 }
 0x5e9   : > { %v3475_v41 = vsel %vm7976_vm2, %v3474_v45, %v3470_v27 }
 0x5ea   : > { %v2959_v6 = vpop.permute.xlu0 %2958  ;;  %v3480_v62 = vsel %vm3161_vm4, %v3479_v29, %v3475_v41  ;;  %v2914_v44 = vpop.permute.xlu1 %2913 }
 0x5eb   : > { %v3484_v43 = vrot.slane %v2914_v44, %v6920_v35  ;;  %v3558_v29 = vrot.slane %v2959_v6, %v6916_v22 }
 0x5ed   : > { %v3485_v2 = vsel %vm3168_vm3, %v3484_v43, %v3480_v62 }
 0x5ee   : > { %v3726_v15 = vsel %vm7980_vm5, %v3485_v2, %v3725_v30  ;;  %v7177_v55 = vpop.permute.xlu0 %2964  ;;  %v2920_v9 = vpop.permute.xlu1 %2919  ;;  %v3508_v30 = vrot.slane %v2929_v60, %v6816_v37  ;;  %v3528_v60 = vrot.slane %v2941_v47, %v6855_v17  ;;  %v3548_v47 = vrot.slane %v2953_v32, %v6898_v59 }
 0x5ef   : > { %v3493_v19 = vrot.slane %v2920_v9, %v6775_v8  ;;  %vm7981_vm5 = vcmask 1045509  }
 0x5f1   : > { %v3494_v52 = vsel %vm3070_vm9, %v3493_v19, %v3489_v3 }
 0x5f2   : > { %v3499_v13 = vsel %vm3077_vm10, %v3498_v54, %v3494_v52  ;;  %v2926_v39 = vpop.permute.xlu1 %2925  ;;  %v7184_v53 = vpop.permute.xlu0 %2970 }
 0x5f3   : > { %v3503_v10 = vrot.slane %v2926_v39, %v6801_v0 }
 0x5f5   : > { %v3504_v38 = vsel %vm3084_vm11, %v3503_v10, %v3499_v13 }
 0x5f6   : > { %v3509_v36 = vsel %vm3091_vm12, %v3508_v30, %v3504_v38  ;;  %v2932_v31 = vpop.permute.xlu1 %2931  ;;  %v7192_v7 = vpop.permute.xlu0 %2976 }
 0x5f7   : > { %v3513_v11 = vrot.slane %v2932_v31, %v6822_v12 }
 0x5f9   : > { %v3514_v23 = vsel %vm3098_vm13, %v3513_v11, %v3509_v36 }
 0x5fa   : > { %v3519_v4 = vsel %vm3105_vm14, %v3518_v25, %v3514_v23  ;;  %v2938_v51 = vpop.permute.xlu1 %2937  ;;  %v7200_v40 = vpop.permute.xlu0 %2982 }
 0x5fb   : > { %v3523_v14 = vrot.slane %v2938_v51, %v6838_v46 }
 0x5fd   : > { %v3524_v58 = vsel %vm3112_vm15, %v3523_v14, %v3519_v4 }
 0x5fe   : > { %v3529_v57 = vsel %vm3119_vm0, %v3528_v60, %v3524_v58  ;;  %v2944_v26 = vpop.permute.xlu1 %2943  ;;  %v7208_v42 = vpop.permute.xlu0 %2988  ;;  %v3568_v58 = vrot.slane %v7177_v55, %v6781_v21 }
 0x5ff   : > { %v3533_v1 = vrot.slane %v2944_v26, %v6861_v24 }
 0x601   : > { %v3534_v49 = vsel %vm3126_vm1, %v3533_v1, %v3529_v57 }
 0x602   : > { %v3539_v18 = vsel %vm3133_vm8, %v3538_v33, %v3534_v49  ;;  %v2950_v63 = vpop.permute.xlu1 %2949  ;;  %v7215_v62 = vpop.permute.xlu0 %2994 }
 0x603   : > { %v3543_v28 = vrot.slane %v2950_v63, %v6880_v20 }
 0x605   : > { %v3544_v50 = vsel %vm3140_vm7, %v3543_v28, %v3539_v18 }
 0x606   : > { %v3549_v27 = vsel %vm3147_vm6, %v3548_v47, %v3544_v50  ;;  %v2956_v61 = vpop.permute.xlu1 %2955  ;;  %v3013_v3 = vpop.permute.xlu0 %3012 }
 0x607   : > { %v3553_v45 = vrot.slane %v2956_v61, %v6904_v48  ;;  %v3647_v25 = vrot.slane %v3013_v3, %v6781_v21 }
 0x609   : > { %v3554_v5 = vsel %vm7976_vm2, %v3553_v45, %v3549_v27 }
 0x60a   : > { %v2962_v41 = vpop.permute.xlu1 %2961  ;;  %v3559_v32 = vsel %vm3161_vm4, %v3558_v29, %v3554_v5  ;;  %v3019_v52 = vpop.permute.xlu0 %3018  ;;  %v3587_v5 = vrot.slane %v7192_v7, %v6816_v37 }
 0x60b   : > { %v3563_v44 = vrot.slane %v2962_v41, %v6920_v35  ;;  %v3656_v4 = vrot.slane %v3019_v52, %v6798_v16 }
 0x60d   : > { %v3564_v43 = vsel %vm3168_vm3, %v3563_v44, %v3559_v32 }
 0x60e   : > { %v7221_v2 = vsel %vm7981_vm5, %v3564_v43, %v3726_v15  ;;  %v2968_v9 = vpop.permute.xlu1 %2967  ;;  %v3025_v39 = vpop.permute.xlu0 %3024 }
 0x60f   : > { %v3572_v51 = vrot.slane %v2968_v9, %v6775_v8  ;;  %v3666_v33 = vrot.slane %v3025_v39, %v6816_v37  ;;  %v3597_v9 = vrot.slane %v7200_v40, %v6835_v56 }
 0x611   : > { %v3573_v49 = vsel %vm3070_vm9, %v3572_v51, %v3568_v58 }
 0x612   : > { %v2974_v19 = vpop.permute.xlu1 %2973  ;;  %v3031_v30 = vpop.permute.xlu0 %3030 }
 0x613   : > { %v3582_v18 = vrot.slane %v2974_v19, %v6801_v0  ;;  %v3676_v27 = vrot.slane %v3031_v30, %v6835_v56 }
 0x616   : > { %v2980_v54 = vpop.permute.xlu1 %2979  ;;  %v3037_v36 = vpop.permute.xlu0 %3036 }
 0x617   : > { %v3592_v45 = vrot.slane %v2980_v54, %v6822_v12  ;;  %v3686_v44 = vrot.slane %v3037_v36, %v6855_v17 }
 0x61a   : > { %v2986_v13 = vpop.permute.xlu1 %2985  ;;  %v3043_v60 = vpop.permute.xlu0 %3042 }
 0x61b   : > { %v3602_v43 = vrot.slane %v2986_v13, %v6838_v46  ;;  %v3696_v54 = vrot.slane %v3043_v60, %v6872_v34  ;;  %v3607_v13 = vrot.slane %v7208_v42, %v6855_v17 }
 0x61e   : > { %v2992_v6 = vpop.permute.xlu1 %2991  ;;  %v3046_v55 = vpop.permute.xlu0 %3045 }
 0x61f   : > { %v3612_v39 = vrot.slane %v2992_v6, %v6861_v24  ;;  %v3701_v40 = vrot.slane %v3046_v55, %v6880_v20 }
 0x622   : > { %v7223_v10 = vpop.permute.xlu1 %2997  ;;  %v3049_v37 = vpop.permute.xlu0 %3048 }
 0x623   : > { %v3706_v42 = vrot.slane %v3049_v37, %v6898_v59 }
 0x626   : > { %v3016_v38 = vpop.permute.xlu1 %3015 }
 0x627   : > { %v3651_v31 = vrot.slane %v3016_v38, %v6775_v8  ;;  %v3577_v8 = vrot.slane %v7184_v53, %v6798_v16  ;;  %v3052_v38 = vpop.permute.xlu0 %3051 }
 0x629   : > { %v3652_v15 = vsel %vm3070_vm9, %v3651_v31, %v3647_v25  ;;  %v3578_v21 = vsel %vm3077_vm10, %v3577_v8, %v3573_v49  ;;  %v3622_v31 = vrot.slane %v7223_v10, %v6880_v20  ;;  %vm7982_vm9 = vmmov %vm7976_vm2 }
 0x62a   : > { %v3022_v11 = vpop.permute.xlu1 %3021  ;;  %v3657_v57 = vsel %vm3077_vm10, %v3656_v4, %v3652_v15  ;;  %v3583_v61 = vsel %vm3084_vm11, %v3582_v18, %v3578_v21  ;;  %vm7983_vm10 = vmmov %vm7976_vm2 }
 0x62b   : > { %v3661_v23 = vrot.slane %v3022_v11, %v6801_v0  ;;  %v3588_v53 = vsel %vm3091_vm12, %v3587_v5, %v3583_v61  ;;  %v3055_v4 = vpop.permute.xlu0 %3054 }
 0x62c   : > { %v3593_v32 = vsel %vm3098_vm13, %v3592_v45, %v3588_v53 }
 0x62d   : > { %v3662_v26 = vsel %vm3084_vm11, %v3661_v23, %v3657_v57  ;;  %v3598_v3 = vsel %vm3105_vm14, %v3597_v9, %v3593_v32  ;;  %v3716_v57 = vrot.slane %v3055_v4, %v6916_v22 }
 0x62e   : > { %v3028_v14 = vpop.permute.xlu1 %3027  ;;  %v3667_v28 = vsel %vm3091_vm12, %v3666_v33, %v3662_v26  ;;  %v3603_v52 = vsel %vm3112_vm15, %v3602_v43, %v3598_v3 }
 0x62f   : > { %v3671_v1 = vrot.slane %v3028_v14, %v6822_v12  ;;  %v3608_v30 = vsel %vm3119_vm0, %v3607_v13, %v3603_v52 }
 0x630   : > { %v3613_v36 = vsel %vm3126_vm1, %v3612_v39, %v3608_v30 }
 0x631   : > { %v3672_v47 = vsel %vm3098_vm13, %v3671_v1, %v3667_v28 }
 0x632   : > { %v3034_v63 = vpop.permute.xlu1 %3033  ;;  %v3677_v16 = vsel %vm3105_vm14, %v3676_v27, %v3672_v47 }
 0x633   : > { %v3681_v50 = vrot.slane %v3034_v63, %v6838_v46 }
 0x635   : > { %v3682_v29 = vsel %vm3112_vm15, %v3681_v50, %v3677_v16 }
 0x636   : > { %v3040_v0 = vpop.permute.xlu1 %3039  ;;  %v3687_v7 = vsel %vm3119_vm0, %v3686_v44, %v3682_v29 }
 0x637   : > { %v3691_v41 = vrot.slane %v3040_v0, %v6861_v24  ;;  %v3617_v24 = vrot.slane %v7215_v62, %v6872_v34  ;;  %v3711_v62 = vrot.slane %v3052_v38, %v6904_v48 }
 0x639   : > { %v3692_v19 = vsel %vm3126_vm1, %v3691_v41, %v3687_v7  ;;  %v3618_v15 = vsel %vm3133_vm8, %v3617_v24, %v3613_v36 }
 0x63a   : > { %v3001_v12 = vpop.permute.xlu1 %3000  ;;  %v3697_v56 = vsel %vm3133_vm8, %v3696_v54, %v3692_v19  ;;  %v3623_v20 = vsel %vm3140_vm7, %v3622_v31, %v3618_v15 }
 0x63b   : > { %v3702_v6 = vsel %vm3140_vm7, %v3701_v40, %v3697_v56  ;;  %v3627_v17 = vrot.slane %v3001_v12, %v6898_v59  ;;  %vm7985_vm7 = vcmask 1047559  }
 0x63c   : > { %v3707_v34 = vsel %vm3147_vm6, %v3706_v42, %v3702_v6 }
 0x63d   : > { %v3628_v51 = vsel %vm3147_vm6, %v3627_v17, %v3623_v20  ;;  %v3712_v58 = vsel %vm7983_vm10, %v3711_v62, %v3707_v34  ;;  %vm7984_vm6 = vcmask 1046534  }
 0x63e   : > { %v3004_v46 = vpop.permute.xlu1 %3003  ;;  %v3717_v33 = vsel %vm3161_vm4, %v3716_v57, %v3712_v58 }
 0x63f   : > { %v3632_v25 = vrot.slane %v3004_v46, %v6904_v48 }
 0x641   : > { %v3633_v14 = vsel %vm7982_vm9, %v3632_v25, %v3628_v51 }
 0x642   : > { %v3007_v11 = vpop.permute.xlu1 %3006 }
 0x643   : > { %v3637_v23 = vrot.slane %v3007_v11, %v6916_v22 }
 0x645   : > { %v3638_v60 = vsel %vm3161_vm4, %v3637_v23, %v3633_v14 }
 0x646   : > { %v3010_v10 = vpop.permute.xlu1 %3009 }
 0x647   : > { %v3642_v59 = vrot.slane %v3010_v10, %v6920_v35 }
 0x649   : > { %v3643_v26 = vsel %vm3168_vm3, %v3642_v59, %v3638_v60 }
 0x64a   : > { %v3058_v1 = vpop.permute.xlu1 %3057  ;;  %v3728_v18 = vsel %vm7984_vm6, %v3643_v26, %v7221_v2 }
 0x64b   : > { %v3721_v48 = vrot.slane %v3058_v1, %v6920_v35 }
 0x64d   : > { %v3722_v49 = vsel %vm3168_vm3, %v3721_v48, %v3717_v33 }
 0x64e   : > { %v3729_v22 = vsel %vm7985_vm7, %v3722_v49, %v3728_v18 }
 0x64f   : > { %3731 = vst [vmem:[%s300_s21] sm:$0xff] %v3729_v22 }
 0x650   : > { %4292 = shalt.err (!%p4289_p4)
}
 0x651   : > { %s4293_s14 = scalar_lea.hbm %s7303_s16, 128  ;;  %s4297_s19 = scalar_lea.hbm %s7348_s7, 256 }
 0x652   : > { %p4294_p7 = scmp.ne.s32.totalorder %s7303_s16, %s4293_s14  ;;  %p4298_p10 = scmp.lt.s32.totalorder %s7303_s16, %s7348_s7 }
 0x653   : > { %p4299_p11 = scmp.lt.s32.totalorder %s4297_s19, %s4293_s14 }
 0x654   : > { %p4295_p8 = pnand %p4294_p7, %p4423_p5 }
 0x655   : > { %p4300_p12 = por %p4299_p11, %p4298_p10 }
 0x656   : > { %p4296_p9 = pneg %p4295_p8 }
 0x658   : > { %p4301_p13 = pnand %p4300_p12, %p4296_p9 }
 0x65a   : > { %4304 = shalt.err (!%p4301_p13)
}
 0x65b   : > { %4217 = dma.vmem_to_hbm [thread:$0]  (%p4423_p5), %s3747_s22, 128, %s7303_s16, %s3733_s28  }
 0x65c PF: > { %p4223_p0 = scmp.ge.s32.totalorder %s4339_s27, 2  ;;  %s3758_s13 = sand.u32 1, %s4327_s24  }
 0x65d   : > { %s3759_s23 = scalar_lea.sflag [#allocation3], %s3758_s13 }
 0x65e   : > { %p4220_p1 = pnand %p4223_p0, %p4427_p6 }
 0x660   : > { %p4221_p2 = pneg %p4220_p1 }
 0x662   : > { %4322 = dma.done.wait (%p4221_p2), %s3759_s23, 128  }
 0x663   : > { %4324 = vsyncadd (%p4221_p2), %s3759_s23, 4294967168  ;;  %p17_p3 = scmp.ge.s32.totalorder %s4410_s30, 4   ;;  %s7986_s24 = smov %s4331_s25 }
 0x664   : > { %s7987_s25 = smov %s4335_s26  ;;  %s7988_s26 = smov %s4421_s10 }
 0x665   : > { %s7989_s27 = smov %s4410_s30  ;;  %19 = sbr.rel (!%p17_p3) target bundleno = 3 (0x3), region = 89 }
 0x66a   :  { %3764 = vsyncpa [#allocation3], 1 }
 0x66b   :  { %3766 = vsyncpa [#allocation3 + $0x1], 1 }

</bundles_post_ra>
